<compile_context>
chip_gen: v7x
topology: tpu7x:2x2x1
jax: 0.10.0
libtpu: 0.0.40
codegen_flags: <defaults>
</compile_context>

<pallas_src>
import functools

import jax
import jax.numpy as jnp
from jax.experimental import pallas as pl
from jax.experimental.pallas import tpu as pltpu

EPS = 1e-5          # PyTorch BatchNorm2d default eps
LANES = 128         # TPU lane width
MB = 1024 * 1024


def _round_up(v, m):
    return ((v + m - 1) // m) * m


def _vmem_limit(working_set_bytes):
    # Derive the scoped-VMEM limit from the per-step working set (+30% headroom for Mosaic
    # internal scratch), clamped to [32 MiB, 48 MiB]: safe on v7x (64 MiB/TC physical) and
    # never below the defaults on v5e/v6e.
    return int(min(max(int(working_set_bytes * 1.3), 32 * MB), 48 * MB))


def _compiler_params(vmem_bytes):
    return pltpu.CompilerParams(
        dimension_semantics=("parallel",),   # batch / row-tile axis -> shardable across TCs
        vmem_limit_bytes=vmem_bytes,
    )


def _pick_tile_h(h, w, cp):
    """Row-chunk height for the in-kernel conv GEMM: divides H, >=256 output rows per chunk
    (keeps the K=Cp accumulating dots MXU-efficient on v5e/v6e), f32 accumulator bounded to a
    few MiB, and at most 8 chunks (static unroll)."""
    divisors = [t for t in range(1, h + 1) if h % t == 0]
    min_rows = min(256, h * w)
    for budget in (2 * MB, 4 * MB, 8 * MB, 1 << 62):
        for t in divisors:
            if t * w >= min_rows and t * w * cp * 4 <= budget and h // t <= 8:
                return t
    return h


def _pick_row_tile(total, target=2048):
    """Row tile for the flattened (rows, Cp) epilogue: largest divisor of `total` that is
    <= target and a multiple of 8 (falls back to the full extent)."""
    t = min(total, target)
    while t > 8:
        if total % t == 0 and t % 8 == 0:
            return t
        t -= 1
    return total


# --------------------------------------------------------------------------------------
# Kernels 1/2: [optional per-channel affine + ReLU] -> conv3x3 (+bias) -> partial BN stats
# --------------------------------------------------------------------------------------
def _conv_bn_stats_kernel(fuse_input_bn_relu, tile_h, *refs):
    if fuse_input_bn_relu:
        x_ref, scale_ref, shift_ref, w_ref, b_ref, y_ref, stats_ref, pad_ref = refs
    else:
        x_ref, w_ref, b_ref, y_ref, stats_ref, pad_ref = refs

    _, H, W, Cp = x_ref.shape
    Hp, Wp = H + 2, W + 2

    x = x_ref[0]                                        # (H, W, Cp) f32
    if fuse_input_bn_relu:
        scale = scale_ref[...].reshape(1, 1, Cp)
        shift = shift_ref[...].reshape(1, 1, Cp)
        x = jnp.maximum(x * scale + shift, 0.0)         # bn1 affine + ReLU fused

    # Stage into the per-image padded scratch: zero ONLY the 1-pixel halo (interior is fully
    # overwritten each grid step; re-zeroed every step so it is megacore-safe).
    pad_ref[0:1, :, :] = jnp.zeros((1, Wp, Cp), pad_ref.dtype)
    pad_ref[Hp - 1:Hp, :, :] = jnp.zeros((1, Wp, Cp), pad_ref.dtype)
    pad_ref[:, 0:1, :] = jnp.zeros((Hp, 1, Cp), pad_ref.dtype)
    pad_ref[:, Wp - 1:Wp, :] = jnp.zeros((Hp, 1, Cp), pad_ref.dtype)
    pad_ref[1:H + 1, 1:W + 1, :] = x

    bias = b_ref[...]                                   # (1, Cp) f32
    ssum = jnp.zeros((1, Cp), jnp.float32)
    ssq = jnp.zeros((1, Cp), jnp.float32)

    # Row-chunked conv3x3: 9 accumulating (rows, Cp) x (Cp, Cp) MXU dots per chunk — bf16
    # operands, f32 accumulation. No (M, 9*Cp) im2col temp is ever materialized.
    for c in range(H // tile_h):
        r0 = c * tile_h
        rows = tile_h * W
        acc = jnp.zeros((rows, Cp), jnp.float32)
        for dy in range(3):
            for dx in range(3):
                tap = pad_ref[r0 + dy:r0 + dy + tile_h, dx:dx + W, :]
                tap = tap.reshape(rows, Cp).astype(jnp.bfloat16)
                acc = acc + jnp.dot(tap, w_ref[dy * 3 + dx],
                                    preferred_element_type=jnp.float32)
        acc = acc + bias
        # Single-pass partial BatchNorm statistics (reduced in the wrapper).
        ssum = ssum + jnp.sum(acc, axis=0, keepdims=True)
        ssq = ssq + jnp.sum(acc * acc, axis=0, keepdims=True)
        y_ref[0, r0:r0 + tile_h, :, :] = acc.reshape(tile_h, W, Cp)

    stats_ref[...] = jnp.concatenate([ssum, ssq], axis=0).reshape(1, 2, Cp)


def _conv_bn_stats_call(x_nhwc, w_packed, bias, scale=None, shift=None):
    N, H, W, Cp = x_nhwc.shape
    fuse = scale is not None
    tile_h = _pick_tile_h(H, W, Cp)
    kernel = functools.partial(_conv_bn_stats_kernel, fuse, tile_h)

    act_spec = pl.BlockSpec((1, H, W, Cp), lambda n: (n, 0, 0, 0))
    vec_spec = pl.BlockSpec((1, Cp), lambda n: (0, 0))
    w_spec = pl.BlockSpec(w_packed.shape, lambda n: (0, 0, 0))
    stats_spec = pl.BlockSpec((1, 2, Cp), lambda n: (n, 0, 0))

    in_specs = [act_spec]
    args = [x_nhwc]
    if fuse:
        in_specs += [vec_spec, vec_spec]
        args += [scale, shift]
    in_specs += [w_spec, vec_spec]
    args += [w_packed, bias]

    act_bytes = H * W * Cp * 4
    ws = (2 * act_bytes                        # input block, double-buffered
          + 2 * act_bytes                      # output block, double-buffered
          + 2 * w_packed.size * 2              # (9,Cp,Cp) bf16 weights, double-buffered
          + (H + 2) * (W + 2) * Cp * 4         # padded f32 staging scratch
          + 3 * tile_h * W * Cp * 4            # acc + tap temporaries
          + 16 * Cp * 4)                       # bias / scale / shift / stats

    y, stats = pl.pallas_call(
        kernel,
        grid=(N,),
        in_specs=in_specs,
        out_specs=(act_spec, stats_spec),
        out_shape=(jax.ShapeDtypeStruct((N, H, W, Cp), jnp.float32),
                   jax.ShapeDtypeStruct((N, 2, Cp), jnp.float32)),
        scratch_shapes=[pltpu.VMEM((H + 2, W + 2, Cp), jnp.float32)],
        compiler_params=_compiler_params(_vmem_limit(ws)),
    )(*args)
    return y, stats


# --------------------------------------------------------------------------------------
# Kernel 3: bn2 affine + identity skip + ReLU on a flattened (rows, Cp) view
# --------------------------------------------------------------------------------------
def _bn_add_relu_kernel(y_ref, skip_ref, scale_ref, shift_ref, o_ref):
    o_ref[...] = jnp.maximum(
        y_ref[...] * scale_ref[...] + shift_ref[...] + skip_ref[...], 0.0)


def _bn_add_relu_call(y2d, skip2d, scale, shift):
    R, Cp = y2d.shape
    tile_r = _pick_row_tile(R)
    act_spec = pl.BlockSpec((tile_r, Cp), lambda r: (r, 0))
    vec_spec = pl.BlockSpec((1, Cp), lambda r: (0, 0))
    ws = 3 * 2 * tile_r * Cp * 4 + 8 * Cp * 4
    return pl.pallas_call(
        _bn_add_relu_kernel,
        grid=(R // tile_r,),
        in_specs=[act_spec, act_spec, vec_spec, vec_spec],
        out_specs=act_spec,
        out_shape=jax.ShapeDtypeStruct((R, Cp), jnp.float32),
        input_output_aliases={0: 0},            # reuse y2's HBM buffer for the output
        compiler_params=_compiler_params(_vmem_limit(ws)),
    )(y2d, skip2d, scale, shift)


# --------------------------------------------------------------------------------------
# Wrapper
# --------------------------------------------------------------------------------------
def _pack_conv_weight(w, cp):
    # torch (Cout, Cin, kh, kw) -> (kh, kw, Cin, Cout), zero-pad channels to cp, then pack as
    # (9, cp, cp) so w_packed[dy*3+dx] is the (Cin, Cout) matrix for that tap.
    cout, cin, kh, kw = w.shape
    wt = jnp.transpose(w, (2, 3, 1, 0)).astype(jnp.float32)
    wt = jnp.pad(wt, ((0, 0), (0, 0), (0, cp - cin), (0, cp - cout)))
    return wt.reshape(kh * kw, cp, cp).astype(jnp.bfloat16)


def _pad_row(v, cp):
    v = v.reshape(1, -1).astype(jnp.float32)
    return jnp.pad(v, ((0, 0), (0, cp - v.shape[1])))


def _bn_fold_scale_shift(stats, count, gamma, beta):
    # stats: (N, 2, Cp) per-image [sum, sumsq] partials. Biased batch variance (PyTorch
    # training-mode forward). Tiny per-channel math in f32; clamp var >= 0.
    ssum = jnp.sum(stats[:, 0, :], axis=0, keepdims=True)   # (1, Cp)
    ssq = jnp.sum(stats[:, 1, :], axis=0, keepdims=True)    # (1, Cp)
    mean = ssum / count
    var = jnp.maximum(ssq / count - mean * mean, 0.0)
    scale = gamma * jax.lax.rsqrt(var + EPS)
    shift = beta - mean * scale
    return scale, shift


def residual_forward(x_nchw, params):
    x = jnp.transpose(x_nchw, (0, 2, 3, 1)).astype(jnp.float32)   # NCHW -> NHWC
    N, H, W, C = x.shape
    cout, cin = params["w1"].shape[:2]
    assert C == cin and cin == cout, "identity skip requires input_channels == num_channels"
    # TODO(synk): channels are zero-padded to 128 lanes; for C < 128 this inflates MXU work and
    # HBM bytes by Cp/C — efficient small-C layers would need a W-into-lanes packing instead.
    Cp = _round_up(C, LANES)                                      # lane-dense channel dim

    xp = jnp.pad(x, ((0, 0), (0, 0), (0, 0), (0, Cp - C)))        # channel pad only
    w1 = _pack_conv_weight(params["w1"], Cp)
    w2 = _pack_conv_weight(params["w2"], Cp)
    b1 = _pad_row(params["b1"], Cp)
    b2 = _pad_row(params["b2"], Cp)
    g1 = _pad_row(params["g1"], Cp)
    be1 = _pad_row(params["be1"], Cp)
    g2 = _pad_row(params["g2"], Cp)
    be2 = _pad_row(params["be2"], Cp)

    count = float(N * H * W)

    # conv1 + BN1 partial stats (no dummy scale/shift inputs)
    y1, st1 = _conv_bn_stats_call(xp, w1, b1)
    sc1, sh1 = _bn_fold_scale_shift(st1, count, g1, be1)
    # bn1 + ReLU fused into conv2 + BN2 partial stats
    y2, st2 = _conv_bn_stats_call(y1, w2, b2, sc1, sh1)
    sc2, sh2 = _bn_fold_scale_shift(st2, count, g2, be2)
    # bn2 + identity skip + ReLU on flattened lane-dense tiles; output aliases y2
    out2d = _bn_add_relu_call(y2.reshape(N * H * W, Cp),
                              xp.reshape(N * H * W, Cp), sc2, sh2)

    out = out2d.reshape(N, H, W, Cp)[..., :C]                     # drop channel padding
    return jnp.transpose(out, (0, 3, 1, 2))                       # NHWC -> NCHW


# --------------------------------------------------------------------------------------
# Pure-JAX reference (XLA convs). conv_dtype=bfloat16 mirrors the kernel's MXU operand
# rounding (f32 accumulation in both cases) for a tight correctness check.
# --------------------------------------------------------------------------------------
def residual_reference(x_nchw, params, conv_dtype=jnp.float32):
    x = jnp.transpose(x_nchw, (0, 2, 3, 1)).astype(jnp.float32)
    w1 = jnp.transpose(params["w1"], (2, 3, 1, 0))
    w2 = jnp.transpose(params["w2"], (2, 3, 1, 0))

    def conv(inp, w, b):
        y = jax.lax.conv_general_dilated(
            inp.astype(conv_dtype).astype(jnp.float32),
            w.astype(conv_dtype).astype(jnp.float32),
            window_strides=(1, 1), padding="SAME",
            dimension_numbers=("NHWC", "HWIO", "NHWC"),
            precision=jax.lax.Precision.HIGHEST)
        return y + b.reshape(1, 1, 1, -1)

    def bn(y, g, be):
        m = jnp.mean(y, axis=(0, 1, 2), keepdims=True)
        v = jnp.mean((y - m) ** 2, axis=(0, 1, 2), keepdims=True)
        return (y - m) * jax.lax.rsqrt(v + EPS) * g.reshape(1, 1, 1, -1) + be.reshape(1, 1, 1, -1)

    y = jax.nn.relu(bn(conv(x, w1, params["b1"]), params["g1"], params["be1"]))
    y = bn(conv(y, w2, params["b2"]), params["g2"], params["be2"])
    out = jax.nn.relu(y + x)
    return jnp.transpose(out, (0, 3, 1, 2))


def init_params(key, input_channels, num_channels):
    k1, k2, k3, k4 = jax.random.split(key, 4)
    return {
        "w1": 0.1 * jax.random.normal(k1, (num_channels, input_channels, 3, 3), jnp.float32),
        "b1": 0.05 * jax.random.normal(k2, (num_channels,), jnp.float32),
        "w2": 0.1 * jax.random.normal(k3, (num_channels, num_channels, 3, 3), jnp.float32),
        "b2": 0.05 * jax.random.normal(k4, (num_channels,), jnp.float32),
        "g1": jnp.ones((num_channels,), jnp.float32),
        "be1": jnp.zeros((num_channels,), jnp.float32),
        "g2": jnp.ones((num_channels,), jnp.float32),
        "be2": jnp.zeros((num_channels,), jnp.float32),
    }


if __name__ == "__main__":
    key = jax.random.PRNGKey(0)
    kx, kp = jax.random.split(key)
    N, C, H, W = 2, 4, 16, 16
    x = jax.random.normal(kx, (N, C, H, W), jnp.float32)   # PyTorch-style NCHW input
    params = init_params(kp, input_channels=C, num_channels=C)

    fwd = jax.jit(residual_forward)
    out = jax.block_until_ready(fwd(x, params))
    assert out.shape == (N, C, H, W)

    # Tight check against a reference that rounds conv operands to bf16 exactly like the
    # kernel (difference = f32 accumulation order only).
    ref_bf16 = jax.block_until_ready(residual_reference(x, params, conv_dtype=jnp.bfloat16))
    err_bf16 = float(jnp.max(jnp.abs(out - ref_bf16)))
    assert err_bf16 < 3e-3, f"mismatch vs bf16-operand reference: {err_bf16}"

    # Loose sanity check against the full-f32 reference (bf16 MXU operands add small error).
    ref_f32 = jax.block_until_ready(residual_reference(x, params))
    err_f32 = float(jnp.max(jnp.abs(out - ref_f32)))
    assert err_f32 < 1.5e-1, f"mismatch vs f32 reference: {err_f32}"

    print("KERNEL_OK")
</pallas_src>

<mosaic_0001>
module attributes {stable_mosaic.version = 11 : i64} {
  func.func @_conv_bn_stats_kernel(%arg0: i32, %arg1: memref<1x16x16x128xf32, #tpu.memory_space<vmem>>, %arg2: memref<9x128x128xbf16, #tpu.memory_space<vmem>>, %arg3: memref<1x128xf32, #tpu.memory_space<vmem>>, %arg4: memref<1x16x16x128xf32, #tpu.memory_space<vmem>>, %arg5: memref<1x2x128xf32, #tpu.memory_space<vmem>>, %arg6: memref<18x18x128xf32, #tpu.memory_space<vmem>>) attributes {dimension_semantics = [#tpu.dimension_semantics<parallel>], iteration_bounds = array<i64: 2>, scalar_prefetch = 0 : i64, scratch_operands = 1 : i64, tpu.core_type = #tpu.core_type<tc>, window_params = [{transform_indices = @transform_0, window_bounds = array<i64: 1, 16, 16, 128>}, {pipeline_mode = #tpu.pipeline_mode<synchronous>, transform_indices = @transform_1, window_bounds = array<i64: 9, 128, 128>}, {pipeline_mode = #tpu.pipeline_mode<synchronous>, transform_indices = @transform_2, window_bounds = array<i64: 1, 128>}, {transform_indices = @transform_3, window_bounds = array<i64: 1, 16, 16, 128>}, {transform_indices = @transform_4, window_bounds = array<i64: 1, 2, 128>}]} {
    %c0 = arith.constant 0 : index
    %c0_0 = arith.constant 0 : index
    %c0_1 = arith.constant 0 : index
    %c0_2 = arith.constant 0 : index
    %0 = vector.load %arg1[%c0, %c0_0, %c0_1, %c0_2] : memref<1x16x16x128xf32, #tpu.memory_space<vmem>>, vector<1x16x16x128xf32>
    %1 = vector.shape_cast %0 : vector<1x16x16x128xf32> to vector<16x16x128xf32>
    %cst = arith.constant 0.000000e+00 : f32
    %2 = vector.broadcast %cst : f32 to vector<1x18x128xf32>
    %c0_3 = arith.constant 0 : index
    %c0_4 = arith.constant 0 : index
    %c0_5 = arith.constant 0 : index
    %3 = vector.load %arg6[%c0_3, %c0_4, %c0_5] : memref<18x18x128xf32, #tpu.memory_space<vmem>>, vector<1x18x128xf32>
    tpu.vector_store %arg6[%c0_3, %c0_4, %c0_5], %2 {strides = array<i32>} : memref<18x18x128xf32, #tpu.memory_space<vmem>>, vector<1x18x128xf32>,
    %cst_6 = arith.constant 0.000000e+00 : f32
    %4 = vector.broadcast %cst_6 : f32 to vector<1x18x128xf32>
    %c17 = arith.constant 17 : index
    %c0_7 = arith.constant 0 : index
    %c0_8 = arith.constant 0 : index
    %5 = vector.load %arg6[%c17, %c0_7, %c0_8] : memref<18x18x128xf32, #tpu.memory_space<vmem>>, vector<1x18x128xf32>
    tpu.vector_store %arg6[%c17, %c0_7, %c0_8], %4 {strides = array<i32>} : memref<18x18x128xf32, #tpu.memory_space<vmem>>, vector<1x18x128xf32>,
    %cst_9 = arith.constant 0.000000e+00 : f32
    %6 = vector.broadcast %cst_9 : f32 to vector<18x1x128xf32>
    %c0_10 = arith.constant 0 : index
    %c0_11 = arith.constant 0 : index
    %c0_12 = arith.constant 0 : index
    %7 = vector.load %arg6[%c0_10, %c0_11, %c0_12] : memref<18x18x128xf32, #tpu.memory_space<vmem>>, vector<18x1x128xf32>
    tpu.vector_store %arg6[%c0_10, %c0_11, %c0_12], %6 {strides = array<i32>} : memref<18x18x128xf32, #tpu.memory_space<vmem>>, vector<18x1x128xf32>,
    %cst_13 = arith.constant 0.000000e+00 : f32
    %8 = vector.broadcast %cst_13 : f32 to vector<18x1x128xf32>
    %c0_14 = arith.constant 0 : index
    %c17_15 = arith.constant 17 : index
    %c0_16 = arith.constant 0 : index
    %9 = vector.load %arg6[%c0_14, %c17_15, %c0_16] : memref<18x18x128xf32, #tpu.memory_space<vmem>>, vector<18x1x128xf32>
    tpu.vector_store %arg6[%c0_14, %c17_15, %c0_16], %8 {strides = array<i32>} : memref<18x18x128xf32, #tpu.memory_space<vmem>>, vector<18x1x128xf32>,
    %c1 = arith.constant 1 : index
    %c1_17 = arith.constant 1 : index
    %c0_18 = arith.constant 0 : index
    %10 = vector.load %arg6[%c1, %c1_17, %c0_18] : memref<18x18x128xf32, #tpu.memory_space<vmem>>, vector<16x16x128xf32>
    tpu.vector_store %arg6[%c1, %c1_17, %c0_18], %1 {strides = array<i32>} : memref<18x18x128xf32, #tpu.memory_space<vmem>>, vector<16x16x128xf32>,
    %c0_19 = arith.constant 0 : index
    %c0_20 = arith.constant 0 : index
    %11 = vector.load %arg3[%c0_19, %c0_20] : memref<1x128xf32, #tpu.memory_space<vmem>>, vector<1x128xf32>
    %cst_21 = arith.constant 0.000000e+00 : f32
    %12 = vector.broadcast %cst_21 : f32 to vector<1x128xf32>
    %cst_22 = arith.constant 0.000000e+00 : f32
    %13 = vector.broadcast %cst_22 : f32 to vector<1x128xf32>
    %cst_23 = arith.constant 0.000000e+00 : f32
    %14 = vector.broadcast %cst_23 : f32 to vector<256x128xf32>
    %c0_24 = arith.constant 0 : index
    %c0_25 = arith.constant 0 : index
    %c0_26 = arith.constant 0 : index
    %15 = vector.load %arg6[%c0_24, %c0_25, %c0_26] : memref<18x18x128xf32, #tpu.memory_space<vmem>>, vector<16x16x128xf32>
    %16 = vector.shape_cast %15 : vector<16x16x128xf32> to vector<256x128xf32>
    %17 = arith.truncf %16 : vector<256x128xf32> to vector<256x128xbf16>
    %c0_27 = arith.constant 0 : index
    %c0_28 = arith.constant 0 : index
    %c0_29 = arith.constant 0 : index
    %18 = vector.load %arg2[%c0_27, %c0_28, %c0_29] : memref<9x128x128xbf16, #tpu.memory_space<vmem>>, vector<1x128x128xbf16>
    %19 = vector.shape_cast %18 : vector<1x128x128xbf16> to vector<128x128xbf16>
    %cst_30 = arith.constant dense<0.000000e+00> : vector<256x128xf32>
    %20 = tpu.matmul %17, %19, %cst_30 {dimension_numbers = #tpu.dot_dimension_numbers<[1], [0], [0], [1], [0, 0, 1, 1], [], []>} : vector<256x128xbf16>, vector<128x128xbf16>, vector<256x128xf32> -> vector<256x128xf32>
    %21 = arith.addf %14, %20 : vector<256x128xf32>
    %c0_31 = arith.constant 0 : index
    %c1_32 = arith.constant 1 : index
    %c0_33 = arith.constant 0 : index
    %22 = vector.load %arg6[%c0_31, %c1_32, %c0_33] : memref<18x18x128xf32, #tpu.memory_space<vmem>>, vector<16x16x128xf32>
    %23 = vector.shape_cast %22 : vector<16x16x128xf32> to vector<256x128xf32>
    %24 = arith.truncf %23 : vector<256x128xf32> to vector<256x128xbf16>
    %c1_34 = arith.constant 1 : index
    %c0_35 = arith.constant 0 : index
    %c0_36 = arith.constant 0 : index
    %25 = vector.load %arg2[%c1_34, %c0_35, %c0_36] : memref<9x128x128xbf16, #tpu.memory_space<vmem>>, vector<1x128x128xbf16>
    %26 = vector.shape_cast %25 : vector<1x128x128xbf16> to vector<128x128xbf16>
    %cst_37 = arith.constant dense<0.000000e+00> : vector<256x128xf32>
    %27 = tpu.matmul %24, %26, %cst_37 {dimension_numbers = #tpu.dot_dimension_numbers<[1], [0], [0], [1], [0, 0, 1, 1], [], []>} : vector<256x128xbf16>, vector<128x128xbf16>, vector<256x128xf32> -> vector<256x128xf32>
    %28 = arith.addf %21, %27 : vector<256x128xf32>
    %c0_38 = arith.constant 0 : index
    %c2 = arith.constant 2 : index
    %c0_39 = arith.constant 0 : index
    %29 = vector.load %arg6[%c0_38, %c2, %c0_39] : memref<18x18x128xf32, #tpu.memory_space<vmem>>, vector<16x16x128xf32>
    %30 = vector.shape_cast %29 : vector<16x16x128xf32> to vector<256x128xf32>
    %31 = arith.truncf %30 : vector<256x128xf32> to vector<256x128xbf16>
    %c2_40 = arith.constant 2 : index
    %c0_41 = arith.constant 0 : index
    %c0_42 = arith.constant 0 : index
    %32 = vector.load %arg2[%c2_40, %c0_41, %c0_42] : memref<9x128x128xbf16, #tpu.memory_space<vmem>>, vector<1x128x128xbf16>
    %33 = vector.shape_cast %32 : vector<1x128x128xbf16> to vector<128x128xbf16>
    %cst_43 = arith.constant dense<0.000000e+00> : vector<256x128xf32>
    %34 = tpu.matmul %31, %33, %cst_43 {dimension_numbers = #tpu.dot_dimension_numbers<[1], [0], [0], [1], [0, 0, 1, 1], [], []>} : vector<256x128xbf16>, vector<128x128xbf16>, vector<256x128xf32> -> vector<256x128xf32>
    %35 = arith.addf %28, %34 : vector<256x128xf32>
    %c1_44 = arith.constant 1 : index
    %c0_45 = arith.constant 0 : index
    %c0_46 = arith.constant 0 : index
    %36 = vector.load %arg6[%c1_44, %c0_45, %c0_46] : memref<18x18x128xf32, #tpu.memory_space<vmem>>, vector<16x16x128xf32>
    %37 = vector.shape_cast %36 : vector<16x16x128xf32> to vector<256x128xf32>
    %38 = arith.truncf %37 : vector<256x128xf32> to vector<256x128xbf16>
    %c3 = arith.constant 3 : index
    %c0_47 = arith.constant 0 : index
    %c0_48 = arith.constant 0 : index
    %39 = vector.load %arg2[%c3, %c0_47, %c0_48] : memref<9x128x128xbf16, #tpu.memory_space<vmem>>, vector<1x128x128xbf16>
    %40 = vector.shape_cast %39 : vector<1x128x128xbf16> to vector<128x128xbf16>
    %cst_49 = arith.constant dense<0.000000e+00> : vector<256x128xf32>
    %41 = tpu.matmul %38, %40, %cst_49 {dimension_numbers = #tpu.dot_dimension_numbers<[1], [0], [0], [1], [0, 0, 1, 1], [], []>} : vector<256x128xbf16>, vector<128x128xbf16>, vector<256x128xf32> -> vector<256x128xf32>
    %42 = arith.addf %35, %41 : vector<256x128xf32>
    %c1_50 = arith.constant 1 : index
    %c1_51 = arith.constant 1 : index
    %c0_52 = arith.constant 0 : index
    %43 = vector.load %arg6[%c1_50, %c1_51, %c0_52] : memref<18x18x128xf32, #tpu.memory_space<vmem>>, vector<16x16x128xf32>
    %44 = vector.shape_cast %43 : vector<16x16x128xf32> to vector<256x128xf32>
    %45 = arith.truncf %44 : vector<256x128xf32> to vector<256x128xbf16>
    %c4 = arith.constant 4 : index
    %c0_53 = arith.constant 0 : index
    %c0_54 = arith.constant 0 : index
    %46 = vector.load %arg2[%c4, %c0_53, %c0_54] : memref<9x128x128xbf16, #tpu.memory_space<vmem>>, vector<1x128x128xbf16>
    %47 = vector.shape_cast %46 : vector<1x128x128xbf16> to vector<128x128xbf16>
    %cst_55 = arith.constant dense<0.000000e+00> : vector<256x128xf32>
    %48 = tpu.matmul %45, %47, %cst_55 {dimension_numbers = #tpu.dot_dimension_numbers<[1], [0], [0], [1], [0, 0, 1, 1], [], []>} : vector<256x128xbf16>, vector<128x128xbf16>, vector<256x128xf32> -> vector<256x128xf32>
    %49 = arith.addf %42, %48 : vector<256x128xf32>
    %c1_56 = arith.constant 1 : index
    %c2_57 = arith.constant 2 : index
    %c0_58 = arith.constant 0 : index
    %50 = vector.load %arg6[%c1_56, %c2_57, %c0_58] : memref<18x18x128xf32, #tpu.memory_space<vmem>>, vector<16x16x128xf32>
    %51 = vector.shape_cast %50 : vector<16x16x128xf32> to vector<256x128xf32>
    %52 = arith.truncf %51 : vector<256x128xf32> to vector<256x128xbf16>
    %c5 = arith.constant 5 : index
    %c0_59 = arith.constant 0 : index
    %c0_60 = arith.constant 0 : index
    %53 = vector.load %arg2[%c5, %c0_59, %c0_60] : memref<9x128x128xbf16, #tpu.memory_space<vmem>>, vector<1x128x128xbf16>
    %54 = vector.shape_cast %53 : vector<1x128x128xbf16> to vector<128x128xbf16>
    %cst_61 = arith.constant dense<0.000000e+00> : vector<256x128xf32>
    %55 = tpu.matmul %52, %54, %cst_61 {dimension_numbers = #tpu.dot_dimension_numbers<[1], [0], [0], [1], [0, 0, 1, 1], [], []>} : vector<256x128xbf16>, vector<128x128xbf16>, vector<256x128xf32> -> vector<256x128xf32>
    %56 = arith.addf %49, %55 : vector<256x128xf32>
    %c2_62 = arith.constant 2 : index
    %c0_63 = arith.constant 0 : index
    %c0_64 = arith.constant 0 : index
    %57 = vector.load %arg6[%c2_62, %c0_63, %c0_64] : memref<18x18x128xf32, #tpu.memory_space<vmem>>, vector<16x16x128xf32>
    %58 = vector.shape_cast %57 : vector<16x16x128xf32> to vector<256x128xf32>
    %59 = arith.truncf %58 : vector<256x128xf32> to vector<256x128xbf16>
    %c6 = arith.constant 6 : index
    %c0_65 = arith.constant 0 : index
    %c0_66 = arith.constant 0 : index
    %60 = vector.load %arg2[%c6, %c0_65, %c0_66] : memref<9x128x128xbf16, #tpu.memory_space<vmem>>, vector<1x128x128xbf16>
    %61 = vector.shape_cast %60 : vector<1x128x128xbf16> to vector<128x128xbf16>
    %cst_67 = arith.constant dense<0.000000e+00> : vector<256x128xf32>
    %62 = tpu.matmul %59, %61, %cst_67 {dimension_numbers = #tpu.dot_dimension_numbers<[1], [0], [0], [1], [0, 0, 1, 1], [], []>} : vector<256x128xbf16>, vector<128x128xbf16>, vector<256x128xf32> -> vector<256x128xf32>
    %63 = arith.addf %56, %62 : vector<256x128xf32>
    %c2_68 = arith.constant 2 : index
    %c1_69 = arith.constant 1 : index
    %c0_70 = arith.constant 0 : index
    %64 = vector.load %arg6[%c2_68, %c1_69, %c0_70] : memref<18x18x128xf32, #tpu.memory_space<vmem>>, vector<16x16x128xf32>
    %65 = vector.shape_cast %64 : vector<16x16x128xf32> to vector<256x128xf32>
    %66 = arith.truncf %65 : vector<256x128xf32> to vector<256x128xbf16>
    %c7 = arith.constant 7 : index
    %c0_71 = arith.constant 0 : index
    %c0_72 = arith.constant 0 : index
    %67 = vector.load %arg2[%c7, %c0_71, %c0_72] : memref<9x128x128xbf16, #tpu.memory_space<vmem>>, vector<1x128x128xbf16>
    %68 = vector.shape_cast %67 : vector<1x128x128xbf16> to vector<128x128xbf16>
    %cst_73 = arith.constant dense<0.000000e+00> : vector<256x128xf32>
    %69 = tpu.matmul %66, %68, %cst_73 {dimension_numbers = #tpu.dot_dimension_numbers<[1], [0], [0], [1], [0, 0, 1, 1], [], []>} : vector<256x128xbf16>, vector<128x128xbf16>, vector<256x128xf32> -> vector<256x128xf32>
    %70 = arith.addf %63, %69 : vector<256x128xf32>
    %c2_74 = arith.constant 2 : index
    %c2_75 = arith.constant 2 : index
    %c0_76 = arith.constant 0 : index
    %71 = vector.load %arg6[%c2_74, %c2_75, %c0_76] : memref<18x18x128xf32, #tpu.memory_space<vmem>>, vector<16x16x128xf32>
    %72 = vector.shape_cast %71 : vector<16x16x128xf32> to vector<256x128xf32>
    %73 = arith.truncf %72 : vector<256x128xf32> to vector<256x128xbf16>
    %c8 = arith.constant 8 : index
    %c0_77 = arith.constant 0 : index
    %c0_78 = arith.constant 0 : index
    %74 = vector.load %arg2[%c8, %c0_77, %c0_78] : memref<9x128x128xbf16, #tpu.memory_space<vmem>>, vector<1x128x128xbf16>
    %75 = vector.shape_cast %74 : vector<1x128x128xbf16> to vector<128x128xbf16>
    %cst_79 = arith.constant dense<0.000000e+00> : vector<256x128xf32>
    %76 = tpu.matmul %73, %75, %cst_79 {dimension_numbers = #tpu.dot_dimension_numbers<[1], [0], [0], [1], [0, 0, 1, 1], [], []>} : vector<256x128xbf16>, vector<128x128xbf16>, vector<256x128xf32> -> vector<256x128xf32>
    %77 = arith.addf %70, %76 : vector<256x128xf32>
    %78 = vector.broadcast %11 : vector<1x128xf32> to vector<256x128xf32>
    %79 = arith.addf %77, %78 : vector<256x128xf32>
    %cst_80 = arith.constant dense<0.000000e+00> : vector<128xf32>
    %80 = vector.multi_reduction <add>, %79, %cst_80 [0] : vector<256x128xf32> to vector<128xf32>
    %81 = vector.shape_cast %80 : vector<128xf32> to vector<1x128xf32>
    %82 = arith.addf %12, %81 : vector<1x128xf32>
    %83 = arith.mulf %79, %79 : vector<256x128xf32>
    %cst_81 = arith.constant dense<0.000000e+00> : vector<128xf32>
    %84 = vector.multi_reduction <add>, %83, %cst_81 [0] : vector<256x128xf32> to vector<128xf32>
    %85 = vector.shape_cast %84 : vector<128xf32> to vector<1x128xf32>
    %86 = arith.addf %13, %85 : vector<1x128xf32>
    %87 = vector.shape_cast %79 : vector<256x128xf32> to vector<16x16x128xf32>
    %c0_82 = arith.constant 0 : index
    %c0_83 = arith.constant 0 : index
    %c0_84 = arith.constant 0 : index
    %c0_85 = arith.constant 0 : index
    %88 = vector.load %arg4[%c0_82, %c0_83, %c0_84, %c0_85] : memref<1x16x16x128xf32, #tpu.memory_space<vmem>>, vector<1x16x16x128xf32>
    %89 = vector.shape_cast %88 : vector<1x16x16x128xf32> to vector<16x16x128xf32>
    %90 = vector.shape_cast %87 : vector<16x16x128xf32> to vector<1x16x16x128xf32>
    tpu.vector_store %arg4[%c0_82, %c0_83, %c0_84, %c0_85], %90 {strides = array<i32>} : memref<1x16x16x128xf32, #tpu.memory_space<vmem>>, vector<1x16x16x128xf32>,
    %91 = tpu.concatenate %82, %86 in 0 : vector<1x128xf32>, vector<1x128xf32> -> vector<2x128xf32>
    %92 = vector.shape_cast %91 : vector<2x128xf32> to vector<1x2x128xf32>
    %c0_86 = arith.constant 0 : index
    %c0_87 = arith.constant 0 : index
    %c0_88 = arith.constant 0 : index
    %93 = vector.load %arg5[%c0_86, %c0_87, %c0_88] : memref<1x2x128xf32, #tpu.memory_space<vmem>>, vector<1x2x128xf32>
    tpu.vector_store %arg5[%c0_86, %c0_87, %c0_88], %92 {strides = array<i32>} : memref<1x2x128xf32, #tpu.memory_space<vmem>>, vector<1x2x128xf32>,
    return
  }
  func.func @transform_0(%arg0: i32) -> (i32, i32, i32, i32) {
    %c0_i32 = arith.constant 0 : i32
    %c0_i32_0 = arith.constant 0 : i32
    %c0_i32_1 = arith.constant 0 : i32
    %c0_i32_2 = arith.constant 0 : i32
    return %arg0, %c0_i32, %c0_i32_0, %c0_i32_1 : i32, i32, i32, i32
  }
  func.func @transform_1(%arg0: i32) -> (i32, i32, i32) {
    %c0_i32 = arith.constant 0 : i32
    %c0_i32_0 = arith.constant 0 : i32
    %c0_i32_1 = arith.constant 0 : i32
    %c0_i32_2 = arith.constant 0 : i32
    return %c0_i32, %c0_i32_0, %c0_i32_1 : i32, i32, i32
  }
  func.func @transform_2(%arg0: i32) -> (i32, i32) {
    %c0_i32 = arith.constant 0 : i32
    %c0_i32_0 = arith.constant 0 : i32
    %c0_i32_1 = arith.constant 0 : i32
    return %c0_i32, %c0_i32_0 : i32, i32
  }
  func.func @transform_3(%arg0: i32) -> (i32, i32, i32, i32) {
    %c0_i32 = arith.constant 0 : i32
    %c0_i32_0 = arith.constant 0 : i32
    %c0_i32_1 = arith.constant 0 : i32
    %c0_i32_2 = arith.constant 0 : i32
    return %arg0, %c0_i32, %c0_i32_0, %c0_i32_1 : i32, i32, i32, i32
  }
  func.func @transform_4(%arg0: i32) -> (i32, i32, i32) {
    %c0_i32 = arith.constant 0 : i32
    %c0_i32_0 = arith.constant 0 : i32
    %c0_i32_1 = arith.constant 0 : i32
    return %arg0, %c0_i32, %c0_i32_0 : i32, i32, i32
  }
}

module attributes {stable_mosaic.version = 11 : i64} {
  func.func @_bn_add_relu_kernel(%arg0: i32, %arg1: memref<512x128xf32, #tpu.memory_space<vmem>>, %arg2: memref<512x128xf32, #tpu.memory_space<vmem>>, %arg3: memref<1x128xf32, #tpu.memory_space<vmem>>, %arg4: memref<1x128xf32, #tpu.memory_space<vmem>>, %arg5: memref<512x128xf32, #tpu.memory_space<vmem>>) attributes {dimension_semantics = [#tpu.dimension_semantics<parallel>], iteration_bounds = array<i64: 1>, scalar_prefetch = 0 : i64, scratch_operands = 0 : i64, tpu.core_type = #tpu.core_type<tc>, window_params = [{transform_indices = @transform_0, window_bounds = array<i64: 512, 128>}, {transform_indices = @transform_1, window_bounds = array<i64: 512, 128>}, {pipeline_mode = #tpu.pipeline_mode<synchronous>, transform_indices = @transform_2, window_bounds = array<i64: 1, 128>}, {pipeline_mode = #tpu.pipeline_mode<synchronous>, transform_indices = @transform_3, window_bounds = array<i64: 1, 128>}, {transform_indices = @transform_4, window_bounds = array<i64: 512, 128>}]} {
    %c0 = arith.constant 0 : index
    %c0_0 = arith.constant 0 : index
    %0 = vector.load %arg1[%c0, %c0_0] : memref<512x128xf32, #tpu.memory_space<vmem>>, vector<512x128xf32>
    %c0_1 = arith.constant 0 : index
    %c0_2 = arith.constant 0 : index
    %1 = vector.load %arg3[%c0_1, %c0_2] : memref<1x128xf32, #tpu.memory_space<vmem>>, vector<1x128xf32>
    %2 = vector.broadcast %1 : vector<1x128xf32> to vector<512x128xf32>
    %3 = arith.mulf %0, %2 : vector<512x128xf32>
    %c0_3 = arith.constant 0 : index
    %c0_4 = arith.constant 0 : index
    %4 = vector.load %arg4[%c0_3, %c0_4] : memref<1x128xf32, #tpu.memory_space<vmem>>, vector<1x128xf32>
    %5 = vector.broadcast %4 : vector<1x128xf32> to vector<512x128xf32>
    %6 = arith.addf %3, %5 : vector<512x128xf32>
    %c0_5 = arith.constant 0 : index
    %c0_6 = arith.constant 0 : index
    %7 = vector.load %arg2[%c0_5, %c0_6] : memref<512x128xf32, #tpu.memory_space<vmem>>, vector<512x128xf32>
    %8 = arith.addf %6, %7 : vector<512x128xf32>
    %cst = arith.constant 0.000000e+00 : f32
    %9 = vector.broadcast %cst : f32 to vector<512x128xf32>
    %10 = arith.maximumf %8, %9 : vector<512x128xf32>
    %c0_7 = arith.constant 0 : index
    %c0_8 = arith.constant 0 : index
    %11 = vector.load %arg5[%c0_7, %c0_8] : memref<512x128xf32, #tpu.memory_space<vmem>>, vector<512x128xf32>
    tpu.vector_store %arg5[%c0_7, %c0_8], %10 {strides = array<i32>} : memref<512x128xf32, #tpu.memory_space<vmem>>, vector<512x128xf32>,
    return
  }
  func.func @transform_0(%arg0: i32) -> (i32, i32) {
    %c0_i32 = arith.constant 0 : i32
    %c0_i32_0 = arith.constant 0 : i32
    return %arg0, %c0_i32 : i32, i32
  }
  func.func @transform_1(%arg0: i32) -> (i32, i32) {
    %c0_i32 = arith.constant 0 : i32
    %c0_i32_0 = arith.constant 0 : i32
    return %arg0, %c0_i32 : i32, i32
  }
  func.func @transform_2(%arg0: i32) -> (i32, i32) {
    %c0_i32 = arith.constant 0 : i32
    %c0_i32_0 = arith.constant 0 : i32
    %c0_i32_1 = arith.constant 0 : i32
    return %c0_i32, %c0_i32_0 : i32, i32
  }
  func.func @transform_3(%arg0: i32) -> (i32, i32) {
    %c0_i32 = arith.constant 0 : i32
    %c0_i32_0 = arith.constant 0 : i32
    %c0_i32_1 = arith.constant 0 : i32
    return %c0_i32, %c0_i32_0 : i32, i32
  }
  func.func @transform_4(%arg0: i32) -> (i32, i32) {
    %c0_i32 = arith.constant 0 : i32
    %c0_i32_0 = arith.constant 0 : i32
    return %arg0, %c0_i32 : i32, i32
  }
}

module attributes {stable_mosaic.version = 11 : i64} {
  func.func @_conv_bn_stats_kernel(%arg0: i32, %arg1: memref<1x16x16x128xf32, #tpu.memory_space<vmem>>, %arg2: memref<1x128xf32, #tpu.memory_space<vmem>>, %arg3: memref<1x128xf32, #tpu.memory_space<vmem>>, %arg4: memref<9x128x128xbf16, #tpu.memory_space<vmem>>, %arg5: memref<1x128xf32, #tpu.memory_space<vmem>>, %arg6: memref<1x16x16x128xf32, #tpu.memory_space<vmem>>, %arg7: memref<1x2x128xf32, #tpu.memory_space<vmem>>, %arg8: memref<18x18x128xf32, #tpu.memory_space<vmem>>) attributes {dimension_semantics = [#tpu.dimension_semantics<parallel>], iteration_bounds = array<i64: 2>, scalar_prefetch = 0 : i64, scratch_operands = 1 : i64, tpu.core_type = #tpu.core_type<tc>, window_params = [{transform_indices = @transform_0, window_bounds = array<i64: 1, 16, 16, 128>}, {pipeline_mode = #tpu.pipeline_mode<synchronous>, transform_indices = @transform_1, window_bounds = array<i64: 1, 128>}, {pipeline_mode = #tpu.pipeline_mode<synchronous>, transform_indices = @transform_2, window_bounds = array<i64: 1, 128>}, {pipeline_mode = #tpu.pipeline_mode<synchronous>, transform_indices = @transform_3, window_bounds = array<i64: 9, 128, 128>}, {pipeline_mode = #tpu.pipeline_mode<synchronous>, transform_indices = @transform_4, window_bounds = array<i64: 1, 128>}, {transform_indices = @transform_5, window_bounds = array<i64: 1, 16, 16, 128>}, {transform_indices = @transform_6, window_bounds = array<i64: 1, 2, 128>}]} {
    %c0 = arith.constant 0 : index
    %c0_0 = arith.constant 0 : index
    %c0_1 = arith.constant 0 : index
    %c0_2 = arith.constant 0 : index
    %0 = vector.load %arg1[%c0, %c0_0, %c0_1, %c0_2] : memref<1x16x16x128xf32, #tpu.memory_space<vmem>>, vector<1x16x16x128xf32>
    %1 = vector.shape_cast %0 : vector<1x16x16x128xf32> to vector<16x16x128xf32>
    %c0_3 = arith.constant 0 : index
    %c0_4 = arith.constant 0 : index
    %2 = vector.load %arg2[%c0_3, %c0_4] : memref<1x128xf32, #tpu.memory_space<vmem>>, vector<1x128xf32>
    %3 = vector.shape_cast %2 : vector<1x128xf32> to vector<1x1x128xf32>
    %c0_5 = arith.constant 0 : index
    %c0_6 = arith.constant 0 : index
    %4 = vector.load %arg3[%c0_5, %c0_6] : memref<1x128xf32, #tpu.memory_space<vmem>>, vector<1x128xf32>
    %5 = vector.shape_cast %4 : vector<1x128xf32> to vector<1x1x128xf32>
    %6 = vector.broadcast %3 : vector<1x1x128xf32> to vector<16x16x128xf32>
    %7 = arith.mulf %1, %6 : vector<16x16x128xf32>
    %8 = vector.broadcast %5 : vector<1x1x128xf32> to vector<16x16x128xf32>
    %9 = arith.addf %7, %8 : vector<16x16x128xf32>
    %cst = arith.constant 0.000000e+00 : f32
    %10 = vector.broadcast %cst : f32 to vector<16x16x128xf32>
    %11 = arith.maximumf %9, %10 : vector<16x16x128xf32>
    %cst_7 = arith.constant 0.000000e+00 : f32
    %12 = vector.broadcast %cst_7 : f32 to vector<1x18x128xf32>
    %c0_8 = arith.constant 0 : index
    %c0_9 = arith.constant 0 : index
    %c0_10 = arith.constant 0 : index
    %13 = vector.load %arg8[%c0_8, %c0_9, %c0_10] : memref<18x18x128xf32, #tpu.memory_space<vmem>>, vector<1x18x128xf32>
    tpu.vector_store %arg8[%c0_8, %c0_9, %c0_10], %12 {strides = array<i32>} : memref<18x18x128xf32, #tpu.memory_space<vmem>>, vector<1x18x128xf32>,
    %cst_11 = arith.constant 0.000000e+00 : f32
    %14 = vector.broadcast %cst_11 : f32 to vector<1x18x128xf32>
    %c17 = arith.constant 17 : index
    %c0_12 = arith.constant 0 : index
    %c0_13 = arith.constant 0 : index
    %15 = vector.load %arg8[%c17, %c0_12, %c0_13] : memref<18x18x128xf32, #tpu.memory_space<vmem>>, vector<1x18x128xf32>
    tpu.vector_store %arg8[%c17, %c0_12, %c0_13], %14 {strides = array<i32>} : memref<18x18x128xf32, #tpu.memory_space<vmem>>, vector<1x18x128xf32>,
    %cst_14 = arith.constant 0.000000e+00 : f32
    %16 = vector.broadcast %cst_14 : f32 to vector<18x1x128xf32>
    %c0_15 = arith.constant 0 : index
    %c0_16 = arith.constant 0 : index
    %c0_17 = arith.constant 0 : index
    %17 = vector.load %arg8[%c0_15, %c0_16, %c0_17] : memref<18x18x128xf32, #tpu.memory_space<vmem>>, vector<18x1x128xf32>
    tpu.vector_store %arg8[%c0_15, %c0_16, %c0_17], %16 {strides = array<i32>} : memref<18x18x128xf32, #tpu.memory_space<vmem>>, vector<18x1x128xf32>,
    %cst_18 = arith.constant 0.000000e+00 : f32
    %18 = vector.broadcast %cst_18 : f32 to vector<18x1x128xf32>
    %c0_19 = arith.constant 0 : index
    %c17_20 = arith.constant 17 : index
    %c0_21 = arith.constant 0 : index
    %19 = vector.load %arg8[%c0_19, %c17_20, %c0_21] : memref<18x18x128xf32, #tpu.memory_space<vmem>>, vector<18x1x128xf32>
    tpu.vector_store %arg8[%c0_19, %c17_20, %c0_21], %18 {strides = array<i32>} : memref<18x18x128xf32, #tpu.memory_space<vmem>>, vector<18x1x128xf32>,
    %c1 = arith.constant 1 : index
    %c1_22 = arith.constant 1 : index
    %c0_23 = arith.constant 0 : index
    %20 = vector.load %arg8[%c1, %c1_22, %c0_23] : memref<18x18x128xf32, #tpu.memory_space<vmem>>, vector<16x16x128xf32>
    tpu.vector_store %arg8[%c1, %c1_22, %c0_23], %11 {strides = array<i32>} : memref<18x18x128xf32, #tpu.memory_space<vmem>>, vector<16x16x128xf32>,
    %c0_24 = arith.constant 0 : index
    %c0_25 = arith.constant 0 : index
    %21 = vector.load %arg5[%c0_24, %c0_25] : memref<1x128xf32, #tpu.memory_space<vmem>>, vector<1x128xf32>
    %cst_26 = arith.constant 0.000000e+00 : f32
    %22 = vector.broadcast %cst_26 : f32 to vector<1x128xf32>
    %cst_27 = arith.constant 0.000000e+00 : f32
    %23 = vector.broadcast %cst_27 : f32 to vector<1x128xf32>
    %cst_28 = arith.constant 0.000000e+00 : f32
    %24 = vector.broadcast %cst_28 : f32 to vector<256x128xf32>
    %c0_29 = arith.constant 0 : index
    %c0_30 = arith.constant 0 : index
    %c0_31 = arith.constant 0 : index
    %25 = vector.load %arg8[%c0_29, %c0_30, %c0_31] : memref<18x18x128xf32, #tpu.memory_space<vmem>>, vector<16x16x128xf32>
    %26 = vector.shape_cast %25 : vector<16x16x128xf32> to vector<256x128xf32>
    %27 = arith.truncf %26 : vector<256x128xf32> to vector<256x128xbf16>
    %c0_32 = arith.constant 0 : index
    %c0_33 = arith.constant 0 : index
    %c0_34 = arith.constant 0 : index
    %28 = vector.load %arg4[%c0_32, %c0_33, %c0_34] : memref<9x128x128xbf16, #tpu.memory_space<vmem>>, vector<1x128x128xbf16>
    %29 = vector.shape_cast %28 : vector<1x128x128xbf16> to vector<128x128xbf16>
    %cst_35 = arith.constant dense<0.000000e+00> : vector<256x128xf32>
    %30 = tpu.matmul %27, %29, %cst_35 {dimension_numbers = #tpu.dot_dimension_numbers<[1], [0], [0], [1], [0, 0, 1, 1], [], []>} : vector<256x128xbf16>, vector<128x128xbf16>, vector<256x128xf32> -> vector<256x128xf32>
    %31 = arith.addf %24, %30 : vector<256x128xf32>
    %c0_36 = arith.constant 0 : index
    %c1_37 = arith.constant 1 : index
    %c0_38 = arith.constant 0 : index
    %32 = vector.load %arg8[%c0_36, %c1_37, %c0_38] : memref<18x18x128xf32, #tpu.memory_space<vmem>>, vector<16x16x128xf32>
    %33 = vector.shape_cast %32 : vector<16x16x128xf32> to vector<256x128xf32>
    %34 = arith.truncf %33 : vector<256x128xf32> to vector<256x128xbf16>
    %c1_39 = arith.constant 1 : index
    %c0_40 = arith.constant 0 : index
    %c0_41 = arith.constant 0 : index
    %35 = vector.load %arg4[%c1_39, %c0_40, %c0_41] : memref<9x128x128xbf16, #tpu.memory_space<vmem>>, vector<1x128x128xbf16>
    %36 = vector.shape_cast %35 : vector<1x128x128xbf16> to vector<128x128xbf16>
    %cst_42 = arith.constant dense<0.000000e+00> : vector<256x128xf32>
    %37 = tpu.matmul %34, %36, %cst_42 {dimension_numbers = #tpu.dot_dimension_numbers<[1], [0], [0], [1], [0, 0, 1, 1], [], []>} : vector<256x128xbf16>, vector<128x128xbf16>, vector<256x128xf32> -> vector<256x128xf32>
    %38 = arith.addf %31, %37 : vector<256x128xf32>
    %c0_43 = arith.constant 0 : index
    %c2 = arith.constant 2 : index
    %c0_44 = arith.constant 0 : index
    %39 = vector.load %arg8[%c0_43, %c2, %c0_44] : memref<18x18x128xf32, #tpu.memory_space<vmem>>, vector<16x16x128xf32>
    %40 = vector.shape_cast %39 : vector<16x16x128xf32> to vector<256x128xf32>
    %41 = arith.truncf %40 : vector<256x128xf32> to vector<256x128xbf16>
    %c2_45 = arith.constant 2 : index
    %c0_46 = arith.constant 0 : index
    %c0_47 = arith.constant 0 : index
    %42 = vector.load %arg4[%c2_45, %c0_46, %c0_47] : memref<9x128x128xbf16, #tpu.memory_space<vmem>>, vector<1x128x128xbf16>
    %43 = vector.shape_cast %42 : vector<1x128x128xbf16> to vector<128x128xbf16>
    %cst_48 = arith.constant dense<0.000000e+00> : vector<256x128xf32>
    %44 = tpu.matmul %41, %43, %cst_48 {dimension_numbers = #tpu.dot_dimension_numbers<[1], [0], [0], [1], [0, 0, 1, 1], [], []>} : vector<256x128xbf16>, vector<128x128xbf16>, vector<256x128xf32> -> vector<256x128xf32>
    %45 = arith.addf %38, %44 : vector<256x128xf32>
    %c1_49 = arith.constant 1 : index
    %c0_50 = arith.constant 0 : index
    %c0_51 = arith.constant 0 : index
    %46 = vector.load %arg8[%c1_49, %c0_50, %c0_51] : memref<18x18x128xf32, #tpu.memory_space<vmem>>, vector<16x16x128xf32>
    %47 = vector.shape_cast %46 : vector<16x16x128xf32> to vector<256x128xf32>
    %48 = arith.truncf %47 : vector<256x128xf32> to vector<256x128xbf16>
    %c3 = arith.constant 3 : index
    %c0_52 = arith.constant 0 : index
    %c0_53 = arith.constant 0 : index
    %49 = vector.load %arg4[%c3, %c0_52, %c0_53] : memref<9x128x128xbf16, #tpu.memory_space<vmem>>, vector<1x128x128xbf16>
    %50 = vector.shape_cast %49 : vector<1x128x128xbf16> to vector<128x128xbf16>
    %cst_54 = arith.constant dense<0.000000e+00> : vector<256x128xf32>
    %51 = tpu.matmul %48, %50, %cst_54 {dimension_numbers = #tpu.dot_dimension_numbers<[1], [0], [0], [1], [0, 0, 1, 1], [], []>} : vector<256x128xbf16>, vector<128x128xbf16>, vector<256x128xf32> -> vector<256x128xf32>
    %52 = arith.addf %45, %51 : vector<256x128xf32>
    %c1_55 = arith.constant 1 : index
    %c1_56 = arith.constant 1 : index
    %c0_57 = arith.constant 0 : index
    %53 = vector.load %arg8[%c1_55, %c1_56, %c0_57] : memref<18x18x128xf32, #tpu.memory_space<vmem>>, vector<16x16x128xf32>
    %54 = vector.shape_cast %53 : vector<16x16x128xf32> to vector<256x128xf32>
    %55 = arith.truncf %54 : vector<256x128xf32> to vector<256x128xbf16>
    %c4 = arith.constant 4 : index
    %c0_58 = arith.constant 0 : index
    %c0_59 = arith.constant 0 : index
    %56 = vector.load %arg4[%c4, %c0_58, %c0_59] : memref<9x128x128xbf16, #tpu.memory_space<vmem>>, vector<1x128x128xbf16>
    %57 = vector.shape_cast %56 : vector<1x128x128xbf16> to vector<128x128xbf16>
    %cst_60 = arith.constant dense<0.000000e+00> : vector<256x128xf32>
    %58 = tpu.matmul %55, %57, %cst_60 {dimension_numbers = #tpu.dot_dimension_numbers<[1], [0], [0], [1], [0, 0, 1, 1], [], []>} : vector<256x128xbf16>, vector<128x128xbf16>, vector<256x128xf32> -> vector<256x128xf32>
    %59 = arith.addf %52, %58 : vector<256x128xf32>
    %c1_61 = arith.constant 1 : index
    %c2_62 = arith.constant 2 : index
    %c0_63 = arith.constant 0 : index
    %60 = vector.load %arg8[%c1_61, %c2_62, %c0_63] : memref<18x18x128xf32, #tpu.memory_space<vmem>>, vector<16x16x128xf32>
    %61 = vector.shape_cast %60 : vector<16x16x128xf32> to vector<256x128xf32>
    %62 = arith.truncf %61 : vector<256x128xf32> to vector<256x128xbf16>
    %c5 = arith.constant 5 : index
    %c0_64 = arith.constant 0 : index
    %c0_65 = arith.constant 0 : index
    %63 = vector.load %arg4[%c5, %c0_64, %c0_65] : memref<9x128x128xbf16, #tpu.memory_space<vmem>>, vector<1x128x128xbf16>
    %64 = vector.shape_cast %63 : vector<1x128x128xbf16> to vector<128x128xbf16>
    %cst_66 = arith.constant dense<0.000000e+00> : vector<256x128xf32>
    %65 = tpu.matmul %62, %64, %cst_66 {dimension_numbers = #tpu.dot_dimension_numbers<[1], [0], [0], [1], [0, 0, 1, 1], [], []>} : vector<256x128xbf16>, vector<128x128xbf16>, vector<256x128xf32> -> vector<256x128xf32>
    %66 = arith.addf %59, %65 : vector<256x128xf32>
    %c2_67 = arith.constant 2 : index
    %c0_68 = arith.constant 0 : index
    %c0_69 = arith.constant 0 : index
    %67 = vector.load %arg8[%c2_67, %c0_68, %c0_69] : memref<18x18x128xf32, #tpu.memory_space<vmem>>, vector<16x16x128xf32>
    %68 = vector.shape_cast %67 : vector<16x16x128xf32> to vector<256x128xf32>
    %69 = arith.truncf %68 : vector<256x128xf32> to vector<256x128xbf16>
    %c6 = arith.constant 6 : index
    %c0_70 = arith.constant 0 : index
    %c0_71 = arith.constant 0 : index
    %70 = vector.load %arg4[%c6, %c0_70, %c0_71] : memref<9x128x128xbf16, #tpu.memory_space<vmem>>, vector<1x128x128xbf16>
    %71 = vector.shape_cast %70 : vector<1x128x128xbf16> to vector<128x128xbf16>
    %cst_72 = arith.constant dense<0.000000e+00> : vector<256x128xf32>
    %72 = tpu.matmul %69, %71, %cst_72 {dimension_numbers = #tpu.dot_dimension_numbers<[1], [0], [0], [1], [0, 0, 1, 1], [], []>} : vector<256x128xbf16>, vector<128x128xbf16>, vector<256x128xf32> -> vector<256x128xf32>
    %73 = arith.addf %66, %72 : vector<256x128xf32>
    %c2_73 = arith.constant 2 : index
    %c1_74 = arith.constant 1 : index
    %c0_75 = arith.constant 0 : index
    %74 = vector.load %arg8[%c2_73, %c1_74, %c0_75] : memref<18x18x128xf32, #tpu.memory_space<vmem>>, vector<16x16x128xf32>
    %75 = vector.shape_cast %74 : vector<16x16x128xf32> to vector<256x128xf32>
    %76 = arith.truncf %75 : vector<256x128xf32> to vector<256x128xbf16>
    %c7 = arith.constant 7 : index
    %c0_76 = arith.constant 0 : index
    %c0_77 = arith.constant 0 : index
    %77 = vector.load %arg4[%c7, %c0_76, %c0_77] : memref<9x128x128xbf16, #tpu.memory_space<vmem>>, vector<1x128x128xbf16>
    %78 = vector.shape_cast %77 : vector<1x128x128xbf16> to vector<128x128xbf16>
    %cst_78 = arith.constant dense<0.000000e+00> : vector<256x128xf32>
    %79 = tpu.matmul %76, %78, %cst_78 {dimension_numbers = #tpu.dot_dimension_numbers<[1], [0], [0], [1], [0, 0, 1, 1], [], []>} : vector<256x128xbf16>, vector<128x128xbf16>, vector<256x128xf32> -> vector<256x128xf32>
    %80 = arith.addf %73, %79 : vector<256x128xf32>
    %c2_79 = arith.constant 2 : index
    %c2_80 = arith.constant 2 : index
    %c0_81 = arith.constant 0 : index
    %81 = vector.load %arg8[%c2_79, %c2_80, %c0_81] : memref<18x18x128xf32, #tpu.memory_space<vmem>>, vector<16x16x128xf32>
    %82 = vector.shape_cast %81 : vector<16x16x128xf32> to vector<256x128xf32>
    %83 = arith.truncf %82 : vector<256x128xf32> to vector<256x128xbf16>
    %c8 = arith.constant 8 : index
    %c0_82 = arith.constant 0 : index
    %c0_83 = arith.constant 0 : index
    %84 = vector.load %arg4[%c8, %c0_82, %c0_83] : memref<9x128x128xbf16, #tpu.memory_space<vmem>>, vector<1x128x128xbf16>
    %85 = vector.shape_cast %84 : vector<1x128x128xbf16> to vector<128x128xbf16>
    %cst_84 = arith.constant dense<0.000000e+00> : vector<256x128xf32>
    %86 = tpu.matmul %83, %85, %cst_84 {dimension_numbers = #tpu.dot_dimension_numbers<[1], [0], [0], [1], [0, 0, 1, 1], [], []>} : vector<256x128xbf16>, vector<128x128xbf16>, vector<256x128xf32> -> vector<256x128xf32>
    %87 = arith.addf %80, %86 : vector<256x128xf32>
    %88 = vector.broadcast %21 : vector<1x128xf32> to vector<256x128xf32>
    %89 = arith.addf %87, %88 : vector<256x128xf32>
    %cst_85 = arith.constant dense<0.000000e+00> : vector<128xf32>
    %90 = vector.multi_reduction <add>, %89, %cst_85 [0] : vector<256x128xf32> to vector<128xf32>
    %91 = vector.shape_cast %90 : vector<128xf32> to vector<1x128xf32>
    %92 = arith.addf %22, %91 : vector<1x128xf32>
    %93 = arith.mulf %89, %89 : vector<256x128xf32>
    %cst_86 = arith.constant dense<0.000000e+00> : vector<128xf32>
    %94 = vector.multi_reduction <add>, %93, %cst_86 [0] : vector<256x128xf32> to vector<128xf32>
    %95 = vector.shape_cast %94 : vector<128xf32> to vector<1x128xf32>
    %96 = arith.addf %23, %95 : vector<1x128xf32>
    %97 = vector.shape_cast %89 : vector<256x128xf32> to vector<16x16x128xf32>
    %c0_87 = arith.constant 0 : index
    %c0_88 = arith.constant 0 : index
    %c0_89 = arith.constant 0 : index
    %c0_90 = arith.constant 0 : index
    %98 = vector.load %arg6[%c0_87, %c0_88, %c0_89, %c0_90] : memref<1x16x16x128xf32, #tpu.memory_space<vmem>>, vector<1x16x16x128xf32>
    %99 = vector.shape_cast %98 : vector<1x16x16x128xf32> to vector<16x16x128xf32>
    %100 = vector.shape_cast %97 : vector<16x16x128xf32> to vector<1x16x16x128xf32>
    tpu.vector_store %arg6[%c0_87, %c0_88, %c0_89, %c0_90], %100 {strides = array<i32>} : memref<1x16x16x128xf32, #tpu.memory_space<vmem>>, vector<1x16x16x128xf32>,
    %101 = tpu.concatenate %92, %96 in 0 : vector<1x128xf32>, vector<1x128xf32> -> vector<2x128xf32>
    %102 = vector.shape_cast %101 : vector<2x128xf32> to vector<1x2x128xf32>
    %c0_91 = arith.constant 0 : index
    %c0_92 = arith.constant 0 : index
    %c0_93 = arith.constant 0 : index
    %103 = vector.load %arg7[%c0_91, %c0_92, %c0_93] : memref<1x2x128xf32, #tpu.memory_space<vmem>>, vector<1x2x128xf32>
    tpu.vector_store %arg7[%c0_91, %c0_92, %c0_93], %102 {strides = array<i32>} : memref<1x2x128xf32, #tpu.memory_space<vmem>>, vector<1x2x128xf32>,
    return
  }
  func.func @transform_0(%arg0: i32) -> (i32, i32, i32, i32) {
    %c0_i32 = arith.constant 0 : i32
    %c0_i32_0 = arith.constant 0 : i32
    %c0_i32_1 = arith.constant 0 : i32
    %c0_i32_2 = arith.constant 0 : i32
    return %arg0, %c0_i32, %c0_i32_0, %c0_i32_1 : i32, i32, i32, i32
  }
  func.func @transform_1(%arg0: i32) -> (i32, i32) {
    %c0_i32 = arith.constant 0 : i32
    %c0_i32_0 = arith.constant 0 : i32
    %c0_i32_1 = arith.constant 0 : i32
    return %c0_i32, %c0_i32_0 : i32, i32
  }
  func.func @transform_2(%arg0: i32) -> (i32, i32) {
    %c0_i32 = arith.constant 0 : i32
    %c0_i32_0 = arith.constant 0 : i32
    %c0_i32_1 = arith.constant 0 : i32
    return %c0_i32, %c0_i32_0 : i32, i32
  }
  func.func @transform_3(%arg0: i32) -> (i32, i32, i32) {
    %c0_i32 = arith.constant 0 : i32
    %c0_i32_0 = arith.constant 0 : i32
    %c0_i32_1 = arith.constant 0 : i32
    %c0_i32_2 = arith.constant 0 : i32
    return %c0_i32, %c0_i32_0, %c0_i32_1 : i32, i32, i32
  }
  func.func @transform_4(%arg0: i32) -> (i32, i32) {
    %c0_i32 = arith.constant 0 : i32
    %c0_i32_0 = arith.constant 0 : i32
    %c0_i32_1 = arith.constant 0 : i32
    return %c0_i32, %c0_i32_0 : i32, i32
  }
  func.func @transform_5(%arg0: i32) -> (i32, i32, i32, i32) {
    %c0_i32 = arith.constant 0 : i32
    %c0_i32_0 = arith.constant 0 : i32
    %c0_i32_1 = arith.constant 0 : i32
    %c0_i32_2 = arith.constant 0 : i32
    return %arg0, %c0_i32, %c0_i32_0, %c0_i32_1 : i32, i32, i32, i32
  }
  func.func @transform_6(%arg0: i32) -> (i32, i32, i32) {
    %c0_i32 = arith.constant 0 : i32
    %c0_i32_0 = arith.constant 0 : i32
    %c0_i32_1 = arith.constant 0 : i32
    return %arg0, %c0_i32, %c0_i32_0 : i32, i32, i32
  }
}

</mosaic_0001>

<bundles_post_ra>
// kernel: residual_forward.5
= control target key start
LH: loop header
LB: loop body
LE: loop exit
PB: predicated region body
PF: predicated region fallthrough
CT: control target
= control target key end

     0   :  { %s1224_s0 = inlined_call_operand.vmem [shape: f32[512,128], index: 0, kind: input, shape index: {}, may-alias: {0,4}]   ;;  %s1225_s1 = inlined_call_operand.vmem [shape: f32[512,128], index: 1, kind: input, shape index: {}]   ;;  %s1226_s2 = inlined_call_operand.vmem [shape: f32[1,128], index: 2, kind: input, shape index: {}]   ;;  %s1227_s3 = inlined_call_operand.vmem [shape: f32[1,128], index: 3, kind: input, shape index: {}]   ;;  %s1228_s4 = inlined_call_operand.vmem [shape: f32[512,128], index: 4, kind: output, shape index: {}, may-alias: {0,4}]  }
   0x1   :  { %v17_v0 = vld [vmem:[%s1224_s0] sm:$0xff]  ;;  %v18_v4 = vld [vmem:[%s1224_s0 + $0x8] sm:$0xff]  ;;  %v19_v7 = vld [vmem:[%s1224_s0 + $0x10] sm:$0xff] }
   0x2   :  { %v516_v1 = vld [vmem:[%s1226_s2] ss:$0 sm:$0xff]  ;;  %v20_v8 = vld [vmem:[%s1224_s0 + $0x18] sm:$0xff]  ;;  %v224_v10 = vld [vmem:[%s1225_s1 + $0x8] sm:$0xff] }
   0x3   :  { %v521_v2 = vld [vmem:[%s1227_s3] ss:$0 sm:$0xff]  ;;  %v88_v3 = vmul.f32 %v516_v1, %v17_v0  ;;  %v89_v6 = vmul.f32 %v516_v1, %v18_v4  ;;  %v90_v11 = vmul.f32 %v516_v1, %v19_v7  ;;  %v225_v12 = vld [vmem:[%s1225_s1 + $0x10] sm:$0xff]  ;;  %v91_v13 = vmul.f32 %v516_v1, %v20_v8  ;;  %v226_v16 = vld [vmem:[%s1225_s1 + $0x18] sm:$0xff] }
   0x4   :  { %v223_v5 = vld [vmem:[%s1225_s1] sm:$0xff]  ;;  %v22_v18 = vld [vmem:[%s1224_s0 + $0x28] sm:$0xff]  ;;  %v23_v19 = vld [vmem:[%s1224_s0 + $0x30] sm:$0xff] }
   0x5   :  { %v159_v9 = vadd.f32 %v521_v2, %v88_v3  ;;  %v21_v14 = vld [vmem:[%s1224_s0 + $0x20] sm:$0xff]  ;;  %v160_v15 = vadd.f32 %v521_v2, %v89_v6  ;;  %v161_v21 = vadd.f32 %v521_v2, %v90_v11  ;;  %v162_v22 = vadd.f32 %v521_v2, %v91_v13  ;;  %v24_v25 = vld [vmem:[%s1224_s0 + $0x38] sm:$0xff]  ;;  %v228_v28 = vld [vmem:[%s1225_s1 + $0x28] sm:$0xff] }
   0x6   :  { %v92_v17 = vmul.f32 %v516_v1, %v21_v14  ;;  %v227_v23 = vld [vmem:[%s1225_s1 + $0x20] sm:$0xff]  ;;  %v93_v24 = vmul.f32 %v516_v1, %v22_v18  ;;  %v94_v29 = vmul.f32 %v516_v1, %v23_v19  ;;  %v95_v30 = vmul.f32 %v516_v1, %v24_v25  ;;  %v229_v36 = vld [vmem:[%s1225_s1 + $0x30] sm:$0xff]  ;;  %v230_v37 = vld [vmem:[%s1225_s1 + $0x38] sm:$0xff] }
   0x7   :  { %v287_v20 = vadd.f32 %v223_v5, %v159_v9  ;;  %v288_v26 = vadd.f32 %v224_v10, %v160_v15  ;;  %v25_v31 = vld [vmem:[%s1224_s0 + $0x40] sm:$0xff]  ;;  %v289_v33 = vadd.f32 %v225_v12, %v161_v21  ;;  %v290_v34 = vadd.f32 %v226_v16, %v162_v22  ;;  %v26_v38 = vld [vmem:[%s1224_s0 + $0x48] sm:$0xff]  ;;  %v27_v43 = vld [vmem:[%s1224_s0 + $0x50] sm:$0xff] }
   0x8   :  { %v163_v27 = vadd.f32 %v521_v2, %v92_v17  ;;  %v164_v35 = vadd.f32 %v521_v2, %v93_v24  ;;  %v165_v41 = vadd.f32 %v521_v2, %v94_v29  ;;  %v166_v42 = vadd.f32 %v521_v2, %v95_v30  ;;  %v28_v44 = vld [vmem:[%s1224_s0 + $0x58] sm:$0xff]  ;;  %v231_v53 = vld [vmem:[%s1225_s1 + $0x40] sm:$0xff]  ;;  %v232_v58 = vld [vmem:[%s1225_s1 + $0x48] sm:$0xff] }
   0x9   :  { %v351_v32 = vmax.f32 %v287_v20, 0.0  ;;  %v352_v39 = vmax.f32 %v288_v26, 0.0  ;;  %v353_v45 = vmax.f32 %v289_v33, 0.0  ;;  %v354_v46 = vmax.f32 %v290_v34, 0.0  ;;  %v233_v4 = vld [vmem:[%s1225_s1 + $0x50] sm:$0xff]  ;;  %v234_v5 = vld [vmem:[%s1225_s1 + $0x58] sm:$0xff] }
   0xa   :  { %v291_v40 = vadd.f32 %v227_v23, %v163_v27  ;;  %v292_v47 = vadd.f32 %v228_v28, %v164_v35  ;;  %v96_v48 = vmul.f32 %v516_v1, %v25_v31  ;;  %v293_v51 = vadd.f32 %v229_v36, %v165_v41  ;;  %v235_v10 = vld [vmem:[%s1225_s1 + $0x60] sm:$0xff]  ;;  %v236_v14 = vld [vmem:[%s1225_s1 + $0x68] sm:$0xff]  ;;  %v237_v22 = vld [vmem:[%s1225_s1 + $0x70] sm:$0xff] }
   0xb   :  { %415 = vst [vmem:[%s1228_s4] sm:$0xff] %v351_v32  ;;  %v294_v52 = vadd.f32 %v230_v37, %v166_v42  ;;  %v97_v54 = vmul.f32 %v516_v1, %v26_v38  ;;  %v98_v59 = vmul.f32 %v516_v1, %v27_v43  ;;  %v99_v60 = vmul.f32 %v516_v1, %v28_v44  ;;  %v238_v23 = vld [vmem:[%s1225_s1 + $0x78] sm:$0xff]  ;;  %v240_v44 = vld [vmem:[%s1225_s1 + $0x88] sm:$0xff] }
   0xc   :  { %v355_v50 = vmax.f32 %v291_v40, 0.0  ;;  %v356_v56 = vmax.f32 %v292_v47, 0.0  ;;  %v167_v57 = vadd.f32 %v521_v2, %v96_v48  ;;  %v357_v63 = vmax.f32 %v293_v51, 0.0 }
   0xd   :  { %v358_v0 = vmax.f32 %v294_v52, 0.0  ;;  %v168_v3 = vadd.f32 %v521_v2, %v97_v54  ;;  %v169_v8 = vadd.f32 %v521_v2, %v98_v59  ;;  %v170_v9 = vadd.f32 %v521_v2, %v99_v60  ;;  %v241_v52 = vld [vmem:[%s1225_s1 + $0x90] sm:$0xff] }
   0xe   :  { %v295_v7 = vadd.f32 %v231_v53, %v167_v57  ;;  %v242_v53 = vld [vmem:[%s1225_s1 + $0x98] sm:$0xff] }
   0xf   :  { %v296_v12 = vadd.f32 %v232_v58, %v168_v3  ;;  %v297_v19 = vadd.f32 %v233_v4, %v169_v8  ;;  %v298_v20 = vadd.f32 %v234_v5, %v170_v9  ;;  %v243_v58 = vld [vmem:[%s1225_s1 + $0xa0] sm:$0xff]  ;;  %v245_v8 = vld [vmem:[%s1225_s1 + $0xb0] sm:$0xff]  ;;  %v246_v9 = vld [vmem:[%s1225_s1 + $0xb8] sm:$0xff] }
  0x10   :  { %v359_v18 = vmax.f32 %v295_v7, 0.0 }
  0x11   :  { %v360_v25 = vmax.f32 %v296_v12, 0.0  ;;  %v361_v31 = vmax.f32 %v297_v19, 0.0  ;;  %v362_v32 = vmax.f32 %v298_v20, 0.0 }
  0x12   :  { %v29_v49 = vld [vmem:[%s1224_s0 + $0x60] sm:$0xff] }
  0x13   :  { %416 = vst [vmem:[%s1228_s4 + $0x8] sm:$0xff] %v352_v39  ;;  %v100_v6 = vmul.f32 %v516_v1, %v29_v49  ;;  %v239_v39 = vld [vmem:[%s1225_s1 + $0x80] sm:$0xff] }
  0x15   :  { %v171_v13 = vadd.f32 %v521_v2, %v100_v6 }
  0x17   :  { %v299_v26 = vadd.f32 %v235_v10, %v171_v13 }
  0x19   :  { %v363_v36 = vmax.f32 %v299_v26, 0.0 }
  0x1a   :  { %v30_v55 = vld [vmem:[%s1224_s0 + $0x68] sm:$0xff] }
  0x1b   :  { %417 = vst [vmem:[%s1228_s4 + $0x10] sm:$0xff] %v353_v45  ;;  %418 = vst [vmem:[%s1228_s4 + $0x18] sm:$0xff] %v354_v46  ;;  %v101_v11 = vmul.f32 %v516_v1, %v30_v55 }
  0x1d   :  { %v172_v21 = vadd.f32 %v521_v2, %v101_v11 }
  0x1f   :  { %v300_v33 = vadd.f32 %v236_v14, %v172_v21 }
  0x21   :  { %v364_v42 = vmax.f32 %v300_v33, 0.0 }
  0x22   :  { %v31_v61 = vld [vmem:[%s1224_s0 + $0x70] sm:$0xff]  ;;  %v32_v62 = vld [vmem:[%s1224_s0 + $0x78] sm:$0xff] }
  0x23   :  { %419 = vst [vmem:[%s1228_s4 + $0x20] sm:$0xff] %v355_v50  ;;  %420 = vst [vmem:[%s1228_s4 + $0x28] sm:$0xff] %v356_v56  ;;  %v102_v15 = vmul.f32 %v516_v1, %v31_v61  ;;  %v103_v16 = vmul.f32 %v516_v1, %v32_v62  ;;  %v244_v62 = vld [vmem:[%s1225_s1 + $0xa8] sm:$0xff] }
  0x24   :  { %421 = vst [vmem:[%s1228_s4 + $0x30] sm:$0xff] %v357_v63  ;;  %422 = vst [vmem:[%s1228_s4 + $0x38] sm:$0xff] %v358_v0 }
  0x25   :  { %v173_v27 = vadd.f32 %v521_v2, %v102_v15  ;;  %v174_v28 = vadd.f32 %v521_v2, %v103_v16 }
  0x27   :  { %v301_v37 = vadd.f32 %v237_v22, %v173_v27  ;;  %v302_v38 = vadd.f32 %v238_v23, %v174_v28 }
  0x29   :  { %v365_v49 = vmax.f32 %v301_v37, 0.0  ;;  %v366_v50 = vmax.f32 %v302_v38, 0.0  ;;  %v249_v38 = vld [vmem:[%s1225_s1 + $0xd0] sm:$0xff] }
  0x2b   :  { %v33_v17 = vld [vmem:[%s1224_s0 + $0x80] sm:$0xff]  ;;  %v34_v24 = vld [vmem:[%s1224_s0 + $0x88] sm:$0xff]  ;;  %v35_v29 = vld [vmem:[%s1224_s0 + $0x90] sm:$0xff] }
  0x2c   :  { %v36_v30 = vld [vmem:[%s1224_s0 + $0x98] sm:$0xff]  ;;  %v104_v34 = vmul.f32 %v516_v1, %v33_v17  ;;  %v105_v40 = vmul.f32 %v516_v1, %v34_v24  ;;  %v106_v45 = vmul.f32 %v516_v1, %v35_v29 }
  0x2d   :  { %423 = vst [vmem:[%s1228_s4 + $0x40] sm:$0xff] %v359_v18  ;;  %v107_v46 = vmul.f32 %v516_v1, %v36_v30  ;;  %v248_v30 = vld [vmem:[%s1225_s1 + $0xc8] sm:$0xff] }
  0x2e   :  { %v175_v43 = vadd.f32 %v521_v2, %v104_v34  ;;  %v176_v51 = vadd.f32 %v521_v2, %v105_v40  ;;  %v177_v56 = vadd.f32 %v521_v2, %v106_v45 }
  0x2f   :  { %v178_v57 = vadd.f32 %v521_v2, %v107_v46 }
  0x30   :  { %v303_v55 = vadd.f32 %v239_v39, %v175_v43  ;;  %v304_v60 = vadd.f32 %v240_v44, %v176_v51  ;;  %v305_v5 = vadd.f32 %v241_v52, %v177_v56  ;;  %v250_v39 = vld [vmem:[%s1225_s1 + $0xd8] sm:$0xff]  ;;  %v251_v44 = vld [vmem:[%s1225_s1 + $0xe0] sm:$0xff]  ;;  %v253_v56 = vld [vmem:[%s1225_s1 + $0xf0] sm:$0xff] }
  0x31   :  { %v306_v6 = vadd.f32 %v242_v53, %v178_v57  ;;  %v254_v57 = vld [vmem:[%s1225_s1 + $0xf8] sm:$0xff] }
  0x32   :  { %v367_v4 = vmax.f32 %v303_v55, 0.0  ;;  %v368_v11 = vmax.f32 %v304_v60, 0.0  ;;  %v369_v17 = vmax.f32 %v305_v5, 0.0 }
  0x33   :  { %v370_v18 = vmax.f32 %v306_v6, 0.0 }
  0x34   :  { %v37_v35 = vld [vmem:[%s1224_s0 + $0xa0] sm:$0xff] }
  0x35   :  { %424 = vst [vmem:[%s1228_s4 + $0x48] sm:$0xff] %v360_v25  ;;  %v108_v54 = vmul.f32 %v516_v1, %v37_v35  ;;  %v247_v25 = vld [vmem:[%s1225_s1 + $0xc0] sm:$0xff] }
  0x37   :  { %v179_v61 = vadd.f32 %v521_v2, %v108_v54 }
  0x39   :  { %v307_v12 = vadd.f32 %v243_v58, %v179_v61 }
  0x3b   :  { %v371_v22 = vmax.f32 %v307_v12, 0.0 }
  0x3c   :  { %v38_v41 = vld [vmem:[%s1224_s0 + $0xa8] sm:$0xff] }
  0x3d   :  { %425 = vst [vmem:[%s1228_s4 + $0x50] sm:$0xff] %v361_v31  ;;  %426 = vst [vmem:[%s1228_s4 + $0x58] sm:$0xff] %v362_v32  ;;  %v109_v59 = vmul.f32 %v516_v1, %v38_v41 }
  0x3f   :  { %v180_v7 = vadd.f32 %v521_v2, %v109_v59 }
  0x41   :  { %v308_v19 = vadd.f32 %v244_v62, %v180_v7 }
  0x43   :  { %v372_v28 = vmax.f32 %v308_v19, 0.0 }
  0x44   :  { %v39_v47 = vld [vmem:[%s1224_s0 + $0xb0] sm:$0xff]  ;;  %v40_v48 = vld [vmem:[%s1224_s0 + $0xb8] sm:$0xff] }
  0x45   :  { %427 = vst [vmem:[%s1228_s4 + $0x60] sm:$0xff] %v363_v36  ;;  %428 = vst [vmem:[%s1228_s4 + $0x68] sm:$0xff] %v364_v42  ;;  %v110_v63 = vmul.f32 %v516_v1, %v39_v47  ;;  %v111_v0 = vmul.f32 %v516_v1, %v40_v48  ;;  %v252_v48 = vld [vmem:[%s1225_s1 + $0xe8] sm:$0xff] }
  0x46   :  { %429 = vst [vmem:[%s1228_s4 + $0x70] sm:$0xff] %v365_v49  ;;  %430 = vst [vmem:[%s1228_s4 + $0x78] sm:$0xff] %v366_v50 }
  0x47   :  { %v181_v13 = vadd.f32 %v521_v2, %v110_v63  ;;  %v182_v14 = vadd.f32 %v521_v2, %v111_v0 }
  0x49   :  { %v309_v23 = vadd.f32 %v245_v8, %v181_v13  ;;  %v310_v24 = vadd.f32 %v246_v9, %v182_v14 }
  0x4b   :  { %v373_v35 = vmax.f32 %v309_v23, 0.0  ;;  %v374_v36 = vmax.f32 %v310_v24, 0.0  ;;  %v257_v24 = vld [vmem:[%s1225_s1 + $0x110] sm:$0xff] }
  0x4d   :  { %v41_v3 = vld [vmem:[%s1224_s0 + $0xc0] sm:$0xff]  ;;  %v42_v10 = vld [vmem:[%s1224_s0 + $0xc8] sm:$0xff]  ;;  %v43_v15 = vld [vmem:[%s1224_s0 + $0xd0] sm:$0xff] }
  0x4e   :  { %v44_v16 = vld [vmem:[%s1224_s0 + $0xd8] sm:$0xff]  ;;  %v112_v20 = vmul.f32 %v516_v1, %v41_v3  ;;  %v113_v26 = vmul.f32 %v516_v1, %v42_v10  ;;  %v114_v31 = vmul.f32 %v516_v1, %v43_v15 }
  0x4f   :  { %431 = vst [vmem:[%s1228_s4 + $0x80] sm:$0xff] %v367_v4  ;;  %v115_v32 = vmul.f32 %v516_v1, %v44_v16  ;;  %v256_v16 = vld [vmem:[%s1225_s1 + $0x108] sm:$0xff] }
  0x50   :  { %v183_v29 = vadd.f32 %v521_v2, %v112_v20  ;;  %v184_v37 = vadd.f32 %v521_v2, %v113_v26  ;;  %v185_v42 = vadd.f32 %v521_v2, %v114_v31 }
  0x51   :  { %v186_v43 = vadd.f32 %v521_v2, %v115_v32 }
  0x52   :  { %v311_v41 = vadd.f32 %v247_v25, %v183_v29  ;;  %v312_v46 = vadd.f32 %v248_v30, %v184_v37  ;;  %v313_v53 = vadd.f32 %v249_v38, %v185_v42  ;;  %v258_v25 = vld [vmem:[%s1225_s1 + $0x118] sm:$0xff]  ;;  %v259_v30 = vld [vmem:[%s1225_s1 + $0x120] sm:$0xff]  ;;  %v261_v42 = vld [vmem:[%s1225_s1 + $0x130] sm:$0xff] }
  0x53   :  { %v314_v54 = vadd.f32 %v250_v39, %v186_v43  ;;  %v262_v43 = vld [vmem:[%s1225_s1 + $0x138] sm:$0xff] }
  0x54   :  { %v375_v52 = vmax.f32 %v311_v41, 0.0  ;;  %v376_v59 = vmax.f32 %v312_v46, 0.0  ;;  %v377_v3 = vmax.f32 %v313_v53, 0.0 }
  0x55   :  { %v378_v4 = vmax.f32 %v314_v54, 0.0 }
  0x56   :  { %v45_v21 = vld [vmem:[%s1224_s0 + $0xe0] sm:$0xff] }
  0x57   :  { %432 = vst [vmem:[%s1228_s4 + $0x88] sm:$0xff] %v368_v11  ;;  %v116_v40 = vmul.f32 %v516_v1, %v45_v21  ;;  %v255_v11 = vld [vmem:[%s1225_s1 + $0x100] sm:$0xff] }
  0x59   :  { %v187_v47 = vadd.f32 %v521_v2, %v116_v40 }
  0x5b   :  { %v315_v60 = vadd.f32 %v251_v44, %v187_v47 }
  0x5d   :  { %v379_v8 = vmax.f32 %v315_v60, 0.0 }
  0x5e   :  { %v46_v27 = vld [vmem:[%s1224_s0 + $0xe8] sm:$0xff] }
  0x5f   :  { %433 = vst [vmem:[%s1228_s4 + $0x90] sm:$0xff] %v369_v17  ;;  %434 = vst [vmem:[%s1228_s4 + $0x98] sm:$0xff] %v370_v18  ;;  %v117_v45 = vmul.f32 %v516_v1, %v46_v27 }
  0x61   :  { %v188_v55 = vadd.f32 %v521_v2, %v117_v45 }
  0x63   :  { %v316_v5 = vadd.f32 %v252_v48, %v188_v55 }
  0x65   :  { %v380_v14 = vmax.f32 %v316_v5, 0.0 }
  0x66   :  { %v47_v33 = vld [vmem:[%s1224_s0 + $0xf0] sm:$0xff]  ;;  %v48_v34 = vld [vmem:[%s1224_s0 + $0xf8] sm:$0xff] }
  0x67   :  { %435 = vst [vmem:[%s1228_s4 + $0xa0] sm:$0xff] %v371_v22  ;;  %436 = vst [vmem:[%s1228_s4 + $0xa8] sm:$0xff] %v372_v28  ;;  %v118_v49 = vmul.f32 %v516_v1, %v47_v33  ;;  %v119_v50 = vmul.f32 %v516_v1, %v48_v34  ;;  %v260_v34 = vld [vmem:[%s1225_s1 + $0x128] sm:$0xff] }
  0x68   :  { %437 = vst [vmem:[%s1228_s4 + $0xb0] sm:$0xff] %v373_v35  ;;  %438 = vst [vmem:[%s1228_s4 + $0xb8] sm:$0xff] %v374_v36 }
  0x69   :  { %v189_v61 = vadd.f32 %v521_v2, %v118_v49  ;;  %v190_v62 = vadd.f32 %v521_v2, %v119_v50 }
  0x6b   :  { %v317_v9 = vadd.f32 %v253_v56, %v189_v61  ;;  %v318_v10 = vadd.f32 %v254_v57, %v190_v62 }
  0x6d   :  { %v381_v21 = vmax.f32 %v317_v9, 0.0  ;;  %v382_v22 = vmax.f32 %v318_v10, 0.0  ;;  %v265_v10 = vld [vmem:[%s1225_s1 + $0x150] sm:$0xff] }
  0x6f   :  { %v49_v51 = vld [vmem:[%s1224_s0 + $0x100] sm:$0xff]  ;;  %v50_v58 = vld [vmem:[%s1224_s0 + $0x108] sm:$0xff]  ;;  %v51_v63 = vld [vmem:[%s1224_s0 + $0x110] sm:$0xff] }
  0x70   :  { %v52_v0 = vld [vmem:[%s1224_s0 + $0x118] sm:$0xff]  ;;  %v120_v6 = vmul.f32 %v516_v1, %v49_v51  ;;  %v121_v12 = vmul.f32 %v516_v1, %v50_v58  ;;  %v122_v17 = vmul.f32 %v516_v1, %v51_v63 }
  0x71   :  { %439 = vst [vmem:[%s1228_s4 + $0xc0] sm:$0xff] %v375_v52  ;;  %v123_v18 = vmul.f32 %v516_v1, %v52_v0  ;;  %v264_v0 = vld [vmem:[%s1225_s1 + $0x148] sm:$0xff] }
  0x72   :  { %v191_v15 = vadd.f32 %v521_v2, %v120_v6  ;;  %v192_v23 = vadd.f32 %v521_v2, %v121_v12  ;;  %v193_v28 = vadd.f32 %v521_v2, %v122_v17 }
  0x73   :  { %v194_v29 = vadd.f32 %v521_v2, %v123_v18 }
  0x74   :  { %v319_v27 = vadd.f32 %v255_v11, %v191_v15  ;;  %v320_v32 = vadd.f32 %v256_v16, %v192_v23  ;;  %v321_v39 = vadd.f32 %v257_v24, %v193_v28  ;;  %v266_v11 = vld [vmem:[%s1225_s1 + $0x158] sm:$0xff]  ;;  %v267_v16 = vld [vmem:[%s1225_s1 + $0x160] sm:$0xff]  ;;  %v269_v28 = vld [vmem:[%s1225_s1 + $0x170] sm:$0xff] }
  0x75   :  { %v322_v40 = vadd.f32 %v258_v25, %v194_v29  ;;  %v270_v29 = vld [vmem:[%s1225_s1 + $0x178] sm:$0xff] }
  0x76   :  { %v383_v38 = vmax.f32 %v319_v27, 0.0  ;;  %v384_v45 = vmax.f32 %v320_v32, 0.0  ;;  %v385_v51 = vmax.f32 %v321_v39, 0.0 }
  0x77   :  { %v386_v52 = vmax.f32 %v322_v40, 0.0 }
  0x78   :  { %v53_v7 = vld [vmem:[%s1224_s0 + $0x120] sm:$0xff] }
  0x79   :  { %440 = vst [vmem:[%s1228_s4 + $0xc8] sm:$0xff] %v376_v59  ;;  %v124_v26 = vmul.f32 %v516_v1, %v53_v7  ;;  %v263_v59 = vld [vmem:[%s1225_s1 + $0x140] sm:$0xff] }
  0x7b   :  { %v195_v33 = vadd.f32 %v521_v2, %v124_v26 }
  0x7d   :  { %v323_v46 = vadd.f32 %v259_v30, %v195_v33 }
  0x7f   :  { %v387_v56 = vmax.f32 %v323_v46, 0.0 }
  0x80   :  { %v54_v13 = vld [vmem:[%s1224_s0 + $0x128] sm:$0xff] }
  0x81   :  { %441 = vst [vmem:[%s1228_s4 + $0xd0] sm:$0xff] %v377_v3  ;;  %442 = vst [vmem:[%s1228_s4 + $0xd8] sm:$0xff] %v378_v4  ;;  %v125_v31 = vmul.f32 %v516_v1, %v54_v13 }
  0x83   :  { %v196_v41 = vadd.f32 %v521_v2, %v125_v31 }
  0x85   :  { %v324_v53 = vadd.f32 %v260_v34, %v196_v41 }
  0x87   :  { %v388_v62 = vmax.f32 %v324_v53, 0.0 }
  0x88   :  { %v55_v19 = vld [vmem:[%s1224_s0 + $0x130] sm:$0xff]  ;;  %v56_v20 = vld [vmem:[%s1224_s0 + $0x138] sm:$0xff] }
  0x89   :  { %443 = vst [vmem:[%s1228_s4 + $0xe0] sm:$0xff] %v379_v8  ;;  %444 = vst [vmem:[%s1228_s4 + $0xe8] sm:$0xff] %v380_v14  ;;  %v126_v35 = vmul.f32 %v516_v1, %v55_v19  ;;  %v127_v36 = vmul.f32 %v516_v1, %v56_v20  ;;  %v268_v20 = vld [vmem:[%s1225_s1 + $0x168] sm:$0xff] }
  0x8a   :  { %445 = vst [vmem:[%s1228_s4 + $0xf0] sm:$0xff] %v381_v21  ;;  %446 = vst [vmem:[%s1228_s4 + $0xf8] sm:$0xff] %v382_v22 }
  0x8b   :  { %v197_v47 = vadd.f32 %v521_v2, %v126_v35  ;;  %v198_v48 = vadd.f32 %v521_v2, %v127_v36 }
  0x8d   :  { %v325_v57 = vadd.f32 %v261_v42, %v197_v47  ;;  %v326_v58 = vadd.f32 %v262_v43, %v198_v48 }
  0x8f   :  { %v389_v7 = vmax.f32 %v325_v57, 0.0  ;;  %v390_v8 = vmax.f32 %v326_v58, 0.0  ;;  %v273_v58 = vld [vmem:[%s1225_s1 + $0x190] sm:$0xff] }
  0x91   :  { %v57_v37 = vld [vmem:[%s1224_s0 + $0x140] sm:$0xff]  ;;  %v58_v44 = vld [vmem:[%s1224_s0 + $0x148] sm:$0xff]  ;;  %v59_v49 = vld [vmem:[%s1224_s0 + $0x150] sm:$0xff] }
  0x92   :  { %v60_v50 = vld [vmem:[%s1224_s0 + $0x158] sm:$0xff]  ;;  %v128_v54 = vmul.f32 %v516_v1, %v57_v37  ;;  %v129_v60 = vmul.f32 %v516_v1, %v58_v44  ;;  %v130_v3 = vmul.f32 %v516_v1, %v59_v49 }
  0x93   :  { %447 = vst [vmem:[%s1228_s4 + $0x100] sm:$0xff] %v383_v38  ;;  %v131_v4 = vmul.f32 %v516_v1, %v60_v50  ;;  %v272_v50 = vld [vmem:[%s1225_s1 + $0x188] sm:$0xff] }
  0x94   :  { %v199_v63 = vadd.f32 %v521_v2, %v128_v54  ;;  %v200_v9 = vadd.f32 %v521_v2, %v129_v60  ;;  %v201_v14 = vadd.f32 %v521_v2, %v130_v3 }
  0x95   :  { %v202_v15 = vadd.f32 %v521_v2, %v131_v4 }
  0x96   :  { %v327_v13 = vadd.f32 %v263_v59, %v199_v63  ;;  %v328_v18 = vadd.f32 %v264_v0, %v200_v9  ;;  %v329_v25 = vadd.f32 %v265_v10, %v201_v14  ;;  %v274_v59 = vld [vmem:[%s1225_s1 + $0x198] sm:$0xff]  ;;  %v275_v0 = vld [vmem:[%s1225_s1 + $0x1a0] sm:$0xff]  ;;  %v277_v14 = vld [vmem:[%s1225_s1 + $0x1b0] sm:$0xff] }
  0x97   :  { %v330_v26 = vadd.f32 %v266_v11, %v202_v15  ;;  %v278_v15 = vld [vmem:[%s1225_s1 + $0x1b8] sm:$0xff] }
  0x98   :  { %v391_v24 = vmax.f32 %v327_v13, 0.0  ;;  %v392_v31 = vmax.f32 %v328_v18, 0.0  ;;  %v393_v37 = vmax.f32 %v329_v25, 0.0 }
  0x99   :  { %v394_v38 = vmax.f32 %v330_v26, 0.0 }
  0x9a   :  { %v61_v55 = vld [vmem:[%s1224_s0 + $0x160] sm:$0xff] }
  0x9b   :  { %448 = vst [vmem:[%s1228_s4 + $0x108] sm:$0xff] %v384_v45  ;;  %v132_v12 = vmul.f32 %v516_v1, %v61_v55  ;;  %v271_v45 = vld [vmem:[%s1225_s1 + $0x180] sm:$0xff] }
  0x9d   :  { %v203_v19 = vadd.f32 %v521_v2, %v132_v12 }
  0x9f   :  { %v331_v32 = vadd.f32 %v267_v16, %v203_v19 }
  0xa1   :  { %v395_v42 = vmax.f32 %v331_v32, 0.0 }
  0xa2   :  { %v62_v61 = vld [vmem:[%s1224_s0 + $0x168] sm:$0xff] }
  0xa3   :  { %449 = vst [vmem:[%s1228_s4 + $0x110] sm:$0xff] %v385_v51  ;;  %450 = vst [vmem:[%s1228_s4 + $0x118] sm:$0xff] %v386_v52  ;;  %v133_v17 = vmul.f32 %v516_v1, %v62_v61 }
  0xa5   :  { %v204_v27 = vadd.f32 %v521_v2, %v133_v17 }
  0xa7   :  { %v332_v39 = vadd.f32 %v268_v20, %v204_v27 }
  0xa9   :  { %v396_v48 = vmax.f32 %v332_v39, 0.0 }
  0xaa   :  { %v63_v5 = vld [vmem:[%s1224_s0 + $0x170] sm:$0xff]  ;;  %v64_v6 = vld [vmem:[%s1224_s0 + $0x178] sm:$0xff] }
  0xab   :  { %451 = vst [vmem:[%s1228_s4 + $0x120] sm:$0xff] %v387_v56  ;;  %452 = vst [vmem:[%s1228_s4 + $0x128] sm:$0xff] %v388_v62  ;;  %v134_v21 = vmul.f32 %v516_v1, %v63_v5  ;;  %v135_v22 = vmul.f32 %v516_v1, %v64_v6  ;;  %v276_v6 = vld [vmem:[%s1225_s1 + $0x1a8] sm:$0xff] }
  0xac   :  { %453 = vst [vmem:[%s1228_s4 + $0x130] sm:$0xff] %v389_v7  ;;  %454 = vst [vmem:[%s1228_s4 + $0x138] sm:$0xff] %v390_v8 }
  0xad   :  { %v205_v33 = vadd.f32 %v521_v2, %v134_v21  ;;  %v206_v34 = vadd.f32 %v521_v2, %v135_v22 }
  0xaf   :  { %v333_v43 = vadd.f32 %v269_v28, %v205_v33  ;;  %v334_v44 = vadd.f32 %v270_v29, %v206_v34 }
  0xb1   :  { %v397_v55 = vmax.f32 %v333_v43, 0.0  ;;  %v398_v56 = vmax.f32 %v334_v44, 0.0  ;;  %v281_v44 = vld [vmem:[%s1225_s1 + $0x1d0] sm:$0xff] }
  0xb3   :  { %v65_v23 = vld [vmem:[%s1224_s0 + $0x180] sm:$0xff]  ;;  %v66_v30 = vld [vmem:[%s1224_s0 + $0x188] sm:$0xff]  ;;  %v67_v35 = vld [vmem:[%s1224_s0 + $0x190] sm:$0xff] }
  0xb4   :  { %v68_v36 = vld [vmem:[%s1224_s0 + $0x198] sm:$0xff]  ;;  %v136_v40 = vmul.f32 %v516_v1, %v65_v23  ;;  %v137_v46 = vmul.f32 %v516_v1, %v66_v30  ;;  %v138_v51 = vmul.f32 %v516_v1, %v67_v35 }
  0xb5   :  { %455 = vst [vmem:[%s1228_s4 + $0x140] sm:$0xff] %v391_v24  ;;  %v139_v52 = vmul.f32 %v516_v1, %v68_v36  ;;  %v280_v36 = vld [vmem:[%s1225_s1 + $0x1c8] sm:$0xff] }
  0xb6   :  { %v207_v49 = vadd.f32 %v521_v2, %v136_v40  ;;  %v208_v57 = vadd.f32 %v521_v2, %v137_v46  ;;  %v209_v62 = vadd.f32 %v521_v2, %v138_v51 }
  0xb7   :  { %v210_v63 = vadd.f32 %v521_v2, %v139_v52 }
  0xb8   :  { %v335_v61 = vadd.f32 %v271_v45, %v207_v49  ;;  %v336_v4 = vadd.f32 %v272_v50, %v208_v57  ;;  %v337_v11 = vadd.f32 %v273_v58, %v209_v62  ;;  %v282_v45 = vld [vmem:[%s1225_s1 + $0x1d8] sm:$0xff]  ;;  %v283_v50 = vld [vmem:[%s1225_s1 + $0x1e0] sm:$0xff] }
  0xb9   :  { %v338_v12 = vadd.f32 %v274_v59, %v210_v63  ;;  %v286_v62 = vld [vmem:[%s1225_s1 + $0x1f8] sm:$0xff] }
  0xba   :  { %v399_v10 = vmax.f32 %v335_v61, 0.0  ;;  %v400_v17 = vmax.f32 %v336_v4, 0.0  ;;  %v401_v23 = vmax.f32 %v337_v11, 0.0  ;;  %v285_v61 = vld [vmem:[%s1225_s1 + $0x1f0] sm:$0xff] }
  0xbb   :  { %v402_v24 = vmax.f32 %v338_v12, 0.0 }
  0xbc   :  { %v69_v41 = vld [vmem:[%s1224_s0 + $0x1a0] sm:$0xff] }
  0xbd   :  { %456 = vst [vmem:[%s1228_s4 + $0x148] sm:$0xff] %v392_v31  ;;  %v140_v60 = vmul.f32 %v516_v1, %v69_v41  ;;  %v279_v31 = vld [vmem:[%s1225_s1 + $0x1c0] sm:$0xff] }
  0xbf   :  { %v211_v5 = vadd.f32 %v521_v2, %v140_v60 }
  0xc1   :  { %v339_v18 = vadd.f32 %v275_v0, %v211_v5 }
  0xc3   :  { %v403_v28 = vmax.f32 %v339_v18, 0.0 }
  0xc4   :  { %v70_v47 = vld [vmem:[%s1224_s0 + $0x1a8] sm:$0xff] }
  0xc5   :  { %457 = vst [vmem:[%s1228_s4 + $0x150] sm:$0xff] %v393_v37  ;;  %458 = vst [vmem:[%s1228_s4 + $0x158] sm:$0xff] %v394_v38  ;;  %v141_v3 = vmul.f32 %v516_v1, %v70_v47 }
  0xc7   :  { %v212_v13 = vadd.f32 %v521_v2, %v141_v3 }
  0xc9   :  { %v340_v25 = vadd.f32 %v276_v6, %v212_v13 }
  0xcb   :  { %v404_v34 = vmax.f32 %v340_v25, 0.0 }
  0xcc   :  { %v71_v53 = vld [vmem:[%s1224_s0 + $0x1b0] sm:$0xff]  ;;  %v72_v54 = vld [vmem:[%s1224_s0 + $0x1b8] sm:$0xff] }
  0xcd   :  { %459 = vst [vmem:[%s1228_s4 + $0x160] sm:$0xff] %v395_v42  ;;  %460 = vst [vmem:[%s1228_s4 + $0x168] sm:$0xff] %v396_v48  ;;  %v142_v7 = vmul.f32 %v516_v1, %v71_v53  ;;  %v143_v8 = vmul.f32 %v516_v1, %v72_v54  ;;  %v284_v54 = vld [vmem:[%s1225_s1 + $0x1e8] sm:$0xff] }
  0xce   :  { %461 = vst [vmem:[%s1228_s4 + $0x170] sm:$0xff] %v397_v55  ;;  %462 = vst [vmem:[%s1228_s4 + $0x178] sm:$0xff] %v398_v56 }
  0xcf   :  { %v213_v19 = vadd.f32 %v521_v2, %v142_v7  ;;  %v214_v20 = vadd.f32 %v521_v2, %v143_v8 }
  0xd1   :  { %v341_v29 = vadd.f32 %v277_v14, %v213_v19  ;;  %v342_v30 = vadd.f32 %v278_v15, %v214_v20 }
  0xd3   :  { %v405_v41 = vmax.f32 %v341_v29, 0.0  ;;  %v406_v42 = vmax.f32 %v342_v30, 0.0 }
  0xd5   :  { %v73_v9 = vld [vmem:[%s1224_s0 + $0x1c0] sm:$0xff]  ;;  %v74_v16 = vld [vmem:[%s1224_s0 + $0x1c8] sm:$0xff]  ;;  %v75_v21 = vld [vmem:[%s1224_s0 + $0x1d0] sm:$0xff] }
  0xd6   :  { %v76_v22 = vld [vmem:[%s1224_s0 + $0x1d8] sm:$0xff]  ;;  %v144_v26 = vmul.f32 %v516_v1, %v73_v9  ;;  %v145_v32 = vmul.f32 %v516_v1, %v74_v16  ;;  %v146_v37 = vmul.f32 %v516_v1, %v75_v21 }
  0xd7   :  { %463 = vst [vmem:[%s1228_s4 + $0x180] sm:$0xff] %v399_v10  ;;  %v147_v38 = vmul.f32 %v516_v1, %v76_v22 }
  0xd8   :  { %v215_v35 = vadd.f32 %v521_v2, %v144_v26  ;;  %v216_v43 = vadd.f32 %v521_v2, %v145_v32  ;;  %v217_v48 = vadd.f32 %v521_v2, %v146_v37 }
  0xd9   :  { %v218_v49 = vadd.f32 %v521_v2, %v147_v38 }
  0xda   :  { %v343_v47 = vadd.f32 %v279_v31, %v215_v35  ;;  %v344_v52 = vadd.f32 %v280_v36, %v216_v43  ;;  %v345_v58 = vadd.f32 %v281_v44, %v217_v48 }
  0xdb   :  { %v346_v59 = vadd.f32 %v282_v45, %v218_v49 }
  0xdc   :  { %v407_v57 = vmax.f32 %v343_v47, 0.0  ;;  %v408_v63 = vmax.f32 %v344_v52, 0.0 }
  0xdd   :  { %v410_v5 = vmax.f32 %v346_v59, 0.0 }
  0xde   :  { %v77_v27 = vld [vmem:[%s1224_s0 + $0x1e0] sm:$0xff] }
  0xdf   :  { %464 = vst [vmem:[%s1228_s4 + $0x188] sm:$0xff] %v400_v17  ;;  %v148_v46 = vmul.f32 %v516_v1, %v77_v27 }
  0xe1   :  { %v219_v53 = vadd.f32 %v521_v2, %v148_v46 }
  0xe3   :  { %v347_v0 = vadd.f32 %v283_v50, %v219_v53 }
  0xe5   :  { %v411_v7 = vmax.f32 %v347_v0, 0.0 }
  0xe6   :  { %v78_v33 = vld [vmem:[%s1224_s0 + $0x1e8] sm:$0xff] }
  0xe7   :  { %465 = vst [vmem:[%s1228_s4 + $0x190] sm:$0xff] %v401_v23  ;;  %466 = vst [vmem:[%s1228_s4 + $0x198] sm:$0xff] %v402_v24  ;;  %v149_v51 = vmul.f32 %v516_v1, %v78_v33 }
  0xe9   :  { %v220_v60 = vadd.f32 %v521_v2, %v149_v51 }
  0xeb   :  { %v348_v6 = vadd.f32 %v284_v54, %v220_v60 }
  0xee   :  { %v79_v39 = vld [vmem:[%s1224_s0 + $0x1f0] sm:$0xff]  ;;  %v80_v40 = vld [vmem:[%s1224_s0 + $0x1f8] sm:$0xff] }
  0xef   :  { %467 = vst [vmem:[%s1228_s4 + $0x1a0] sm:$0xff] %v403_v28  ;;  %468 = vst [vmem:[%s1228_s4 + $0x1a8] sm:$0xff] %v404_v34  ;;  %v150_v55 = vmul.f32 %v516_v1, %v79_v39  ;;  %v151_v56 = vmul.f32 %v516_v1, %v80_v40  ;;  %v409_v1 = vmax.f32 %v345_v58, 0.0 }
  0xf0   :  { %469 = vst [vmem:[%s1228_s4 + $0x1b0] sm:$0xff] %v405_v41  ;;  %470 = vst [vmem:[%s1228_s4 + $0x1b8] sm:$0xff] %v406_v42 }
  0xf1   :  { %v221_v3 = vadd.f32 %v521_v2, %v150_v55  ;;  %v222_v4 = vadd.f32 %v521_v2, %v151_v56  ;;  %471 = vst [vmem:[%s1228_s4 + $0x1c0] sm:$0xff] %v407_v57  ;;  %472 = vst [vmem:[%s1228_s4 + $0x1c8] sm:$0xff] %v408_v63  ;;  %v412_v2 = vmax.f32 %v348_v6, 0.0 }
  0xf2   :  { %473 = vst [vmem:[%s1228_s4 + $0x1d0] sm:$0xff] %v409_v1  ;;  %474 = vst [vmem:[%s1228_s4 + $0x1d8] sm:$0xff] %v410_v5 }
  0xf3   :  { %v349_v8 = vadd.f32 %v285_v61, %v221_v3  ;;  %v350_v9 = vadd.f32 %v286_v62, %v222_v4  ;;  %475 = vst [vmem:[%s1228_s4 + $0x1e0] sm:$0xff] %v411_v7  ;;  %476 = vst [vmem:[%s1228_s4 + $0x1e8] sm:$0xff] %v412_v2 }
  0xf5   :  { %v413_v10 = vmax.f32 %v349_v8, 0.0  ;;  %v414_v11 = vmax.f32 %v350_v9, 0.0 }
  0xf7   :  { %477 = vst [vmem:[%s1228_s4 + $0x1f0] sm:$0xff] %v413_v10  ;;  %478 = vst [vmem:[%s1228_s4 + $0x1f8] sm:$0xff] %v414_v11 }

// kernel: residual_forward.3
= control target key start
LH: loop header
LB: loop body
LE: loop exit
PB: predicated region body
PF: predicated region fallthrough
CT: control target
= control target key end

     0   :  { %s4535_s15 = smov 0   ;;  %s5246_s0 = inlined_call_operand.vmem [shape: f32[2,16,16,128], index: 0, kind: input, shape index: {}]   ;;  %s5247_s1 = inlined_call_operand.vmem [shape: bf16[9,128,128], index: 1, kind: input, shape index: {}]   ;;  %s5248_s2 = inlined_call_operand.vmem [shape: f32[1,128], index: 2, kind: input, shape index: {}]   ;;  %s5249_s3 = inlined_call_operand.vmem [shape: f32[2,16,16,128], index: 3, kind: output, shape index: {0}]   ;;  %s5250_s4 = inlined_call_operand.vmem [shape: f32[2,2,128], index: 4, kind: output, shape index: {1}]  }
   0x1 LB: > { %s3276_s16 = sadd.s32 4294967295, %s4507_s15   ;;  %p3280_p0 = scmp.ge.s32.totalorder %s4507_s15, 1  ;;  %s4507_s15 = sphi %s4535_s15, %s15_s15  }
   0x2   : > { %p165_p1 = scmp.lt.s32.totalorder %s4507_s15, 3 }
   0x4   : > { %p166_p2 = pnand %p3280_p0, %p165_p1 }
   0x5   : > { %v4420_v0 = vld [vmem:[%s5247_s1 + $0x40] sm:$0xff] (!%p166_p2)   ;;  %v4509_v2 = vmov (!%p166_p2), 0.0   ;;  %v4422_v3 = vld [vmem:[%s5247_s1 + $0x48] sm:$0xff] (!%p166_p2)   ;;  %p195_p3 = scmp.lt.s32.totalorder (!%p166_p2), %s3276_s16, 1  ;;  %v4424_v5 = vld [vmem:[%s5247_s1 + $0x50] sm:$0xff] (!%p166_p2)   ;;  %vm3187_vm0 = vcmask (!%p166_p2), 1040384  }
   0x6   : > { %169 = sbr.rel (%p166_p2) target bundleno = 560 (0x230), region = 32  ;;  %v4421_v1 = vld [vmem:[%s5247_s1 + $0x100] sm:$0xff] (!%p166_p2)   ;;  %242 = vst [vmem:[#allocation2] sm:$0xff] (!%p166_p2), %v4509_v2  ;;  %243 = vst [vmem:[#allocation2 + $0x8] sm:$0xff] (!%p166_p2), %v4509_v2  ;;  %3707 = vmatprep.subr.bf16.mxu1 (!%p166_p2), %v4420_v0  ;;  %v4423_v4 = vld [vmem:[%s5247_s1 + $0x108] sm:$0xff] (!%p166_p2)  }
   0x7   : > { %244 = vst [vmem:[#allocation2 + $0x10] sm:$0x3] (!%p166_p2), %v4509_v2  ;;  %246 = vst [vmem:[#allocation2 + $0x198] sm:$0xff] (!%p166_p2), %v4509_v2  ;;  %3899 = vmatprep.subr.bf16.mxu0 (!%p166_p2), %v4421_v1  ;;  %3708 = vmatpush3.bf16.msra.mxu1 (!%p166_p2), %v4420_v0  ;;  %v4425_v6 = vld [vmem:[%s5247_s1 + $0x110] sm:$0xff] (!%p166_p2)   ;;  %v4426_v7 = vld [vmem:[%s5247_s1 + $0x58] sm:$0xff] (!%p166_p2)  }
   0x8   : > { %247 = vst [vmem:[#allocation2 + $0x1a0] sm:$0xff] (!%p166_p2), %v4509_v2  ;;  %248 = vst [vmem:[#allocation2 + $0x1a8] sm:$0x3] (!%p166_p2), %v4509_v2  ;;  %3900 = vmatpush3.bf16.msra.mxu0 (!%p166_p2), %v4421_v1  ;;  %3709 = vmatprep.subr.bf16.mxu1 (!%p166_p2), %v4422_v3  ;;  %v4427_v8 = vld [vmem:[%s5247_s1 + $0x118] sm:$0xff] (!%p166_p2)   ;;  %v4428_v9 = vld [vmem:[%s5247_s1 + $0x60] sm:$0xff] (!%p166_p2)  }
   0x9   : > { %250 = vst [vmem:[#allocation2 + $0x18] sm:$0x1] (!%p166_p2), %v4509_v2  ;;  %251 = vst [vmem:[#allocation2 + $0x30] sm:$0x1] (!%p166_p2), %v4509_v2  ;;  %3901 = vmatprep.subr.bf16.mxu0 (!%p166_p2), %v4423_v4  ;;  %v4429_v10 = vld [vmem:[%s5247_s1 + $0x120] sm:$0xff] (!%p166_p2)   ;;  %v4430_v11 = vld [vmem:[%s5247_s1 + $0x68] sm:$0xff] (!%p166_p2)  }
   0xa   : > { %252 = vst [vmem:[#allocation2 + $0x48] sm:$0x1] (!%p166_p2), %v4509_v2  ;;  %253 = vst [vmem:[#allocation2 + $0x60] sm:$0x1] (!%p166_p2), %v4509_v2  ;;  %v4431_v12 = vld [vmem:[%s5247_s1 + $0x128] sm:$0xff] (!%p166_p2)   ;;  %v4432_v21 = vld [vmem:[%s5247_s1 + $0x70] sm:$0xff] (!%p166_p2)  }
   0xb   : > { %254 = vst [vmem:[#allocation2 + $0x78] sm:$0x1] (!%p166_p2), %v4509_v2  ;;  %255 = vst [vmem:[#allocation2 + $0x90] sm:$0x1] (!%p166_p2), %v4509_v2  ;;  %3710 = vmatpush3.bf16.msra.mxu1 (!%p166_p2), %v4422_v3  ;;  %v4433_v22 = vld [vmem:[%s5247_s1 + $0x130] sm:$0xff] (!%p166_p2)   ;;  %v4434_v27 = vld [vmem:[%s5247_s1 + $0x78] sm:$0xff] (!%p166_p2)  }
   0xc   : > { %256 = vst [vmem:[#allocation2 + $0xa8] sm:$0x1] (!%p166_p2), %v4509_v2  ;;  %257 = vst [vmem:[#allocation2 + $0xc0] sm:$0x1] (!%p166_p2), %v4509_v2  ;;  %3902 = vmatpush3.bf16.msra.mxu0 (!%p166_p2), %v4423_v4  ;;  %3711 = vmatprep.subr.bf16.mxu1 (!%p166_p2), %v4424_v5  ;;  %v4435_v28 = vld [vmem:[%s5247_s1 + $0x138] sm:$0xff] (!%p166_p2)   ;;  %v4436_v33 = vld [vmem:[%s5247_s1] sm:$0xff] (!%p166_p2)  }
   0xd   : > { %258 = vst [vmem:[#allocation2 + $0xd8] sm:$0x1] %v4509_v2  ;;  %259 = vst [vmem:[#allocation2 + $0xf0] sm:$0x1] %v4509_v2  ;;  %s5252_s16 = smov (!%p195_p3, %s3276_s16), 1  ;;  %3903 = vmatprep.subr.bf16.mxu0 %v4425_v6  ;;  %v383_v13 = vld [vmem:[#allocation2 + $0x1] sm:$0xff] }
   0xe   : > { %260 = vst [vmem:[#allocation2 + $0x108] sm:$0x1] %v4509_v2  ;;  %261 = vst [vmem:[#allocation2 + $0x120] sm:$0x1] %v4509_v2  ;;  %s3489_s7 = sshll.u32 %s5252_s16, 8  ;;  %v384_v14 = vld [vmem:[#allocation2 + $0x9] sm:$0xff] }
   0xf   : > { %262 = vst [vmem:[#allocation2 + $0x138] sm:$0x1] %v4509_v2  ;;  %263 = vst [vmem:[#allocation2 + $0x150] sm:$0x1] %v4509_v2  ;;  %3712 = vmatpush3.bf16.msra.mxu1 %v4424_v5  ;;  %s4627_s14 = scalar_lea.vmem %s5246_s0, %s3489_s7  ;;  %v415_v16 = vpack.c.bf16 %v384_v14, %v383_v13  ;;  %v4437_v34 = vld [vmem:[%s5247_s1 + $0x140] sm:$0xff]   ;;  %v4438_v40 = vld [vmem:[%s5247_s1 + $0x148] sm:$0xff]   ;;  %s5167_s25 = scalar_lea.vmem %s5249_s3, %s3489_s7 }
  0x10   : > { %264 = vst [vmem:[#allocation2 + $0x168] sm:$0x1] %v4509_v2  ;;  %265 = vst [vmem:[#allocation2 + $0x180] sm:$0x1] %v4509_v2  ;;  %3904 = vmatpush3.bf16.msra.mxu0 %v4425_v6  ;;  %3713 = vmatprep.subr.bf16.mxu1 %v4426_v7  ;;  %v210_v15 = vld [vmem:[%s4627_s14] sm:$0xff]  ;;  %v211_v17 = vld [vmem:[%s4627_s14 + $0x8] sm:$0xff] }
  0x11   : > { %268 = vst [vmem:[#allocation2 + $0x29] sm:$0x1] %v4509_v2  ;;  %269 = vst [vmem:[#allocation2 + $0x41] sm:$0x1] %v4509_v2  ;;  %3905 = vmatprep.subr.bf16.mxu0 %v4427_v8  ;;  %v1510_v18 = vpack.c.bf16 %v211_v17, %v210_v15  ;;  %v212_v19 = vld [vmem:[%s4627_s14 + $0x10] sm:$0xff]  ;;  %v213_v20 = vld [vmem:[%s4627_s14 + $0x18] sm:$0xff]  ;;  %3723 = vmatprep.mubr.bf16.mxu1 %v415_v16 }
  0x12   : > { %270 = vst [vmem:[#allocation2 + $0x59] sm:$0x1] %v4509_v2  ;;  %271 = vst [vmem:[#allocation2 + $0x71] sm:$0x1] %v4509_v2  ;;  %v214_v23 = vld [vmem:[%s4627_s14 + $0x20] sm:$0xff]  ;;  %v215_v24 = vld [vmem:[%s4627_s14 + $0x28] sm:$0xff]  ;;  %v1511_v37 = vpack.c.bf16 %v213_v20, %v212_v19 }
  0x13   : > { %272 = vst [vmem:[#allocation2 + $0x89] sm:$0x1] %v4509_v2  ;;  %273 = vst [vmem:[#allocation2 + $0xa1] sm:$0x1] %v4509_v2  ;;  %3714 = vmatpush3.bf16.msra.mxu1 %v4426_v7  ;;  %3915 = vmatprep.mubr.bf16.mxu0 %v1510_v18  ;;  %v216_v25 = vld [vmem:[%s4627_s14 + $0x30] sm:$0xff]  ;;  %v217_v26 = vld [vmem:[%s4627_s14 + $0x38] sm:$0xff]  ;;  %v1512_v41 = vpack.c.bf16 %v215_v24, %v214_v23 }
  0x14   : > { %274 = vst [vmem:[#allocation2 + $0xb9] sm:$0x1] %v4509_v2  ;;  %275 = vst [vmem:[#allocation2 + $0xd1] sm:$0x1] %v4509_v2  ;;  %3906 = vmatpush3.bf16.msra.mxu0 %v4427_v8  ;;  %3715 = vmatprep.subr.bf16.mxu1 %v4428_v9  ;;  %v218_v29 = vld [vmem:[%s4627_s14 + $0x40] sm:$0xff]  ;;  %v219_v30 = vld [vmem:[%s4627_s14 + $0x48] sm:$0xff]  ;;  %v1513_v49 = vpack.c.bf16 %v217_v26, %v216_v25 }
  0x15   : > { %276 = vst [vmem:[#allocation2 + $0xe9] sm:$0x1] %v4509_v2  ;;  %277 = vst [vmem:[#allocation2 + $0x101] sm:$0x1] %v4509_v2  ;;  %3907 = vmatprep.subr.bf16.mxu0 %v4429_v10  ;;  %v4658_v31 = vld [vmem:[%s4627_s14 + $0x50] sm:$0xff]  ;;  %v4661_v32 = vld [vmem:[%s4627_s14 + $0x58] sm:$0xff]  ;;  %v1514_v52 = vpack.c.bf16 %v219_v30, %v218_v29 }
  0x16   : > { %278 = vst [vmem:[#allocation2 + $0x119] sm:$0x1] %v4509_v2  ;;  %279 = vst [vmem:[#allocation2 + $0x131] sm:$0x1] %v4509_v2  ;;  %v4672_v35 = vld [vmem:[%s4627_s14 + $0x60] sm:$0xff]  ;;  %v4675_v36 = vld [vmem:[%s4627_s14 + $0x68] sm:$0xff]  ;;  %v1515_v61 = vpack.c.bf16 %v4661_v32, %v4658_v31 }
  0x17   : > { %280 = vst [vmem:[#allocation2 + $0x149] sm:$0x1] %v4509_v2  ;;  %281 = vst [vmem:[#allocation2 + $0x161] sm:$0x1] %v4509_v2  ;;  %3716 = vmatpush3.bf16.msra.mxu1 %v4428_v9  ;;  %v4680_v38 = vld [vmem:[%s4627_s14 + $0x70] sm:$0xff]  ;;  %v4683_v39 = vld [vmem:[%s4627_s14 + $0x78] sm:$0xff]  ;;  %v1516_v1 = vpack.c.bf16 %v4675_v36, %v4672_v35 }
  0x18   : > { %282 = vst [vmem:[#allocation2 + $0x179] sm:$0x1] %v4509_v2  ;;  %283 = vst [vmem:[#allocation2 + $0x191] sm:$0x1] %v4509_v2  ;;  %3908 = vmatpush3.bf16.msra.mxu0 %v4429_v10  ;;  %3717 = vmatprep.subr.bf16.mxu1 %v4430_v11  ;;  %v4439_v42 = vld [vmem:[%s5247_s1 + $0x8] sm:$0xff]   ;;  %v4694_v43 = vld [vmem:[%s4627_s14 + $0x80] sm:$0xff]  ;;  %v1517_v10 = vpack.c.bf16 %v4683_v39, %v4680_v38 }
  0x19   : > { %267 = vst [vmem:[#allocation2 + $0x11] sm:$0x1] %v4509_v2  ;;  %249 = vst [vmem:[#allocation2] sm:$0x1] %v4509_v2  ;;  %3909 = vmatprep.subr.bf16.mxu0 %v4431_v12  ;;  %v4697_v44 = vld [vmem:[%s4627_s14 + $0x88] sm:$0xff]  ;;  %v4442_v45 = vld [vmem:[%s5247_s1 + $0x10] sm:$0xff]  }
  0x1a   : > { %266 = vst [vmem:[#allocation2 + $0x198] sm:$0x1] %v4509_v2  ;;  %284 = vst [vmem:[#allocation2 + $0x1a9] sm:$0x1] %v4509_v2  ;;  %v4440_v46 = vld [vmem:[%s5247_s1 + $0x150] sm:$0xff]   ;;  %v4711_v48 = vld [vmem:[%s4627_s14 + $0x98] sm:$0xff] }
  0x1b   : > { %286 = vst [vmem:[#allocation2 + $0x19] sm:$0xff] %v210_v15  ;;  %287 = vst [vmem:[#allocation2 + $0x21] sm:$0xff] %v211_v17  ;;  %3718 = vmatpush3.bf16.msra.mxu1 %v4430_v11  ;;  %v4708_v47 = vld [vmem:[%s4627_s14 + $0x90] sm:$0xff]  ;;  %v4716_v50 = vld [vmem:[%s4627_s14 + $0xa0] sm:$0xff]  ;;  %s3285_s7 = sshll.u32 %s5252_s16, 1 }
  0x1c   : > { %288 = vst [vmem:[#allocation2 + $0x31] sm:$0xff] %v212_v19  ;;  %289 = vst [vmem:[#allocation2 + $0x39] sm:$0xff] %v213_v20  ;;  %3910 = vmatpush3.bf16.msra.mxu0 %v4431_v12  ;;  %3719 = vmatprep.subr.bf16.mxu1 %v4432_v21  ;;  %v4719_v51 = vld [vmem:[%s4627_s14 + $0xa8] sm:$0xff]  ;;  %v4441_v53 = vld [vmem:[%s5247_s1 + $0x158] sm:$0xff]   ;;  %v424_v19 = vpack.c.bf16 %v4697_v44, %v4694_v43  ;;  %s208_s27 = scalar_lea.vmem %s5250_s4, %s3285_s7 }
  0x1d   : > { %290 = vst [vmem:[#allocation2 + $0x49] sm:$0xff] %v214_v23  ;;  %291 = vst [vmem:[#allocation2 + $0x51] sm:$0xff] %v215_v24  ;;  %3911 = vmatprep.subr.bf16.mxu0 %v4433_v22  ;;  %v4445_v54 = vld [vmem:[%s5247_s1 + $0x18] sm:$0xff]   ;;  %v4730_v55 = vld [vmem:[%s4627_s14 + $0xb0] sm:$0xff] }
  0x1e   : > { %292 = vst [vmem:[#allocation2 + $0x61] sm:$0xff] %v216_v25  ;;  %293 = vst [vmem:[#allocation2 + $0x69] sm:$0xff] %v217_v26  ;;  %v4733_v56 = vld [vmem:[%s4627_s14 + $0xb8] sm:$0xff]  ;;  %v4738_v57 = vld [vmem:[%s4627_s14 + $0xc0] sm:$0xff] }
  0x1f   : > { %294 = vst [vmem:[#allocation2 + $0x79] sm:$0xff] %v218_v29  ;;  %295 = vst [vmem:[#allocation2 + $0x81] sm:$0xff] %v219_v30  ;;  %3720 = vmatpush3.bf16.msra.mxu1 %v4432_v21  ;;  %v4741_v58 = vld [vmem:[%s4627_s14 + $0xc8] sm:$0xff]  ;;  %v4443_v59 = vld [vmem:[%s5247_s1 + $0x160] sm:$0xff]  }
  0x20   : > { %3912 = vmatpush3.bf16.msra.mxu0 %v4433_v22  ;;  %3721 = vmatprep.subr.bf16.mxu1 %v4434_v27  ;;  %296 = vst [vmem:[#allocation2 + $0x91] sm:$0xff] %v4658_v31  ;;  %297 = vst [vmem:[#allocation2 + $0x99] sm:$0xff] %v4661_v32  ;;  %v4448_v60 = vld [vmem:[%s5247_s1 + $0x20] sm:$0xff]   ;;  %v4754_v62 = vld [vmem:[%s4627_s14 + $0xd0] sm:$0xff]  ;;  %v425_v22 = vpack.c.bf16 %v4711_v48, %v4708_v47  ;;  %v426_v32 = vpack.c.bf16 %v4719_v51, %v4716_v50 }
  0x21   : > { %3913 = vmatprep.subr.bf16.mxu0 %v4435_v28  ;;  %298 = vst [vmem:[#allocation2 + $0xa9] sm:$0xff] %v4672_v35  ;;  %299 = vst [vmem:[#allocation2 + $0xb1] sm:$0xff] %v4675_v36  ;;  %v4757_v63 = vld [vmem:[%s4627_s14 + $0xd8] sm:$0xff]  ;;  %v4444_v0 = vld [vmem:[%s5247_s1 + $0x168] sm:$0xff]  }
  0x22   : > { %300 = vst [vmem:[#allocation2 + $0xc1] sm:$0xff] %v4680_v38  ;;  %301 = vst [vmem:[#allocation2 + $0xc9] sm:$0xff] %v4683_v39  ;;  %v4767_v3 = vld [vmem:[%s4627_s14 + $0xe0] sm:$0xff]  ;;  %v4770_v4 = vld [vmem:[%s4627_s14 + $0xe8] sm:$0xff] }
  0x23   : > { %3722 = vmatpush3.bf16.msra.mxu1 %v4434_v27  ;;  %302 = vst [vmem:[#allocation2 + $0xd9] sm:$0xff] %v4694_v43  ;;  %303 = vst [vmem:[#allocation2 + $0xe1] sm:$0xff] %v4697_v44  ;;  %v4450_v5 = vld [vmem:[%s5247_s1 + $0x28] sm:$0xff]   ;;  %v4446_v6 = vld [vmem:[%s5247_s1 + $0x170] sm:$0xff]   ;;  %v4851_v44 = vpack.c.bf16 %v4757_v63, %v4754_v62 }
  0x24   : > { %3914 = vmatpush3.bf16.msra.mxu0 %v4435_v28  ;;  %3755 = vmatprep.subr.bf16.mxu1 %v4436_v33  ;;  %304 = vst [vmem:[#allocation2 + $0xf1] sm:$0xff] %v4708_v47  ;;  %305 = vst [vmem:[#allocation2 + $0xf9] sm:$0xff] %v4711_v48  ;;  %v1784_v7 = vld [vmem:[#allocation2 + $0x1a] sm:$0xff]  ;;  %v1785_v8 = vld [vmem:[#allocation2 + $0x22] sm:$0xff] }
  0x25   : > { %3947 = vmatprep.subr.bf16.mxu0 %v4437_v34  ;;  %306 = vst [vmem:[#allocation2 + $0x109] sm:$0xff] %v4716_v50  ;;  %307 = vst [vmem:[#allocation2 + $0x111] sm:$0xff] %v4719_v51  ;;  %v4452_v9 = vld [vmem:[%s5247_s1 + $0x30] sm:$0xff]   ;;  %v4785_v11 = vpack.c.bf16 %v1785_v8, %v1784_v7  ;;  %v4447_v12 = vld [vmem:[%s5247_s1 + $0x178] sm:$0xff]  }
  0x26   : > { %3724 = vmatmul.mubr.bf16.vlgmr.msra.gmra.mrb[0].mxu1 %v1510_v18  ;;  %308 = vst [vmem:[#allocation2 + $0x121] sm:$0xff] %v4730_v55  ;;  %309 = vst [vmem:[#allocation2 + $0x129] sm:$0xff] %v4733_v56  ;;  %v4454_v13 = vld [vmem:[%s5247_s1 + $0x38] sm:$0xff]   ;;  %v4449_v16 = vld [vmem:[%s5247_s1 + $0x180] sm:$0xff]  }
  0x27   : > { %3916 = vmatmul.mubr.bf16.vlgmr.msra.gmra.mrb[0].mxu0 %v1511_v37  ;;  %3756 = vmatpush3.bf16.msra.mxu1 %v4436_v33  ;;  %310 = vst [vmem:[#allocation2 + $0x139] sm:$0xff] %v4738_v57  ;;  %311 = vst [vmem:[#allocation2 + $0x141] sm:$0xff] %v4741_v58  ;;  %v1786_v14 = vld [vmem:[#allocation2 + $0x32] sm:$0xff]  ;;  %v1787_v15 = vld [vmem:[#allocation2 + $0x3a] sm:$0xff] }
  0x28   : > { %3948 = vmatpush3.bf16.msra.mxu0 %v4437_v34  ;;  %3727 = vmatprep.mubr.bf16.mxu1 %v1511_v37  ;;  %312 = vst [vmem:[#allocation2 + $0x151] sm:$0xff] %v4754_v62  ;;  %313 = vst [vmem:[#allocation2 + $0x159] sm:$0xff] %v4757_v63  ;;  %v1788_v17 = vld [vmem:[#allocation2 + $0x4a] sm:$0xff]  ;;  %v1789_v18 = vld [vmem:[#allocation2 + $0x52] sm:$0xff]  ;;  %v4804_v21 = vpack.c.bf16 %v1787_v15, %v1786_v14  ;;  %v427_v34 = vpack.c.bf16 %v4733_v56, %v4730_v55 }
  0x29   : > { %3949 = vmatprep.subr.bf16.mxu0 %v4438_v40  ;;  %3919 = vmatprep.mubr.bf16.mxu0 %v1512_v41  ;;  %314 = vst [vmem:[#allocation2 + $0x169] sm:$0xff] %v4767_v3  ;;  %315 = vst [vmem:[#allocation2 + $0x171] sm:$0xff] %v4770_v4  ;;  %v4802_v20 = vld [vmem:[%s5247_s1 + $0x80] sm:$0xff]   ;;  %v4808_v23 = vpack.c.bf16 %v1789_v18, %v1788_v17  ;;  %v4451_v24 = vld [vmem:[%s5247_s1 + $0x188] sm:$0xff]  }
  0x2a   : > { %3757 = vmatprep.subr.bf16.mxu1 %v4439_v42  ;;  %v1790_v25 = vld [vmem:[#allocation2 + $0x62] sm:$0xff]  ;;  %v1791_v26 = vld [vmem:[#allocation2 + $0x6a] sm:$0xff]  ;;  %v1792_v27 = vld [vmem:[#allocation2 + $0x7a] sm:$0xff] }
  0x2b   : > { %3758 = vmatpush3.bf16.msra.mxu1 %v4439_v42  ;;  %v1793_v28 = vld [vmem:[#allocation2 + $0x82] sm:$0xff]  ;;  %v4453_v29 = vld [vmem:[%s5247_s1 + $0x190] sm:$0xff]   ;;  %v4823_v31 = vld [vmem:[%s4627_s14 + $0xf8] sm:$0xff]  ;;  %v4829_v33 = vpack.c.bf16 %v1791_v26, %v1790_v25  ;;  %v4845_v42 = vpack.c.bf16 %v4741_v58, %v4738_v57 }
  0x2c   : > { %3950 = vmatpush3.bf16.msra.mxu0 %v4438_v40  ;;  %3759 = vmatprep.subr.bf16.mxu1 %v4442_v45  ;;  %v4820_v30 = vld [vmem:[%s4627_s14 + $0xf0] sm:$0xff]  ;;  %317 = vst [vmem:[#allocation2 + $0x189] sm:$0xff] %v4823_v31  ;;  %v4833_v35 = vpack.c.bf16 %v1793_v28, %v1792_v27  ;;  %v4455_v36 = vld [vmem:[%s5247_s1 + $0x198] sm:$0xff]   ;;  %v1798_v47 = vld [vmem:[#allocation2 + $0xc2] sm:$0xff] }
  0x2d   : > { %3951 = vmatprep.subr.bf16.mxu0 %v4440_v46  ;;  %316 = vst [vmem:[#allocation2 + $0x181] sm:$0xff] %v4820_v30  ;;  %v1794_v37 = vld [vmem:[#allocation2 + $0x92] sm:$0xff]  ;;  %v1795_v38 = vld [vmem:[#allocation2 + $0x9a] sm:$0xff]  ;;  %v1796_v39 = vld [vmem:[#allocation2 + $0xaa] sm:$0xff] }
  0x2e   : > { %3728 = vmatmul.mubr.bf16.gmra.mrb[4].mxu1 %v1512_v41  ;;  %v1797_v40 = vld [vmem:[#allocation2 + $0xb2] sm:$0xff]  ;;  %v4457_v41 = vld [vmem:[%s5247_s1 + $0x1a0] sm:$0xff]   ;;  %v4847_v43 = vpack.c.bf16 %v1795_v38, %v1794_v37  ;;  %v1799_v48 = vld [vmem:[#allocation2 + $0xca] sm:$0xff] }
  0x2f   : > { %3920 = vmatmul.mubr.bf16.gmra.mrb[4].mxu0 %v1513_v49  ;;  %3731 = vmatprep.mubr.bf16.mxu1 %v1513_v49  ;;  %v319_v49 = vld [vmem:[#allocation2] sm:$0xff]  ;;  %v321_v57 = vld [vmem:[#allocation2 + $0x18] sm:$0xff]  ;;  %v323_v62 = vld [vmem:[#allocation2 + $0x30] sm:$0xff] }
  0x30   : > { %3952 = vmatpush3.bf16.msra.mxu0 %v4440_v46  ;;  %3923 = vmatprep.mubr.bf16.mxu0 %v1514_v52  ;;  %v4459_v46 = vld [vmem:[%s5247_s1 + $0x1a8] sm:$0xff]   ;;  %v1800_v50 = vld [vmem:[#allocation2 + $0xda] sm:$0xff]  ;;  %v351_v55 = vpack.c.bf16 %v4509_v2, %v319_v49  ;;  %v326_v8 = vld [vmem:[#allocation2 + $0x50] sm:$0xff] }
  0x31   : > { %3953 = vmatprep.subr.bf16.mxu0 %v4441_v53  ;;  %3760 = vmatpush3.bf16.msra.mxu1 %v4442_v45  ;;  %v4853_v45 = vpack.c.bf16 %v1797_v40, %v1796_v39  ;;  %v1801_v51 = vld [vmem:[#allocation2 + $0xe2] sm:$0xff]  ;;  %v324_v63 = vld [vmem:[#allocation2 + $0x38] sm:$0xff]  ;;  %v1804_v2 = vld [vmem:[#allocation2 + $0x10a] sm:$0xff] }
  0x32   : > { %3761 = vmatprep.subr.bf16.mxu1 %v4445_v54  ;;  %v4872_v56 = vpack.c.bf16 %v1801_v51, %v1800_v50  ;;  %v322_v58 = vld [vmem:[#allocation2 + $0x20] sm:$0xff]  ;;  %v325_v7 = vld [vmem:[#allocation2 + $0x48] sm:$0xff]  ;;  %v4462_v25 = vld [vmem:[%s5247_s1 + $0x98] sm:$0xff]   ;;  %v2443_v50 = vpack.c.bf16 %v4823_v31, %v4820_v30 }
  0x33   : > { %v328_v14 = vld [vmem:[#allocation2 + $0x68] sm:$0xff]  ;;  %v1808_v15 = vld [vmem:[#allocation2 + $0x13a] sm:$0xff]  ;;  %v4905_v18 = vpack.c.bf16 %v326_v8, %v325_v7  ;;  %v1810_v27 = vld [vmem:[#allocation2 + $0x152] sm:$0xff] }
  0x34   : > { %3954 = vmatpush3.bf16.msra.mxu0 %v4441_v53  ;;  %v4867_v53 = vpack.c.bf16 %v4770_v4, %v4767_v3  ;;  %v4885_v3 = vpack.c.bf16 %v322_v58, %v321_v57  ;;  %v1809_v17 = vld [vmem:[#allocation2 + $0x142] sm:$0xff]  ;;  %v1811_v28 = vld [vmem:[#allocation2 + $0x15a] sm:$0xff]  ;;  %v4468_v57 = vld [vmem:[%s5247_s1 + $0xb0] sm:$0xff]  }
  0x35   : > { %3955 = vmatprep.subr.bf16.mxu0 %v4443_v59  ;;  %3762 = vmatpush3.bf16.msra.mxu1 %v4445_v54  ;;  %v4869_v54 = vpack.c.bf16 %v1799_v48, %v1798_v47  ;;  %v330_v26 = vld [vmem:[#allocation2 + $0x80] sm:$0xff]  ;;  %v4925_v39 = vpack.c.bf16 %v1811_v28, %v1810_v27  ;;  %v333_v47 = vld [vmem:[#allocation2 + $0xa8] sm:$0xff]  ;;  %v334_v48 = vld [vmem:[#allocation2 + $0xb0] sm:$0xff] }
  0x36   : > { %3732 = vmatmul.mubr.bf16.gmra.mrb[8].mxu1 %v1514_v52  ;;  %3763 = vmatprep.subr.bf16.mxu1 %v4448_v60  ;;  %v4461_v52 = vld [vmem:[%s5247_s1 + $0x1b0] sm:$0xff]   ;;  %v4464_v37 = vld [vmem:[%s5247_s1 + $0xa0] sm:$0xff]   ;;  %v4943_v58 = vpack.c.bf16 %v334_v48, %v333_v47  ;;  %v348_v28 = vld [vmem:[#allocation2 + $0x158] sm:$0xff] }
  0x37   : > { %3924 = vmatmul.mubr.bf16.gmra.mrb[8].mxu0 %v1515_v61  ;;  %3735 = vmatprep.mubr.bf16.mxu1 %v1515_v61  ;;  %v1803_v61 = vld [vmem:[#allocation2 + $0xfa] sm:$0xff]  ;;  %v1814_v51 = vld [vmem:[#allocation2 + $0x182] sm:$0xff]  ;;  %v347_v27 = vld [vmem:[#allocation2 + $0x150] sm:$0xff] }
  0x38   : > { %3956 = vmatpush3.bf16.msra.mxu0 %v4443_v59  ;;  %3927 = vmatprep.mubr.bf16.mxu0 %v1516_v1  ;;  %v4463_v59 = vld [vmem:[%s5247_s1 + $0x1b8] sm:$0xff]   ;;  %v335_v49 = vld [vmem:[#allocation2 + $0xc0] sm:$0xff]  ;;  %v867_v48 = vld [vmem:[#allocation2 + $0xa] sm:$0xff] }
  0x39   : > { %3957 = vmatprep.subr.bf16.mxu0 %v4444_v0  ;;  %3764 = vmatpush3.bf16.msra.mxu1 %v4448_v60  ;;  %v1802_v60 = vld [vmem:[#allocation2 + $0xf2] sm:$0xff]  ;;  %v4956_v7 = vld [vmem:[%s5247_s1 + $0xc0] sm:$0xff]   ;;  %v2705_v30 = vld [vmem:[#allocation2 + $0x4a] sm:$0xff] }
  0x3a   : > { %3765 = vmatprep.subr.bf16.mxu1 %v4450_v5  ;;  %v4887_v4 = vpack.c.bf16 %v1803_v61, %v1802_v60  ;;  %v4470_v61 = vld [vmem:[%s5247_s1 + $0xb8] sm:$0xff]   ;;  %v866_v47 = vld [vmem:[#allocation2 + $0x2] sm:$0xff] }
  0x3b   : > { %v2706_v31 = vld [vmem:[#allocation2 + $0x52] sm:$0xff] }
  0x3c   : > { %3958 = vmatpush3.bf16.msra.mxu0 %v4444_v0  ;;  %v1805_v0 = vld [vmem:[#allocation2 + $0x112] sm:$0xff] }
  0x3d   : > { %3959 = vmatprep.subr.bf16.mxu0 %v4446_v6  ;;  %3766 = vmatpush3.bf16.msra.mxu1 %v4450_v5  ;;  %v4889_v5 = vpack.c.bf16 %v324_v63, %v323_v62  ;;  %v337_v62 = vld [vmem:[#allocation2 + $0xd8] sm:$0xff]  ;;  %v338_v63 = vld [vmem:[#allocation2 + $0xe0] sm:$0xff] }
  0x3e   : > { %3736 = vmatmul.mubr.bf16.gmra.mrb[12].mxu1 %v1516_v1  ;;  %3767 = vmatprep.subr.bf16.mxu1 %v4452_v9  ;;  %v4883_v1 = vld [vmem:[%s5247_s1 + $0x1c0] sm:$0xff]   ;;  %v4958_v8 = vpack.c.bf16 %v338_v63, %v337_v62  ;;  %v4478_v62 = vld [vmem:[%s5247_s1 + $0xd8] sm:$0xff]  }
  0x3f   : > { %3928 = vmatmul.mubr.bf16.gmra.mrb[12].mxu0 %v1517_v10  ;;  %3739 = vmatprep.mubr.bf16.mxu1 %v1517_v10  ;;  %v1806_v10 = vld [vmem:[#allocation2 + $0x122] sm:$0xff] }
  0x40   : > { %3960 = vmatpush3.bf16.msra.mxu0 %v4446_v6  ;;  %3963 = vmatprep.mubr.bf16.mxu0 %v4785_v11  ;;  %v4891_v6 = vpack.c.bf16 %v1805_v0, %v1804_v2  ;;  %v339_v2 = vld [vmem:[#allocation2 + $0xf0] sm:$0xff]  ;;  %v340_v0 = vld [vmem:[#allocation2 + $0xf8] sm:$0xff]  ;;  %v4480_v63 = vld [vmem:[%s5247_s1 + $0xe0] sm:$0xff]  }
  0x41   : > { %3961 = vmatprep.subr.bf16.mxu0 %v4447_v12  ;;  %3768 = vmatpush3.bf16.msra.mxu1 %v4452_v9  ;;  %v4458_v9 = vld [vmem:[%s5247_s1 + $0x88] sm:$0xff]  }
  0x42   : > { %3769 = vmatprep.subr.bf16.mxu1 %v4454_v13 }
  0x44   : > { %3962 = vmatpush3.bf16.msra.mxu0 %v4447_v12  ;;  %v1807_v12 = vld [vmem:[#allocation2 + $0x12a] sm:$0xff] }
  0x45   : > { %3995 = vmatprep.subr.bf16.mxu0 %v4449_v16  ;;  %3770 = vmatpush3.bf16.msra.mxu1 %v4454_v13  ;;  %v327_v13 = vld [vmem:[#allocation2 + $0x60] sm:$0xff] }
  0x46   : > { %3740 = vmatmul.mubr.bf16.gmra.mrb[16].mxu1 %v424_v19  ;;  %3803 = vmatprep.subr.bf16.mxu1 %v4802_v20  ;;  %v4907_v19 = vpack.c.bf16 %v1807_v12, %v1806_v10  ;;  %v4467_v10 = vld [vmem:[%s5247_s1 + $0x1c8] sm:$0xff]  }
  0x47   : > { %3964 = vmatmul.mubr.bf16.vlgmr.msra.gmra.mrb[0].mxu0 %v4804_v21  ;;  %3743 = vmatprep.mubr.bf16.mxu1 %v425_v22  ;;  %v4909_v22 = vpack.c.bf16 %v328_v14, %v327_v13  ;;  %v341_v12 = vld [vmem:[#allocation2 + $0x108] sm:$0xff]  ;;  %v342_v13 = vld [vmem:[#allocation2 + $0x110] sm:$0xff]  ;;  %v343_v14 = vld [vmem:[#allocation2 + $0x120] sm:$0xff] }
  0x48   : > { %3996 = vmatpush3.bf16.msra.mxu0 %v4449_v16  ;;  %3967 = vmatprep.mubr.bf16.mxu0 %v4808_v23  ;;  %v4460_v16 = vld [vmem:[%s5247_s1 + $0x90] sm:$0xff]  }
  0x49   : > { %3997 = vmatprep.subr.bf16.mxu0 %v4451_v24 }
  0x4c   : > { %3998 = vmatpush3.bf16.msra.mxu0 %v4451_v24  ;;  %v329_v24 = vld [vmem:[#allocation2 + $0x78] sm:$0xff] }
  0x4d   : > { %3999 = vmatprep.subr.bf16.mxu0 %v4453_v29  ;;  %v4923_v38 = vpack.c.bf16 %v330_v26, %v329_v24  ;;  %v346_v26 = vld [vmem:[#allocation2 + $0x140] sm:$0xff] }
  0x4e   : > { %3744 = vmatmul.mubr.bf16.gmra.mrb[20].mxu1 %v426_v32  ;;  %v332_v32 = vld [vmem:[#allocation2 + $0x98] sm:$0xff] }
  0x4f   : > { %3968 = vmatmul.mubr.bf16.gmra.mrb[4].mxu0 %v4829_v33  ;;  %3747 = vmatprep.mubr.bf16.mxu1 %v427_v34  ;;  %v1812_v34 = vld [vmem:[#allocation2 + $0x16a] sm:$0xff] }
  0x50   : > { %3971 = vmatprep.mubr.bf16.mxu0 %v4833_v35  ;;  %4000 = vmatpush3.bf16.msra.mxu0 %v4453_v29  ;;  %v331_v29 = vld [vmem:[#allocation2 + $0x90] sm:$0xff] }
  0x51   : > { %4001 = vmatprep.subr.bf16.mxu0 %v4455_v36  ;;  %v4927_v40 = vpack.c.bf16 %v332_v32, %v331_v29  ;;  %v4473_v29 = vld [vmem:[%s5247_s1 + $0x1e0] sm:$0xff]  }
  0x54   : > { %4002 = vmatpush3.bf16.msra.mxu0 %v4455_v36  ;;  %v1813_v36 = vld [vmem:[#allocation2 + $0x172] sm:$0xff] }
  0x55   : > { %4003 = vmatprep.subr.bf16.mxu0 %v4457_v41 }
  0x56   : > { %3748 = vmatmul.mubr.bf16.gmra.mrb[24].mxu1 %v4845_v42 }
  0x57   : > { %3972 = vmatmul.mubr.bf16.gmra.mrb[8].mxu0 %v4847_v43  ;;  %3751 = vmatprep.mubr.bf16.mxu1 %v4851_v44 }
  0x58   : > { %3975 = vmatprep.mubr.bf16.mxu0 %v4853_v45  ;;  %4004 = vmatpush3.bf16.msra.mxu0 %v4457_v41  ;;  %v4929_v41 = vpack.c.bf16 %v1813_v36, %v1812_v34  ;;  %v4990_v34 = vpack.c.bf16 %v348_v28, %v347_v27  ;;  %v4475_v36 = vld [vmem:[%s5247_s1 + $0x1e8] sm:$0xff]  }
  0x59   : > { %4005 = vmatprep.subr.bf16.mxu0 %v4459_v46  ;;  %v4483_v27 = vld [vmem:[%s5247_s1 + $0x208] sm:$0xff]  }
  0x5a   : > { %v2404_v28 = vld [vmem:[#allocation2 + $0x81] sm:$0xff] }
  0x5c   : > { %4006 = vmatpush3.bf16.msra.mxu0 %v4459_v46  ;;  %v4466_v46 = vld [vmem:[%s5247_s1 + $0xa8] sm:$0xff]  }
  0x5d   : > { %4007 = vmatprep.subr.bf16.mxu0 %v4461_v52 }
  0x5e   : > { %3752 = vmatmul.mubr.bf16.gmra.mrb[28].mxu1 %v4867_v53 }
  0x5f   : > { %3976 = vmatmul.mubr.bf16.gmra.mrb[12].mxu0 %v4869_v54  ;;  %3771 = vmatprep.mubr.bf16.mxu1 %v351_v55  ;;  %v336_v55 = vld [vmem:[#allocation2 + $0xc8] sm:$0xff] }
  0x60   : > { %3979 = vmatprep.mubr.bf16.mxu0 %v4872_v56  ;;  %4008 = vmatpush3.bf16.msra.mxu0 %v4461_v52  ;;  %v1815_v52 = vld [vmem:[#allocation2 + $0x18a] sm:$0xff]  ;;  %v4945_v60 = vpack.c.bf16 %v336_v55, %v335_v49  ;;  %v4479_v55 = vld [vmem:[%s5247_s1 + $0x1f8] sm:$0xff]  }
  0x61   : > { %4009 = vmatprep.subr.bf16.mxu0 %v4463_v59  ;;  %v4477_v49 = vld [vmem:[%s5247_s1 + $0x1f0] sm:$0xff]  }
  0x64   : > { %4010 = vmatpush3.bf16.msra.mxu0 %v4463_v59  ;;  %v1831_v59 = vpack.c.bf16 %v1815_v52, %v1814_v51  ;;  %v898_v52 = vpack.c.bf16 %v867_v48, %v866_v47  ;;  %v2408_v48 = vld [vmem:[#allocation2 + $0xb1] sm:$0xff] }
  0x65   : > { %4043 = vmatprep.subr.bf16.mxu0 %v4883_v1 }
  0x66   : > { %3772 = vmatmul.mubr.bf16.vlgmr.msra.gmra.mrb[0].mxu1 %v4885_v3 }
  0x67   : > { %3980 = vmatmul.mubr.bf16.gmra.mrb[16].mxu0 %v4887_v4  ;;  %3804 = vmatpush3.bf16.msra.mxu1 %v4802_v20  ;;  %v4911_v20 = vpack.c.bf16 %v1809_v17, %v1808_v15  ;;  %v344_v15 = vld [vmem:[#allocation2 + $0x128] sm:$0xff]  ;;  %v4974_v17 = vpack.c.bf16 %v342_v13, %v341_v12 }
  0x68   : > { %3775 = vmatprep.mubr.bf16.mxu1 %v4889_v5  ;;  %3983 = vmatprep.mubr.bf16.mxu0 %v4891_v6  ;;  %v4976_v24 = vpack.c.bf16 %v344_v15, %v343_v14  ;;  %v4492_v12 = vld [vmem:[#allocation2 + $0x8] sm:$0xff]  ;;  %v2400_v15 = vld [vmem:[#allocation2 + $0x51] sm:$0xff] }
  0x69   : > { %3805 = vmatprep.subr.bf16.mxu1 %v4458_v9 }
  0x6b   : > { %3806 = vmatpush3.bf16.msra.mxu1 %v4458_v9  ;;  %v4960_v9 = vpack.c.bf16 %v340_v0, %v339_v2  ;;  %v2397_v0 = vld [vmem:[#allocation2 + $0x31] sm:$0xff] }
  0x6c   : > { %3807 = vmatprep.subr.bf16.mxu1 %v4460_v16 }
  0x6e   : > { %3776 = vmatmul.mubr.bf16.gmra.mrb[4].mxu1 %v4905_v18 }
  0x6f   : > { %3984 = vmatmul.mubr.bf16.gmra.mrb[20].mxu0 %v4907_v19  ;;  %3779 = vmatprep.mubr.bf16.mxu1 %v4909_v22 }
  0x70   : > { %3987 = vmatprep.mubr.bf16.mxu0 %v4911_v20  ;;  %3808 = vmatpush3.bf16.msra.mxu1 %v4460_v16  ;;  %v4469_v16 = vld [vmem:[%s5247_s1 + $0x1d0] sm:$0xff]  }
  0x71   : > { %3809 = vmatprep.subr.bf16.mxu1 %v4462_v25 }
  0x74   : > { %3810 = vmatpush3.bf16.msra.mxu1 %v4462_v25  ;;  %v4471_v25 = vld [vmem:[%s5247_s1 + $0x1d8] sm:$0xff]  }
  0x75   : > { %3811 = vmatprep.subr.bf16.mxu1 %v4464_v37 }
  0x76   : > { %3780 = vmatmul.mubr.bf16.gmra.mrb[8].mxu1 %v4923_v38 }
  0x77   : > { %3988 = vmatmul.mubr.bf16.gmra.mrb[24].mxu0 %v4925_v39  ;;  %3783 = vmatprep.mubr.bf16.mxu1 %v4927_v40 }
  0x78   : > { %3991 = vmatprep.mubr.bf16.mxu0 %v4929_v41  ;;  %3812 = vmatpush3.bf16.msra.mxu1 %v4464_v37  ;;  %v349_v37 = vld [vmem:[#allocation2 + $0x168] sm:$0xff] }
  0x79   : > { %3813 = vmatprep.subr.bf16.mxu1 %v4466_v46 }
  0x7c   : > { %3814 = vmatpush3.bf16.msra.mxu1 %v4466_v46  ;;  %v350_v46 = vld [vmem:[#allocation2 + $0x170] sm:$0xff] }
  0x7d   : > { %3815 = vmatprep.subr.bf16.mxu1 %v4468_v57  ;;  %v5002_v51 = vpack.c.bf16 %v350_v46, %v349_v37  ;;  %v4485_v37 = vld [vmem:[%s5247_s1 + $0x210] sm:$0xff]  }
  0x7e   : > { %3784 = vmatmul.mubr.bf16.gmra.mrb[12].mxu1 %v4943_v58 }
  0x7f   : > { %3992 = vmatmul.mubr.bf16.gmra.mrb[28].mxu0 %v1831_v59  ;;  %3787 = vmatprep.mubr.bf16.mxu1 %v4945_v60  ;;  %v4474_v59 = vld [vmem:[%s5247_s1 + $0xc8] sm:$0xff]  }
  0x80   : > { %4011 = vmatprep.mubr.bf16.mxu0 %v4889_v5  ;;  %3816 = vmatpush3.bf16.msra.mxu1 %v4468_v57  ;;  %v4481_v57 = vld [vmem:[%s5247_s1 + $0x200] sm:$0xff]  }
  0x81   : > { %3817 = vmatprep.subr.bf16.mxu1 %v4470_v61 }
  0x84   : > { %3818 = vmatpush3.bf16.msra.mxu1 %v4470_v61  ;;  %v4476_v61 = vld [vmem:[%s5247_s1 + $0xd0] sm:$0xff]  }
  0x85   : > { %3851 = vmatprep.subr.bf16.mxu1 %v4956_v7 }
  0x86   : > { %3788 = vmatmul.mubr.bf16.gmra.mrb[16].mxu1 %v4958_v8 }
  0x87   : > { %4012 = vmatmul.mubr.bf16.vlgmr.msra.gmra.mrb[0].mxu0 %v4905_v18  ;;  %3791 = vmatprep.mubr.bf16.mxu1 %v4960_v9 }
  0x88   : > { %4044 = vmatpush3.bf16.msra.mxu0 %v4883_v1  ;;  %4015 = vmatprep.mubr.bf16.mxu0 %v4909_v22  ;;  %v345_v1 = vld [vmem:[#allocation2 + $0x138] sm:$0xff] }
  0x89   : > { %4045 = vmatprep.subr.bf16.mxu0 %v4467_v10  ;;  %v4988_v32 = vpack.c.bf16 %v346_v26, %v345_v1 }
  0x8c   : > { %4046 = vmatpush3.bf16.msra.mxu0 %v4467_v10  ;;  %v4484_v10 = vld [vmem:[%s5247_s1 + $0xf0] sm:$0xff]  }
  0x8d   : > { %4047 = vmatprep.subr.bf16.mxu0 %v4469_v16 }
  0x8e   : > { %3792 = vmatmul.mubr.bf16.gmra.mrb[20].mxu1 %v4974_v17 }
  0x8f   : > { %4016 = vmatmul.mubr.bf16.gmra.mrb[4].mxu0 %v4923_v38  ;;  %3795 = vmatprep.mubr.bf16.mxu1 %v4976_v24 }
  0x90   : > { %4019 = vmatprep.mubr.bf16.mxu0 %v4927_v40  ;;  %4048 = vmatpush3.bf16.msra.mxu0 %v4469_v16  ;;  %v2401_v16 = vld [vmem:[#allocation2 + $0x61] sm:$0xff] }
  0x91   : > { %4049 = vmatprep.subr.bf16.mxu0 %v4471_v25 }
  0x94   : > { %4050 = vmatpush3.bf16.msra.mxu0 %v4471_v25  ;;  %v2402_v25 = vld [vmem:[#allocation2 + $0x69] sm:$0xff] }
  0x95   : > { %4051 = vmatprep.subr.bf16.mxu0 %v4473_v29  ;;  %v2431_v26 = vpack.c.bf16 %v2402_v25, %v2401_v16  ;;  %v2711_v16 = vld [vmem:[#allocation2 + $0x92] sm:$0xff]  ;;  %v2712_v25 = vld [vmem:[#allocation2 + $0x9a] sm:$0xff] }
  0x96   : > { %3796 = vmatmul.mubr.bf16.gmra.mrb[24].mxu1 %v4988_v32 }
  0x97   : > { %4020 = vmatmul.mubr.bf16.gmra.mrb[8].mxu0 %v4943_v58  ;;  %3799 = vmatprep.mubr.bf16.mxu1 %v4990_v34 }
  0x98   : > { %4023 = vmatprep.mubr.bf16.mxu0 %v4945_v60  ;;  %4052 = vmatpush3.bf16.msra.mxu0 %v4473_v29  ;;  %v2405_v29 = vld [vmem:[#allocation2 + $0x91] sm:$0xff] }
  0x99   : > { %4053 = vmatprep.subr.bf16.mxu0 %v4475_v36 }
  0x9c   : > { %4054 = vmatpush3.bf16.msra.mxu0 %v4475_v36  ;;  %v2406_v36 = vld [vmem:[#allocation2 + $0x99] sm:$0xff] }
  0x9d   : > { %4055 = vmatprep.subr.bf16.mxu0 %v4477_v49  ;;  %v2433_v47 = vpack.c.bf16 %v2406_v36, %v2405_v29  ;;  %v2718_v36 = vld [vmem:[#allocation2 + $0xe2] sm:$0xff] }
  0x9e   : > { %3800 = vmatmul.mubr.bf16.gmra.mrb[28].mxu1 %v5002_v51 }
  0x9f   : > { %4024 = vmatmul.mubr.bf16.gmra.mrb[12].mxu0 %v4958_v8  ;;  %3819 = vmatprep.mubr.bf16.mxu1 %v898_v52  ;;  %v2410_v52 = vld [vmem:[#allocation2 + $0xc9] sm:$0xff] }
  0xa0   : > { %4027 = vmatprep.mubr.bf16.mxu0 %v4960_v9  ;;  %4056 = vmatpush3.bf16.msra.mxu0 %v4477_v49  ;;  %v2409_v49 = vld [vmem:[#allocation2 + $0xc1] sm:$0xff] }
  0xa1   : > { %4057 = vmatprep.subr.bf16.mxu0 %v4479_v55 }
  0xa4   : > { %4058 = vmatpush3.bf16.msra.mxu0 %v4479_v55  ;;  %v4488_v55 = vld [vmem:[%s5247_s1 + $0x220] sm:$0xff]  }
  0xa5   : > { %4091 = vmatprep.subr.bf16.mxu0 %v4481_v57 }
  0xa6   : > { %3820 = vmatmul.mubr.bf16.vlgmr.msra.gmra.mrb[0].mxu1 %v4785_v11  ;;  %v2119_v11 = vld [vmem:[#allocation2 + $0x180] sm:$0xff] }
  0xa7   : > { %4028 = vmatmul.mubr.bf16.gmra.mrb[16].mxu0 %v4974_v17  ;;  %3852 = vmatpush3.bf16.msra.mxu1 %v4956_v7  ;;  %v2398_v7 = vld [vmem:[#allocation2 + $0x39] sm:$0xff] }
  0xa8   : > { %3823 = vmatprep.mubr.bf16.mxu1 %v4804_v21  ;;  %4031 = vmatprep.mubr.bf16.mxu0 %v4976_v24  ;;  %v2120_v21 = vld [vmem:[#allocation2 + $0x188] sm:$0xff]  ;;  %v2429_v14 = vpack.c.bf16 %v2398_v7, %v2397_v0 }
  0xa9   : > { %3853 = vmatprep.subr.bf16.mxu1 %v4474_v59  ;;  %v5034_v2 = vpack.c.bf16 %v2120_v21, %v2119_v11  ;;  %v2414_v11 = vld [vmem:[#allocation2 + $0xf9] sm:$0xff]  ;;  %v4490_v21 = vld [vmem:[%s5247_s1 + $0x230] sm:$0xff]   ;;  %v2417_v0 = vld [vmem:[#allocation2 + $0x121] sm:$0xff] }
  0xaa   : > { %v2418_v7 = vld [vmem:[#allocation2 + $0x129] sm:$0xff] }
  0xab   : > { %3854 = vmatpush3.bf16.msra.mxu1 %v4474_v59  ;;  %v2435_v59 = vpack.c.bf16 %v2410_v52, %v2409_v49  ;;  %v2726_v52 = vld [vmem:[#allocation2 + $0x142] sm:$0xff] }
  0xac   : > { %3855 = vmatprep.subr.bf16.mxu1 %v4476_v61 }
  0xae   : > { %3824 = vmatmul.mubr.bf16.gmra.mrb[4].mxu1 %v4808_v23  ;;  %v4482_v23 = vld [vmem:[%s5247_s1 + $0xe8] sm:$0xff]  }
  0xaf   : > { %4032 = vmatmul.mubr.bf16.gmra.mrb[20].mxu0 %v4988_v32  ;;  %3827 = vmatprep.mubr.bf16.mxu1 %v4829_v33  ;;  %v2121_v33 = vld [vmem:[#allocation2 + $0x198] sm:$0xff] }
  0xb0   : > { %4035 = vmatprep.mubr.bf16.mxu0 %v4990_v34  ;;  %3856 = vmatpush3.bf16.msra.mxu1 %v4476_v61  ;;  %v2138_v13 = vpack.c.bf16 %v4492_v12, %v2121_v33  ;;  %v2412_v61 = vld [vmem:[#allocation2 + $0xe1] sm:$0xff]  ;;  %v2416_v33 = vld [vmem:[#allocation2 + $0x111] sm:$0xff]  ;;  %v5094_v12 = vpack.c.bf16 %v2418_v7, %v2417_v0 }
  0xb1   : > { %3857 = vmatprep.subr.bf16.mxu1 %v4478_v62 }
  0xb4   : > { %3858 = vmatpush3.bf16.msra.mxu1 %v4478_v62  ;;  %v2413_v62 = vld [vmem:[#allocation2 + $0xf1] sm:$0xff] }
  0xb5   : > { %3859 = vmatprep.subr.bf16.mxu1 %v4480_v63 }
  0xb6   : > { %3828 = vmatmul.mubr.bf16.gmra.mrb[8].mxu1 %v4833_v35  ;;  %v4486_v35 = vld [vmem:[%s5247_s1 + $0xf8] sm:$0xff]  }
  0xb7   : > { %4036 = vmatmul.mubr.bf16.gmra.mrb[24].mxu0 %v5002_v51  ;;  %3831 = vmatprep.mubr.bf16.mxu1 %v4847_v43  ;;  %v2399_v43 = vld [vmem:[#allocation2 + $0x49] sm:$0xff] }
  0xb8   : > { %4039 = vmatprep.mubr.bf16.mxu0 %v5034_v2  ;;  %3860 = vmatpush3.bf16.msra.mxu1 %v4480_v63  ;;  %v2430_v1 = vpack.c.bf16 %v2400_v15, %v2399_v43  ;;  %v2736_v43 = vpack.c.bf16 %v2706_v31, %v2705_v30 }
  0xb9   : > { %3861 = vmatprep.subr.bf16.mxu1 %v4482_v23 }
  0xbc   : > { %3862 = vmatpush3.bf16.msra.mxu1 %v4482_v23  ;;  %v5083_v23 = vpack.c.bf16 %v2414_v11, %v2413_v62  ;;  %v1504_v62 = vld [vmem:[#allocation2 + $0x151] sm:$0xff]  ;;  %v1505_v11 = vld [vmem:[#allocation2 + $0x159] sm:$0xff] }
  0xbd   : > { %3863 = vmatprep.subr.bf16.mxu1 %v4484_v10  ;;  %v1523_v0 = vpack.c.bf16 %v1505_v11, %v1504_v62 }
  0xbe   : > { %3832 = vmatmul.mubr.bf16.gmra.mrb[12].mxu1 %v4853_v45  ;;  %v5057_v45 = vld [vmem:[%s5247_s1 + $0x100] sm:$0xff]  }
  0xbf   : > { %4040 = vmatmul.mubr.bf16.gmra.mrb[28].mxu0 %v2138_v13  ;;  %3835 = vmatprep.mubr.bf16.mxu1 %v4869_v54  ;;  %v2403_v54 = vld [vmem:[#allocation2 + $0x79] sm:$0xff]  ;;  %v4498_v13 = vld [vmem:[%s5247_s1 + $0x128] sm:$0xff]  }
  0xc0   : > { %4059 = vmatprep.mubr.bf16.mxu0 %v2429_v14  ;;  %3864 = vmatpush3.bf16.msra.mxu1 %v4484_v10  ;;  %v2432_v46 = vpack.c.bf16 %v2404_v28, %v2403_v54  ;;  %v2715_v54 = vld [vmem:[#allocation2 + $0xc2] sm:$0xff] }
  0xc1   : > { %3865 = vmatprep.subr.bf16.mxu1 %v4486_v35 }
  0xc4   : > { %3866 = vmatpush3.bf16.msra.mxu1 %v4486_v35  ;;  %v4500_v35 = vld [vmem:[%s5247_s1 + $0x138] sm:$0xff]  }
  0xc5   : > { %4139 = vmatprep.subr.bf16.mxu1 %v5057_v45 }
  0xc6   : > { %3836 = vmatmul.mubr.bf16.gmra.mrb[16].mxu1 %v4872_v56  ;;  %v4487_v56 = vld [vmem:[%s5247_s1 + $0x218] sm:$0xff]  }
  0xc7   : > { %4060 = vmatmul.mubr.bf16.vlgmr.msra.gmra.mrb[0].mxu0 %v2430_v1  ;;  %3839 = vmatprep.mubr.bf16.mxu1 %v4887_v4  ;;  %v2407_v4 = vld [vmem:[#allocation2 + $0xa9] sm:$0xff] }
  0xc8   : > { %4092 = vmatpush3.bf16.msra.mxu0 %v4481_v57  ;;  %4063 = vmatprep.mubr.bf16.mxu0 %v2431_v26  ;;  %v2434_v57 = vpack.c.bf16 %v2408_v48, %v2407_v4  ;;  %v2739_v26 = vpack.c.bf16 %v2712_v25, %v2711_v16  ;;  %v2723_v4 = vld [vmem:[#allocation2 + $0x122] sm:$0xff]  ;;  %v5160_v25 = vld [vmem:[%s5248_s2] ss:$0 sm:$0xff] }
  0xc9   : > { %4093 = vmatprep.subr.bf16.mxu0 %v4483_v27 }
  0xcc   : > { %4094 = vmatpush3.bf16.msra.mxu0 %v4483_v27  ;;  %v2713_v27 = vld [vmem:[#allocation2 + $0xaa] sm:$0xff] }
  0xcd   : > { %4095 = vmatprep.subr.bf16.mxu0 %v4485_v37 }
  0xce   : > { %3840 = vmatmul.mubr.bf16.gmra.mrb[20].mxu1 %v4891_v6  ;;  %v4489_v6 = vld [vmem:[%s5247_s1 + $0x228] sm:$0xff]  }
  0xcf   : > { %4064 = vmatmul.mubr.bf16.gmra.mrb[4].mxu0 %v2432_v46  ;;  %3843 = vmatprep.mubr.bf16.mxu1 %v4907_v19  ;;  %v2411_v19 = vld [vmem:[#allocation2 + $0xd9] sm:$0xff] }
  0xd0   : > { %4067 = vmatprep.mubr.bf16.mxu0 %v2433_v47  ;;  %4096 = vmatpush3.bf16.msra.mxu0 %v4485_v37  ;;  %v5081_v63 = vpack.c.bf16 %v2412_v61, %v2411_v19  ;;  %v2719_v37 = vld [vmem:[#allocation2 + $0xf2] sm:$0xff] }
  0xd1   : > { %4097 = vmatprep.subr.bf16.mxu0 %v4487_v56 }
  0xd4   : > { %4098 = vmatpush3.bf16.msra.mxu0 %v4487_v56  ;;  %v2722_v56 = vld [vmem:[#allocation2 + $0x112] sm:$0xff] }
  0xd5   : > { %4099 = vmatprep.subr.bf16.mxu0 %v4488_v55 }
  0xd6   : > { %3844 = vmatmul.mubr.bf16.gmra.mrb[24].mxu1 %v4911_v20  ;;  %v4491_v20 = vld [vmem:[%s5247_s1 + $0x238] sm:$0xff]  }
  0xd7   : > { %4068 = vmatmul.mubr.bf16.gmra.mrb[8].mxu0 %v2434_v57  ;;  %3847 = vmatprep.mubr.bf16.mxu1 %v4925_v39  ;;  %v2415_v39 = vld [vmem:[#allocation2 + $0x109] sm:$0xff]  ;;  %v2727_v57 = vld [vmem:[#allocation2 + $0x152] sm:$0xff] }
  0xd8   : > { %4071 = vmatprep.mubr.bf16.mxu0 %v2435_v59  ;;  %4100 = vmatpush3.bf16.msra.mxu0 %v4488_v55  ;;  %v5092_v10 = vpack.c.bf16 %v2416_v33, %v2415_v39  ;;  %v1502_v55 = vld [vmem:[#allocation2 + $0x139] sm:$0xff]  ;;  %v2731_v39 = vld [vmem:[#allocation2 + $0x182] sm:$0xff]  ;;  %v2732_v33 = vld [vmem:[#allocation2 + $0x18a] sm:$0xff] }
  0xd9   : > { %4101 = vmatprep.subr.bf16.mxu0 %v4489_v6  ;;  %v2728_v59 = vld [vmem:[#allocation2 + $0x15a] sm:$0xff] }
  0xda   : > { %v2747_v61 = vpack.c.bf16 %v2728_v59, %v2727_v57 }
  0xdc   : > { %4102 = vmatpush3.bf16.msra.mxu0 %v4489_v6 }
  0xdd   : > { %4103 = vmatprep.subr.bf16.mxu0 %v4490_v21 }
  0xde   : > { %3848 = vmatmul.mubr.bf16.gmra.mrb[28].mxu1 %v4929_v41  ;;  %v4495_v41 = vld [vmem:[%s5247_s1 + $0x110] sm:$0xff]  }
  0xdf   : > { %4072 = vmatmul.mubr.bf16.gmra.mrb[12].mxu0 %v5081_v63  ;;  %3867 = vmatprep.mubr.bf16.mxu1 %v4885_v3  ;;  %v4494_v3 = vld [vmem:[%s5247_s1 + $0x108] sm:$0xff]  }
  0xe0   : > { %4075 = vmatprep.mubr.bf16.mxu0 %v5083_v23  ;;  %4104 = vmatpush3.bf16.msra.mxu0 %v4490_v21  ;;  %v2729_v21 = vld [vmem:[#allocation2 + $0x16a] sm:$0xff] }
  0xe1   : > { %4105 = vmatprep.subr.bf16.mxu0 %v4491_v20 }
  0xe4   : > { %4106 = vmatpush3.bf16.msra.mxu0 %v4491_v20  ;;  %v1507_v20 = vld [vmem:[#allocation2 + $0x171] sm:$0xff] }
  0xe6   : > { %3868 = vmatmul.mubr.bf16.vlgmr.msra.gmra.mrb[0].mxu1 %v4889_v5  ;;  %v4496_v5 = vld [vmem:[%s5247_s1 + $0x118] sm:$0xff]  }
  0xe7   : > { %4076 = vmatmul.mubr.bf16.gmra.mrb[16].mxu0 %v5092_v10  ;;  %4147 = vmatpush3.bf16.msra.mxu1 %v5057_v45  ;;  %v2714_v45 = vld [vmem:[#allocation2 + $0xb2] sm:$0xff] }
  0xe8   : > { %3871 = vmatprep.mubr.bf16.mxu1 %v4905_v18  ;;  %4079 = vmatprep.mubr.bf16.mxu0 %v5094_v12  ;;  %v4497_v18 = vld [vmem:[%s5247_s1 + $0x120] sm:$0xff]   ;;  %v2740_v28 = vpack.c.bf16 %v2714_v45, %v2713_v27 }
  0xe9   : > { %4140 = vmatprep.subr.bf16.mxu1 %v4494_v3 }
  0xeb   : > { %4148 = vmatpush3.bf16.msra.mxu1 %v4494_v3  ;;  %v2749_v3 = vpack.c.bf16 %v2732_v33, %v2731_v39 }
  0xec   : > { %4141 = vmatprep.subr.bf16.mxu1 %v4495_v41 }
  0xee   : > { %3872 = vmatmul.mubr.bf16.gmra.mrb[4].mxu1 %v4909_v22  ;;  %v2703_v22 = vld [vmem:[#allocation2 + $0x32] sm:$0xff] }
  0xef   : > { %4080 = vmatmul.mubr.bf16.gmra.mrb[20].mxu0 %v4845_v42  ;;  %3875 = vmatprep.mubr.bf16.mxu1 %v4923_v38  ;;  %v2427_v42 = vld [vmem:[#allocation2 + $0x199] sm:$0xff] }
  0xf0   : > { %4083 = vmatprep.mubr.bf16.mxu0 %v4851_v44  ;;  %4149 = vmatpush3.bf16.msra.mxu1 %v4495_v41  ;;  %v2428_v44 = vld [vmem:[#allocation2 + $0x1a1] sm:$0xff] }
  0xf1   : > { %4142 = vmatprep.subr.bf16.mxu1 %v4496_v5  ;;  %v2704_v38 = vld [vmem:[#allocation2 + $0x3a] sm:$0xff]  ;;  %v2444_v14 = vpack.c.bf16 %v2428_v44, %v2427_v42 }
  0xf2   : > { %v1508_v41 = vld [vmem:[#allocation2 + $0x181] sm:$0xff] }
  0xf4   : > { %4150 = vmatpush3.bf16.msra.mxu1 %v4496_v5  ;;  %v2733_v5 = vld [vmem:[#allocation2 + $0x19a] sm:$0xff] }
  0xf5   : > { %4143 = vmatprep.subr.bf16.mxu1 %v4497_v18 }
  0xf6   : > { %3876 = vmatmul.mubr.bf16.gmra.mrb[8].mxu1 %v4927_v40  ;;  %v2735_v40 = vpack.c.bf16 %v2704_v38, %v2703_v22 }
  0xf7   : > { %4084 = vmatmul.mubr.bf16.gmra.mrb[24].mxu0 %v4867_v53  ;;  %3879 = vmatprep.mubr.bf16.mxu1 %v4943_v58  ;;  %v4499_v53 = vld [vmem:[%s5247_s1 + $0x130] sm:$0xff]  }
  0xf8   : > { %4087 = vmatprep.mubr.bf16.mxu0 %v2443_v50  ;;  %4151 = vmatpush3.bf16.msra.mxu1 %v4497_v18  ;;  %v2707_v50 = vld [vmem:[#allocation2 + $0x62] sm:$0xff]  ;;  %v2708_v58 = vld [vmem:[#allocation2 + $0x6a] sm:$0xff] }
  0xf9   : > { %4144 = vmatprep.subr.bf16.mxu1 %v4498_v13  ;;  %v2737_v15 = vpack.c.bf16 %v2708_v58, %v2707_v50  ;;  %v2734_v18 = vld [vmem:[#allocation2 + $0x1a2] sm:$0xff] }
  0xfa   : > { %v2750_v44 = vpack.c.bf16 %v2734_v18, %v2733_v5 }
  0xfc   : > { %4152 = vmatpush3.bf16.msra.mxu1 %v4498_v13 }
  0xfd   : > { %4145 = vmatprep.subr.bf16.mxu1 %v4499_v53 }
  0xfe   : > { %3880 = vmatmul.mubr.bf16.gmra.mrb[12].mxu1 %v4945_v60  ;;  %v2709_v60 = vld [vmem:[#allocation2 + $0x7a] sm:$0xff] }
  0xff   : > { %4088 = vmatmul.mubr.bf16.gmra.mrb[28].mxu0 %v2444_v14  ;;  %3883 = vmatprep.mubr.bf16.mxu1 %v4958_v8  ;;  %v2710_v8 = vld [vmem:[#allocation2 + $0x82] sm:$0xff] }
 0x100   : > { %4107 = vmatprep.mubr.bf16.mxu0 %v2735_v40  ;;  %4153 = vmatpush3.bf16.msra.mxu1 %v4499_v53  ;;  %v2738_v1 = vpack.c.bf16 %v2710_v8, %v2709_v60 }
 0x101   : > { %4146 = vmatprep.subr.bf16.mxu1 %v4500_v35 }
 0x104   : > { %4154 = vmatpush3.bf16.msra.mxu1 %v4500_v35 }
 0x106   : > { %3884 = vmatmul.mubr.bf16.gmra.mrb[16].mxu1 %v4960_v9  ;;  %v2716_v9 = vld [vmem:[#allocation2 + $0xca] sm:$0xff] }
 0x107   : > { %4108 = vmatmul.mubr.bf16.vlgmr.msra.gmra.mrb[0].mxu0 %v2736_v43  ;;  %3887 = vmatprep.mubr.bf16.mxu1 %v4974_v17  ;;  %v2741_v29 = vpack.c.bf16 %v2716_v9, %v2715_v54  ;;  %v2717_v17 = vld [vmem:[#allocation2 + $0xda] sm:$0xff] }
 0x108   : > { %4111 = vmatprep.mubr.bf16.mxu0 %v2737_v15  ;;  %v2742_v46 = vpack.c.bf16 %v2718_v36, %v2717_v17 }
 0x10e   : > { %3888 = vmatmul.mubr.bf16.gmra.mrb[20].mxu1 %v4976_v24  ;;  %v2720_v24 = vld [vmem:[#allocation2 + $0xfa] sm:$0xff] }
 0x10f   : > { %4112 = vmatmul.mubr.bf16.gmra.mrb[4].mxu0 %v2738_v1  ;;  %3891 = vmatprep.mubr.bf16.mxu1 %v4988_v32  ;;  %v2743_v47 = vpack.c.bf16 %v2720_v24, %v2719_v37  ;;  %v2721_v32 = vld [vmem:[#allocation2 + $0x10a] sm:$0xff] }
 0x110   : > { %4115 = vmatprep.mubr.bf16.mxu0 %v2739_v26  ;;  %v2744_v48 = vpack.c.bf16 %v2722_v56, %v2721_v32 }
 0x116   : > { %3892 = vmatmul.mubr.bf16.gmra.mrb[24].mxu1 %v4990_v34  ;;  %v2724_v34 = vld [vmem:[#allocation2 + $0x12a] sm:$0xff] }
 0x117   : > { %4116 = vmatmul.mubr.bf16.gmra.mrb[8].mxu0 %v2740_v28  ;;  %3895 = vmatprep.mubr.bf16.mxu1 %v5002_v51  ;;  %v2745_v49 = vpack.c.bf16 %v2724_v34, %v2723_v4  ;;  %v2725_v51 = vld [vmem:[#allocation2 + $0x13a] sm:$0xff] }
 0x118   : > { %4119 = vmatprep.mubr.bf16.mxu0 %v2741_v29  ;;  %v2746_v6 = vpack.c.bf16 %v2726_v52, %v2725_v51 }
 0x11e   : > { %3896 = vmatmul.mubr.bf16.gmra.mrb[28].mxu1 %v5034_v2  ;;  %v1503_v2 = vld [vmem:[#allocation2 + $0x141] sm:$0xff] }
 0x11f   : > { %4120 = vmatmul.mubr.bf16.gmra.mrb[12].mxu0 %v2742_v46  ;;  %3931 = vmatprep.mubr.bf16.mxu1 %v5081_v63  ;;  %v1522_v19 = vpack.c.bf16 %v1503_v2, %v1502_v55  ;;  %v2730_v63 = vld [vmem:[#allocation2 + $0x172] sm:$0xff] }
 0x120   : > { %4123 = vmatprep.mubr.bf16.mxu0 %v2743_v47  ;;  %v2748_v7 = vpack.c.bf16 %v2730_v63, %v2729_v21 }
 0x126   : > { %3932 = vmatmul.mubr.bf16.vlgmr.msra.gmra.mrb[16].mxu1 %v5083_v23  ;;  %v1506_v23 = vld [vmem:[#allocation2 + $0x169] sm:$0xff] }
 0x127   : > { %4124 = vmatmul.mubr.bf16.gmra.mrb[16].mxu0 %v2744_v48  ;;  %3935 = vmatprep.mubr.bf16.mxu1 %v5092_v10  ;;  %v1524_v10 = vpack.c.bf16 %v1507_v20, %v1506_v23 }
 0x128   : > { %4127 = vmatprep.mubr.bf16.mxu0 %v2745_v49 }
 0x12e   : > { %3936 = vmatmul.mubr.bf16.gmra.mrb[20].mxu1 %v5094_v12  ;;  %v1509_v12 = vld [vmem:[#allocation2 + $0x189] sm:$0xff] }
 0x12f   : > { %4128 = vmatmul.mubr.bf16.gmra.mrb[20].mxu0 %v2746_v6  ;;  %3939 = vmatprep.mubr.bf16.mxu1 %v1522_v19  ;;  %v1525_v42 = vpack.c.bf16 %v1509_v12, %v1508_v41 }
 0x130   : > { %4131 = vmatprep.mubr.bf16.mxu0 %v2747_v61 }
 0x136   : > { %3940 = vmatmul.mubr.bf16.gmra.mrb[24].mxu1 %v1523_v0 }
 0x137   : > { %4132 = vmatmul.mubr.bf16.gmra.mrb[24].mxu0 %v2748_v7  ;;  %3943 = vmatprep.mubr.bf16.mxu1 %v1524_v10 }
 0x138   : > { %4135 = vmatprep.mubr.bf16.mxu0 %v2749_v3 }
 0x13e   : > { %3944 = vmatmul.mubr.bf16.gmra.mrb[28].mxu1 %v1525_v42 }
 0x13f   : > { %4136 = vmatmul.mubr.bf16.gmra.mrb[28].mxu0 %v2750_v44 }
 0x1b9   : > { %v3869_v22 = vpop.f32.mrb[0].mxu1 }
 0x1ba   : > { %v1319_v38 = vpop.f32.mrb[1].mxu1 }
 0x1bb   : > { %v3870_v13 = vpop.f32.mrb[2].mxu1 }
 0x1bc   : > { %v1322_v14 = vpop.f32.mrb[3].mxu1 }
 0x1c1   : > { %v3873_v40 = vpop.f32.mrb[4].mxu1 }
 0x1c2   : > { %v1335_v53 = vpop.f32.mrb[5].mxu1 }
 0x1c3   : > { %v3874_v30 = vpop.f32.mrb[6].mxu1 }
 0x1c4   : > { %v1338_v31 = vpop.f32.mrb[7].mxu1 }
 0x1c9   : > { %v3877_v50 = vpop.f32.mrb[8].mxu1 }
 0x1ca   : > { %v1351_v58 = vpop.f32.mrb[9].mxu1 }
 0x1cb   : > { %v5145_v35 = vpop.f32.mrb[10].mxu1 }
 0x1cc   : > { %v5147_v43 = vpop.f32.mrb[11].mxu1 }
 0x1d1   : > { %v5149_v15 = vpop.f32.mrb[12].mxu1 }
 0x1d2   : > { %v5151_v60 = vpop.f32.mrb[13].mxu1 }
 0x1d3   : > { %v5153_v8 = vpop.f32.mrb[14].mxu1 }
 0x1d4   : > { %v5155_v16 = vpop.f32.mrb[15].mxu1 }
 0x1da   : > { %v4109_v1 = vpop.f32.mrb[0].mxu0 }
 0x1db   : > { %v4155_v26 = vadd.f32 %v4109_v1, %v3869_v22  ;;  %v2850_v27 = vpop.f32.mrb[1].mxu0 }
 0x1dc   : > { %v4156_v45 = vadd.f32 %v2850_v27, %v1319_v38  ;;  %v4110_v54 = vpop.f32.mrb[2].mxu0 }
 0x1dd   : > { %v3017_v9 = vadd.f32 %v4155_v26, %v5160_v25  ;;  %v4157_v28 = vadd.f32 %v4110_v54, %v3870_v13  ;;  %v2853_v29 = vpop.f32.mrb[3].mxu0 }
 0x1de   : > { %v3015_v17 = vadd.f32 %v4156_v45, %v5160_v25  ;;  %v4158_v36 = vadd.f32 %v2853_v29, %v1322_v14 }
 0x1df   : > { %3157 = vst [vmem:[%s5167_s25 + $0x10] sm:$0xff] %v3017_v9  ;;  %v3018_v37 = vadd.f32 %v4157_v28, %v5160_v25  ;;  %v3087_v48 = vmul.f32 %v3017_v9, %v3017_v9 }
 0x1e0   : > { %3155 = vst [vmem:[%s5167_s25] sm:$0xff] %v3015_v17  ;;  %v3016_v24 = vadd.f32 %v4158_v36, %v5160_v25  ;;  %v3085_v46 = vmul.f32 %v3015_v17, %v3015_v17 }
 0x1e1   : > { %3158 = vst [vmem:[%s5167_s25 + $0x18] sm:$0xff] %v3018_v37  ;;  %v3088_v2 = vmul.f32 %v3018_v37, %v3018_v37 }
 0x1e2   : > { %v3047_v47 = vadd.f32 %v3016_v24, %v3015_v17  ;;  %v3086_v32 = vmul.f32 %v3016_v24, %v3016_v24  ;;  %3156 = vst [vmem:[%s5167_s25 + $0x8] sm:$0xff] %v3016_v24  ;;  %v4113_v56 = vpop.f32.mrb[4].mxu0 }
 0x1e3   : > { %v4159_v4 = vadd.f32 %v4113_v56, %v3873_v40  ;;  %v2866_v34 = vpop.f32.mrb[5].mxu0 }
 0x1e4   : > { %v3048_v49 = vadd.f32 %v3047_v47, %v3017_v9  ;;  %v3117_v51 = vadd.f32 %v3086_v32, %v3085_v46  ;;  %v4160_v52 = vadd.f32 %v2866_v34, %v1335_v53  ;;  %v4114_v55 = vpop.f32.mrb[6].mxu0 }
 0x1e5   : > { %v3021_v57 = vadd.f32 %v4159_v4, %v5160_v25  ;;  %v4161_v59 = vadd.f32 %v4114_v55, %v3874_v30  ;;  %v2869_v6 = vpop.f32.mrb[7].mxu0 }
 0x1e6   : > { %v3118_v19 = vadd.f32 %v3117_v51, %v3087_v48  ;;  %v3019_v61 = vadd.f32 %v4160_v52, %v5160_v25  ;;  %v3049_v62 = vadd.f32 %v3048_v49, %v3018_v37  ;;  %v4162_v11 = vadd.f32 %v2869_v6, %v1338_v31 }
 0x1e7   : > { %3161 = vst [vmem:[%s5167_s25 + $0x30] sm:$0xff] %v3021_v57  ;;  %v3022_v21 = vadd.f32 %v4161_v59, %v5160_v25  ;;  %v3091_v12 = vmul.f32 %v3021_v57, %v3021_v57 }
 0x1e8   : > { %v3050_v63 = vadd.f32 %v3049_v62, %v3019_v61  ;;  %v3089_v23 = vmul.f32 %v3019_v61, %v3019_v61  ;;  %v3119_v20 = vadd.f32 %v3118_v19, %v3088_v2  ;;  %3159 = vst [vmem:[%s5167_s25 + $0x20] sm:$0xff] %v3019_v61  ;;  %v3020_v39 = vadd.f32 %v4162_v11, %v5160_v25 }
 0x1e9   : > { %3162 = vst [vmem:[%s5167_s25 + $0x38] sm:$0xff] %v3022_v21  ;;  %v3092_v22 = vmul.f32 %v3022_v21, %v3022_v21 }
 0x1ea   : > { %v3120_v33 = vadd.f32 %v3119_v20, %v3089_v23  ;;  %v3051_v0 = vadd.f32 %v3050_v63, %v3020_v39  ;;  %v3090_v7 = vmul.f32 %v3020_v39, %v3020_v39  ;;  %3160 = vst [vmem:[%s5167_s25 + $0x28] sm:$0xff] %v3020_v39  ;;  %v4117_v10 = vpop.f32.mrb[8].mxu0 }
 0x1eb   : > { %v4163_v3 = vadd.f32 %v4117_v10, %v3877_v50  ;;  %v2882_v41 = vpop.f32.mrb[9].mxu0 }
 0x1ec   : > { %v3052_v5 = vadd.f32 %v3051_v0, %v3021_v57  ;;  %v3121_v18 = vadd.f32 %v3120_v33, %v3090_v7  ;;  %v4164_v42 = vadd.f32 %v2882_v41, %v1351_v58  ;;  %v4118_v44 = vpop.f32.mrb[10].mxu0 }
 0x1ed   : > { %v3025_v38 = vadd.f32 %v4163_v3, %v5160_v25  ;;  %v4165_v13 = vadd.f32 %v4118_v44, %v5145_v35  ;;  %v2885_v14 = vpop.f32.mrb[11].mxu0 }
 0x1ee   : > { %v3122_v40 = vadd.f32 %v3121_v18, %v3091_v12  ;;  %v3023_v53 = vadd.f32 %v4164_v42, %v5160_v25  ;;  %v3053_v30 = vadd.f32 %v3052_v5, %v3022_v21  ;;  %v4166_v31 = vadd.f32 %v2885_v14, %v5147_v43 }
 0x1ef   : > { %3165 = vst [vmem:[%s5167_s25 + $0x50] sm:$0xff] %v3025_v38  ;;  %v3026_v50 = vadd.f32 %v4165_v13, %v5160_v25  ;;  %v3095_v43 = vmul.f32 %v3025_v38, %v3025_v38 }
 0x1f0   : > { %v3054_v1 = vadd.f32 %v3053_v30, %v3023_v53  ;;  %v3093_v58 = vmul.f32 %v3023_v53, %v3023_v53  ;;  %v3123_v26 = vadd.f32 %v3122_v40, %v3092_v22  ;;  %3163 = vst [vmem:[%s5167_s25 + $0x40] sm:$0xff] %v3023_v53  ;;  %v3024_v27 = vadd.f32 %v4166_v31, %v5160_v25 }
 0x1f1   : > { %3166 = vst [vmem:[%s5167_s25 + $0x58] sm:$0xff] %v3026_v50  ;;  %v3096_v46 = vmul.f32 %v3026_v50, %v3026_v50 }
 0x1f2   : > { %v3124_v45 = vadd.f32 %v3123_v26, %v3093_v58  ;;  %v3055_v35 = vadd.f32 %v3054_v1, %v3024_v27  ;;  %v3094_v54 = vmul.f32 %v3024_v27, %v3024_v27  ;;  %3164 = vst [vmem:[%s5167_s25 + $0x48] sm:$0xff] %v3024_v27  ;;  %v4121_v9 = vpop.f32.mrb[12].mxu0 }
 0x1f3   : > { %v4167_v28 = vadd.f32 %v4121_v9, %v5149_v15  ;;  %v2898_v29 = vpop.f32.mrb[13].mxu0 }
 0x1f4   : > { %v3056_v17 = vadd.f32 %v3055_v35, %v3025_v38  ;;  %v3125_v36 = vadd.f32 %v3124_v45, %v3094_v54  ;;  %v4168_v37 = vadd.f32 %v2898_v29, %v5151_v60  ;;  %v4122_v24 = vpop.f32.mrb[14].mxu0 }
 0x1f5   : > { %v3029_v47 = vadd.f32 %v4167_v28, %v5160_v25  ;;  %v4169_v32 = vadd.f32 %v4122_v24, %v5153_v8  ;;  %v2901_v56 = vpop.f32.mrb[15].mxu0 }
 0x1f6   : > { %v3126_v4 = vadd.f32 %v3125_v36, %v3095_v43  ;;  %v3027_v34 = vadd.f32 %v4168_v37, %v5160_v25  ;;  %v3057_v15 = vadd.f32 %v3056_v17, %v3026_v50  ;;  %v4170_v48 = vadd.f32 %v2901_v56, %v5155_v16 }
 0x1f7   : > { %3169 = vst [vmem:[%s5167_s25 + $0x70] sm:$0xff] %v3029_v47  ;;  %v3030_v49 = vadd.f32 %v4169_v32, %v5160_v25  ;;  %v3099_v11 = vmul.f32 %v3029_v47, %v3029_v47 }
 0x1f8   : > { %v3058_v51 = vadd.f32 %v3057_v15, %v3027_v34  ;;  %v3097_v60 = vmul.f32 %v3027_v34, %v3027_v34  ;;  %v3127_v52 = vadd.f32 %v3126_v4, %v3096_v46  ;;  %3167 = vst [vmem:[%s5167_s25 + $0x60] sm:$0xff] %v3027_v34  ;;  %v3028_v55 = vadd.f32 %v4170_v48, %v5160_v25 }
 0x1f9   : > { %3170 = vst [vmem:[%s5167_s25 + $0x78] sm:$0xff] %v3030_v49  ;;  %v3933_v2 = vpop.f32.mrb[16].mxu1  ;;  %v3100_v33 = vmul.f32 %v3030_v49, %v3030_v49 }
 0x1fa   : > { %v3128_v8 = vadd.f32 %v3127_v52, %v3097_v60  ;;  %v3059_v57 = vadd.f32 %v3058_v51, %v3028_v55  ;;  %v3098_v59 = vmul.f32 %v3028_v55, %v3028_v55  ;;  %3168 = vst [vmem:[%s5167_s25 + $0x68] sm:$0xff] %v3028_v55  ;;  %v4125_v6 = vpop.f32.mrb[16].mxu0  ;;  %v1689_v19 = vpop.f32.mrb[17].mxu1 }
 0x1fb   : > { %v4171_v61 = vadd.f32 %v4125_v6, %v3933_v2  ;;  %v2914_v62 = vpop.f32.mrb[17].mxu0  ;;  %v3934_v16 = vpop.f32.mrb[18].mxu1 }
 0x1fc   : > { %v3060_v21 = vadd.f32 %v3059_v57, %v3029_v47  ;;  %v3129_v63 = vadd.f32 %v3128_v8, %v3098_v59  ;;  %v4172_v23 = vadd.f32 %v2914_v62, %v1689_v19  ;;  %v4126_v20 = vpop.f32.mrb[18].mxu0  ;;  %v1692_v39 = vpop.f32.mrb[19].mxu1 }
 0x1fd   : > { %v3033_v0 = vadd.f32 %v4171_v61, %v5160_v25  ;;  %v4173_v7 = vadd.f32 %v4126_v20, %v3934_v16  ;;  %v2917_v10 = vpop.f32.mrb[19].mxu0 }
 0x1fe   : > { %v3130_v3 = vadd.f32 %v3129_v63, %v3099_v11  ;;  %v3031_v41 = vadd.f32 %v4172_v23, %v5160_v25  ;;  %v3061_v12 = vadd.f32 %v3060_v21, %v3030_v49  ;;  %v4174_v5 = vadd.f32 %v2917_v10, %v1692_v39 }
 0x1ff   : > { %3173 = vst [vmem:[%s5167_s25 + $0x90] sm:$0xff] %v3033_v0  ;;  %v3034_v18 = vadd.f32 %v4173_v7, %v5160_v25  ;;  %v3103_v26 = vmul.f32 %v3033_v0, %v3033_v0 }
 0x200   : > { %v3062_v42 = vadd.f32 %v3061_v12, %v3031_v41  ;;  %v3101_v44 = vmul.f32 %v3031_v41, %v3031_v41  ;;  %v3131_v22 = vadd.f32 %v3130_v3, %v3100_v33  ;;  %3171 = vst [vmem:[%s5167_s25 + $0x80] sm:$0xff] %v3031_v41  ;;  %v3032_v38 = vadd.f32 %v4174_v5, %v5160_v25 }
 0x201   : > { %3174 = vst [vmem:[%s5167_s25 + $0x98] sm:$0xff] %v3034_v18  ;;  %v3937_v13 = vpop.f32.mrb[20].mxu1  ;;  %v3104_v28 = vmul.f32 %v3034_v18, %v3034_v18 }
 0x202   : > { %v3132_v14 = vadd.f32 %v3131_v22, %v3101_v44  ;;  %v3063_v40 = vadd.f32 %v3062_v42, %v3032_v38  ;;  %v3102_v53 = vmul.f32 %v3032_v38, %v3032_v38  ;;  %3172 = vst [vmem:[%s5167_s25 + $0x88] sm:$0xff] %v3032_v38  ;;  %v4129_v30 = vpop.f32.mrb[20].mxu0  ;;  %v1705_v31 = vpop.f32.mrb[21].mxu1 }
 0x203   : > { %v4175_v50 = vadd.f32 %v4129_v30, %v3937_v13  ;;  %v2930_v1 = vpop.f32.mrb[21].mxu0  ;;  %v3938_v58 = vpop.f32.mrb[22].mxu1 }
 0x204   : > { %v3064_v27 = vadd.f32 %v3063_v40, %v3033_v0  ;;  %v3133_v45 = vadd.f32 %v3132_v14, %v3102_v53  ;;  %v4176_v35 = vadd.f32 %v2930_v1, %v1705_v31  ;;  %v4130_v54 = vpop.f32.mrb[22].mxu0  ;;  %v1708_v9 = vpop.f32.mrb[23].mxu1 }
 0x205   : > { %v3037_v29 = vadd.f32 %v4175_v50, %v5160_v25  ;;  %v4177_v43 = vadd.f32 %v4130_v54, %v3938_v58  ;;  %v2933_v17 = vpop.f32.mrb[23].mxu0 }
 0x206   : > { %v3134_v36 = vadd.f32 %v3133_v45, %v3103_v26  ;;  %v3035_v37 = vadd.f32 %v4176_v35, %v5160_v25  ;;  %v3065_v24 = vadd.f32 %v3064_v27, %v3034_v18  ;;  %v4178_v46 = vadd.f32 %v2933_v17, %v1708_v9 }
 0x207   : > { %3177 = vst [vmem:[%s5167_s25 + $0xb0] sm:$0xff] %v3037_v29  ;;  %v3038_v47 = vadd.f32 %v4177_v43, %v5160_v25  ;;  %v3107_v57 = vmul.f32 %v3037_v29, %v3037_v29 }
 0x208   : > { %v3066_v32 = vadd.f32 %v3065_v24, %v3035_v37  ;;  %v3105_v56 = vmul.f32 %v3035_v37, %v3035_v37  ;;  %v3135_v4 = vadd.f32 %v3134_v36, %v3104_v28  ;;  %3175 = vst [vmem:[%s5167_s25 + $0xa0] sm:$0xff] %v3035_v37  ;;  %v3036_v34 = vadd.f32 %v4178_v46, %v5160_v25 }
 0x209   : > { %3178 = vst [vmem:[%s5167_s25 + $0xb8] sm:$0xff] %v3038_v47  ;;  %v3941_v15 = vpop.f32.mrb[24].mxu1  ;;  %v3108_v16 = vmul.f32 %v3038_v47, %v3038_v47 }
 0x20a   : > { %v3136_v48 = vadd.f32 %v3135_v4, %v3105_v56  ;;  %v3067_v49 = vadd.f32 %v3066_v32, %v3036_v34  ;;  %v3106_v51 = vmul.f32 %v3036_v34, %v3036_v34  ;;  %3176 = vst [vmem:[%s5167_s25 + $0xa8] sm:$0xff] %v3036_v34  ;;  %v4133_v60 = vpop.f32.mrb[24].mxu0  ;;  %v1721_v52 = vpop.f32.mrb[25].mxu1 }
 0x20b   : > { %v4179_v55 = vadd.f32 %v4133_v60, %v3941_v15  ;;  %v2946_v2 = vpop.f32.mrb[25].mxu0  ;;  %v3942_v8 = vpop.f32.mrb[26].mxu1 }
 0x20c   : > { %v3068_v59 = vadd.f32 %v3067_v49, %v3037_v29  ;;  %v3137_v6 = vadd.f32 %v3136_v48, %v3106_v51  ;;  %v4180_v19 = vadd.f32 %v2946_v2, %v1721_v52  ;;  %v4134_v61 = vpop.f32.mrb[26].mxu0  ;;  %v1724_v62 = vpop.f32.mrb[27].mxu1 }
 0x20d   : > { %v3041_v11 = vadd.f32 %v4179_v55, %v5160_v25  ;;  %v4181_v21 = vadd.f32 %v4134_v61, %v3942_v8  ;;  %v2949_v63 = vpop.f32.mrb[27].mxu0 }
 0x20e   : > { %v3138_v23 = vadd.f32 %v3137_v6, %v3107_v57  ;;  %v3039_v20 = vadd.f32 %v4180_v19, %v5160_v25  ;;  %v3069_v39 = vadd.f32 %v3068_v59, %v3038_v47  ;;  %v4182_v33 = vadd.f32 %v2949_v63, %v1724_v62 }
 0x20f   : > { %3181 = vst [vmem:[%s5167_s25 + $0xd0] sm:$0xff] %v3041_v11  ;;  %v3042_v0 = vadd.f32 %v4181_v21, %v5160_v25  ;;  %v3111_v40 = vmul.f32 %v3041_v11, %v3041_v11 }
 0x210   : > { %v3070_v7 = vadd.f32 %v3069_v39, %v3039_v20  ;;  %v3109_v10 = vmul.f32 %v3039_v20, %v3039_v20  ;;  %v3139_v3 = vadd.f32 %v3138_v23, %v3108_v16  ;;  %3179 = vst [vmem:[%s5167_s25 + $0xc0] sm:$0xff] %v3039_v20  ;;  %v3040_v41 = vadd.f32 %v4182_v33, %v5160_v25 }
 0x211   : > { %3182 = vst [vmem:[%s5167_s25 + $0xd8] sm:$0xff] %v3042_v0  ;;  %v3945_v12 = vpop.f32.mrb[28].mxu1  ;;  %v3112_v58 = vmul.f32 %v3042_v0, %v3042_v0 }
 0x212   : > { %v3140_v5 = vadd.f32 %v3139_v3, %v3109_v10  ;;  %v3071_v18 = vadd.f32 %v3070_v7, %v3040_v41  ;;  %v3110_v42 = vmul.f32 %v3040_v41, %v3040_v41  ;;  %3180 = vst [vmem:[%s5167_s25 + $0xc8] sm:$0xff] %v3040_v41  ;;  %v4137_v44 = vpop.f32.mrb[28].mxu0  ;;  %v1737_v22 = vpop.f32.mrb[29].mxu1 }
 0x213   : > { %v4183_v38 = vadd.f32 %v4137_v44, %v3945_v12  ;;  %v2962_v13 = vpop.f32.mrb[29].mxu0  ;;  %v3946_v14 = vpop.f32.mrb[30].mxu1 }
 0x214   : > { %v3072_v53 = vadd.f32 %v3071_v18, %v3041_v11  ;;  %v3141_v30 = vadd.f32 %v3140_v5, %v3110_v42  ;;  %v4184_v31 = vadd.f32 %v2962_v13, %v1737_v22  ;;  %v4138_v50 = vpop.f32.mrb[30].mxu0  ;;  %v1740_v1 = vpop.f32.mrb[31].mxu1 }
 0x215   : > { %v3045_v26 = vadd.f32 %v4183_v38, %v5160_v25  ;;  %v4185_v27 = vadd.f32 %v4138_v50, %v3946_v14  ;;  %v2965_v45 = vpop.f32.mrb[31].mxu0 }
 0x216   : > { %v3142_v35 = vadd.f32 %v3141_v30, %v3111_v40  ;;  %v3043_v54 = vadd.f32 %v4184_v31, %v5160_v25  ;;  %v3073_v9 = vadd.f32 %v3072_v53, %v3042_v0  ;;  %v4186_v28 = vadd.f32 %v2965_v45, %v1740_v1 }
 0x217   : > { %3185 = vst [vmem:[%s5167_s25 + $0xf0] sm:$0xff] %v3045_v26  ;;  %v3046_v29 = vadd.f32 %v4185_v27, %v5160_v25  ;;  %v3115_v32 = vmul.f32 %v3045_v26, %v3045_v26 }
 0x218   : > { %v3074_v43 = vadd.f32 %v3073_v9, %v3043_v54  ;;  %v3113_v17 = vmul.f32 %v3043_v54, %v3043_v54  ;;  %v3143_v36 = vadd.f32 %v3142_v35, %v3112_v58  ;;  %3183 = vst [vmem:[%s5167_s25 + $0xe0] sm:$0xff] %v3043_v54  ;;  %v3044_v37 = vadd.f32 %v4186_v28, %v5160_v25 }
 0x219   : > { %3186 = vst [vmem:[%s5167_s25 + $0xf8] sm:$0xff] %v3046_v29  ;;  %v3116_v34 = vmul.f32 %v3046_v29, %v3046_v29 }
 0x21a   : > { %v3144_v24 = vadd.f32 %v3143_v36, %v3113_v17  ;;  %v3075_v46 = vadd.f32 %v3074_v43, %v3044_v37  ;;  %v3114_v47 = vmul.f32 %v3044_v37, %v3044_v37  ;;  %3184 = vst [vmem:[%s5167_s25 + $0xe8] sm:$0xff] %v3044_v37 }
 0x21c   : > { %v3076_v56 = vadd.f32 %v3075_v46, %v3045_v26  ;;  %v3145_v4 = vadd.f32 %v3144_v24, %v3114_v47 }
 0x21e   : > { %v3077_v15 = vadd.f32 %v3076_v56, %v3046_v29  ;;  %v3146_v48 = vadd.f32 %v3145_v4, %v3115_v32 }
 0x220   : > { %v3078_v49 = vrot.slane %v3077_v15, 4  ;;  %v3147_v51 = vadd.f32 %v3146_v48, %v3116_v34 }
 0x222   : > { %v3079_v60 = vadd.f32 %v3078_v49, %v3077_v15  ;;  %v3148_v52 = vrot.slane %v3147_v51, 4 }
 0x224   : > { %v3080_v55 = vrot.slane %v3079_v60, 2  ;;  %v3149_v2 = vadd.f32 %v3148_v52, %v3147_v51 }
 0x226   : > { %v3081_v8 = vadd.f32 %v3080_v55, %v3079_v60  ;;  %v3150_v25 = vrot.slane %v3149_v2, 2 }
 0x228   : > { %v3082_v57 = vrot.slane %v3081_v8, 1  ;;  %v3151_v59 = vadd.f32 %v3150_v25, %v3149_v2 }
 0x22a   : > { %v3152_v6 = vrot.slane %v3151_v59, 1  ;;  %v3083_v19 = vadd.f32 %v3082_v57, %v3081_v8 }
 0x22c   : > { %v3153_v61 = vadd.f32 %v3152_v6, %v3151_v59 }
 0x22e   : > { %v3188_v62 = vsel %vm3187_vm0, %v3083_v19, %v3153_v61 }
 0x22f   : > { %3189 = vst [vmem:[%s208_s27] sm:$0x3] %v3188_v62 }
 0x230 PF: > { %s15_s15 = sadd.s32 1, %s4507_s15  }
 0x231   : > { %p12_p4 = scmp.ge.s32.totalorder %s15_s15, 4  }
 0x233   :  { %14 = sbr.rel (!%p12_p4) target bundleno = 1 (0x1), region = 85 }

// kernel: residual_forward.4
= control target key start
LH: loop header
LB: loop body
LE: loop exit
PB: predicated region body
PF: predicated region fallthrough
CT: control target
= control target key end

     0   :  { %s4711_s21 = smov 0   ;;  %s5578_s0 = inlined_call_operand.vmem [shape: f32[2,16,16,128], index: 0, kind: input, shape index: {}]   ;;  %s5579_s1 = inlined_call_operand.vmem [shape: f32[1,128], index: 1, kind: input, shape index: {}]   ;;  %s5580_s2 = inlined_call_operand.vmem [shape: f32[1,128], index: 2, kind: input, shape index: {}]   ;;  %s5581_s3 = inlined_call_operand.vmem [shape: bf16[9,128,128], index: 3, kind: input, shape index: {}]   ;;  %s5582_s4 = inlined_call_operand.vmem [shape: f32[1,128], index: 4, kind: input, shape index: {}]   ;;  %s5583_s5 = inlined_call_operand.vmem [shape: f32[2,16,16,128], index: 5, kind: output, shape index: {0}]   ;;  %s5584_s6 = inlined_call_operand.vmem [shape: f32[2,2,128], index: 6, kind: output, shape index: {1}]  }
   0x1 LB: > { %s3440_s22 = sadd.s32 4294967295, %s4673_s21   ;;  %p3444_p0 = scmp.ge.s32.totalorder %s4673_s21, 1  ;;  %s4673_s21 = sphi %s4711_s21, %s17_s21  }
   0x2   : > { %p215_p1 = scmp.lt.s32.totalorder %s4673_s21, 3 }
   0x4   : > { %p216_p2 = pnand %p3444_p0, %p215_p1 }
   0x5   : > { %v4586_v0 = vld [vmem:[%s5581_s3 + $0x40] sm:$0xff] (!%p216_p2)   ;;  %v4675_v2 = vmov (!%p216_p2), 0.0   ;;  %v4588_v3 = vld [vmem:[%s5581_s3 + $0x48] sm:$0xff] (!%p216_p2)   ;;  %p249_p3 = scmp.lt.s32.totalorder (!%p216_p2), %s3440_s22, 1  ;;  %v4590_v5 = vld [vmem:[%s5581_s3 + $0x50] sm:$0xff] (!%p216_p2)   ;;  %vm3351_vm0 = vcmask (!%p216_p2), 1040384  }
   0x6   : > { %219 = sbr.rel (%p216_p2) target bundleno = 560 (0x230), region = 40  ;;  %v4587_v1 = vld [vmem:[%s5581_s3 + $0x100] sm:$0xff] (!%p216_p2)   ;;  %406 = vst [vmem:[#allocation2] sm:$0xff] (!%p216_p2), %v4675_v2  ;;  %407 = vst [vmem:[#allocation2 + $0x8] sm:$0xff] (!%p216_p2), %v4675_v2  ;;  %3873 = vmatprep.subr.bf16.mxu1 (!%p216_p2), %v4586_v0  ;;  %v4589_v4 = vld [vmem:[%s5581_s3 + $0x108] sm:$0xff] (!%p216_p2)  }
   0x7   : > { %408 = vst [vmem:[#allocation2 + $0x10] sm:$0x3] (!%p216_p2), %v4675_v2  ;;  %410 = vst [vmem:[#allocation2 + $0x198] sm:$0xff] (!%p216_p2), %v4675_v2  ;;  %4065 = vmatprep.subr.bf16.mxu0 (!%p216_p2), %v4587_v1  ;;  %3874 = vmatpush3.bf16.msra.mxu1 (!%p216_p2), %v4586_v0  ;;  %v4591_v6 = vld [vmem:[%s5581_s3 + $0x110] sm:$0xff] (!%p216_p2)   ;;  %v4592_v7 = vld [vmem:[%s5581_s3 + $0x58] sm:$0xff] (!%p216_p2)  }
   0x8   : > { %411 = vst [vmem:[#allocation2 + $0x1a0] sm:$0xff] (!%p216_p2), %v4675_v2  ;;  %412 = vst [vmem:[#allocation2 + $0x1a8] sm:$0x3] (!%p216_p2), %v4675_v2  ;;  %4066 = vmatpush3.bf16.msra.mxu0 (!%p216_p2), %v4587_v1  ;;  %3875 = vmatprep.subr.bf16.mxu1 (!%p216_p2), %v4588_v3  ;;  %v4593_v8 = vld [vmem:[%s5581_s3 + $0x118] sm:$0xff] (!%p216_p2)   ;;  %v4594_v9 = vld [vmem:[%s5581_s3 + $0x60] sm:$0xff] (!%p216_p2)  }
   0x9   : > { %414 = vst [vmem:[#allocation2 + $0x18] sm:$0x1] (!%p216_p2), %v4675_v2  ;;  %415 = vst [vmem:[#allocation2 + $0x30] sm:$0x1] (!%p216_p2), %v4675_v2  ;;  %4067 = vmatprep.subr.bf16.mxu0 (!%p216_p2), %v4589_v4  ;;  %v4595_v10 = vld [vmem:[%s5581_s3 + $0x120] sm:$0xff] (!%p216_p2)   ;;  %v4596_v11 = vld [vmem:[%s5581_s3 + $0x68] sm:$0xff] (!%p216_p2)  }
   0xa   : > { %416 = vst [vmem:[#allocation2 + $0x48] sm:$0x1] (!%p216_p2), %v4675_v2  ;;  %417 = vst [vmem:[#allocation2 + $0x60] sm:$0x1] (!%p216_p2), %v4675_v2  ;;  %v4597_v12 = vld [vmem:[%s5581_s3 + $0x128] sm:$0xff] (!%p216_p2)   ;;  %v4598_v24 = vld [vmem:[%s5581_s3 + $0x70] sm:$0xff] (!%p216_p2)  }
   0xb   : > { %418 = vst [vmem:[#allocation2 + $0x78] sm:$0x1] (!%p216_p2), %v4675_v2  ;;  %419 = vst [vmem:[#allocation2 + $0x90] sm:$0x1] (!%p216_p2), %v4675_v2  ;;  %3876 = vmatpush3.bf16.msra.mxu1 (!%p216_p2), %v4588_v3  ;;  %v4816_v18 = vld [vmem:[%s5579_s1] ss:$0 sm:$0xff] (!%p216_p2) }
   0xc   : > { %420 = vst [vmem:[#allocation2 + $0xa8] sm:$0x1] (!%p216_p2), %v4675_v2  ;;  %421 = vst [vmem:[#allocation2 + $0xc0] sm:$0x1] (!%p216_p2), %v4675_v2  ;;  %4068 = vmatpush3.bf16.msra.mxu0 (!%p216_p2), %v4589_v4  ;;  %3877 = vmatprep.subr.bf16.mxu1 (!%p216_p2), %v4590_v5  ;;  %v4821_v19 = vld [vmem:[%s5580_s2] ss:$0 sm:$0xff] (!%p216_p2) }
   0xd   : > { %422 = vst [vmem:[#allocation2 + $0xd8] sm:$0x1] %v4675_v2  ;;  %423 = vst [vmem:[#allocation2 + $0xf0] sm:$0x1] %v4675_v2  ;;  %s5586_s22 = smov (!%p249_p3, %s3440_s22), 1  ;;  %4069 = vmatprep.subr.bf16.mxu0 %v4591_v6  ;;  %v547_v13 = vld [vmem:[#allocation2 + $0x1] sm:$0xff] }
   0xe   : > { %424 = vst [vmem:[#allocation2 + $0x108] sm:$0x1] %v4675_v2  ;;  %425 = vst [vmem:[#allocation2 + $0x120] sm:$0x1] %v4675_v2  ;;  %s3655_s15 = sshll.u32 %s5586_s22, 8  ;;  %v548_v14 = vld [vmem:[#allocation2 + $0x9] sm:$0xff] }
   0xf   : > { %426 = vst [vmem:[#allocation2 + $0x138] sm:$0x1] %v4675_v2  ;;  %427 = vst [vmem:[#allocation2 + $0x150] sm:$0x1] %v4675_v2  ;;  %3878 = vmatpush3.bf16.msra.mxu1 %v4590_v5  ;;  %s4803_s24 = scalar_lea.vmem %s5578_s0, %s3655_s15  ;;  %v579_v16 = vpack.c.bf16 %v548_v14, %v547_v13  ;;  %v4599_v28 = vld [vmem:[%s5581_s3 + $0x130] sm:$0xff]   ;;  %v4600_v40 = vld [vmem:[%s5581_s3 + $0x78] sm:$0xff]   ;;  %s5499_s28 = scalar_lea.vmem %s5583_s5, %s3655_s15 }
  0x10   : > { %428 = vst [vmem:[#allocation2 + $0x168] sm:$0x1] %v4675_v2  ;;  %429 = vst [vmem:[#allocation2 + $0x180] sm:$0x1] %v4675_v2  ;;  %4070 = vmatpush3.bf16.msra.mxu0 %v4591_v6  ;;  %3879 = vmatprep.subr.bf16.mxu1 %v4592_v7  ;;  %v264_v15 = vld [vmem:[%s4803_s24] sm:$0xff]  ;;  %v265_v17 = vld [vmem:[%s4803_s24 + $0x8] sm:$0xff] }
  0x11   : > { %432 = vst [vmem:[#allocation2 + $0x29] sm:$0x1] %v4675_v2  ;;  %433 = vst [vmem:[#allocation2 + $0x41] sm:$0x1] %v4675_v2  ;;  %4071 = vmatprep.subr.bf16.mxu0 %v4593_v8  ;;  %v304_v20 = vmul.f32 %v4816_v18, %v264_v15  ;;  %v305_v21 = vmul.f32 %v4816_v18, %v265_v17  ;;  %3889 = vmatprep.mubr.bf16.mxu1 %v579_v16  ;;  %v266_v22 = vld [vmem:[%s4803_s24 + $0x10] sm:$0xff]  ;;  %v267_v23 = vld [vmem:[%s4803_s24 + $0x18] sm:$0xff] }
  0x12   : > { %434 = vst [vmem:[#allocation2 + $0x59] sm:$0x1] %v4675_v2  ;;  %435 = vst [vmem:[#allocation2 + $0x71] sm:$0x1] %v4675_v2  ;;  %v306_v27 = vmul.f32 %v4816_v18, %v266_v22  ;;  %v307_v29 = vmul.f32 %v4816_v18, %v267_v23  ;;  %v268_v30 = vld [vmem:[%s4803_s24 + $0x20] sm:$0xff]  ;;  %v269_v34 = vld [vmem:[%s4803_s24 + $0x28] sm:$0xff] }
  0x13   : > { %436 = vst [vmem:[#allocation2 + $0x89] sm:$0x1] %v4675_v2  ;;  %437 = vst [vmem:[#allocation2 + $0xa1] sm:$0x1] %v4675_v2  ;;  %3880 = vmatpush3.bf16.msra.mxu1 %v4592_v7  ;;  %v342_v25 = vadd.f32 %v4821_v19, %v304_v20  ;;  %v343_v26 = vadd.f32 %v4821_v19, %v305_v21  ;;  %v308_v35 = vmul.f32 %v4816_v18, %v268_v30  ;;  %v270_v38 = vld [vmem:[%s4803_s24 + $0x30] sm:$0xff]  ;;  %v271_v39 = vld [vmem:[%s4803_s24 + $0x38] sm:$0xff] }
  0x14   : > { %438 = vst [vmem:[#allocation2 + $0xb9] sm:$0x1] %v4675_v2  ;;  %439 = vst [vmem:[#allocation2 + $0xd1] sm:$0x1] %v4675_v2  ;;  %4072 = vmatpush3.bf16.msra.mxu0 %v4593_v8  ;;  %3881 = vmatprep.subr.bf16.mxu1 %v4594_v9  ;;  %v344_v33 = vadd.f32 %v4821_v19, %v306_v27  ;;  %v345_v36 = vadd.f32 %v4821_v19, %v307_v29  ;;  %v4601_v45 = vld [vmem:[%s5581_s3 + $0x138] sm:$0xff]   ;;  %v272_v51 = vld [vmem:[%s4803_s24 + $0x40] sm:$0xff] }
  0x15   : > { %440 = vst [vmem:[#allocation2 + $0xe9] sm:$0x1] %v4675_v2  ;;  %441 = vst [vmem:[#allocation2 + $0x101] sm:$0x1] %v4675_v2  ;;  %4073 = vmatprep.subr.bf16.mxu0 %v4595_v10  ;;  %v374_v31 = vmax.f32 %v342_v25, 0.0  ;;  %v375_v32 = vmax.f32 %v343_v26, 0.0  ;;  %v309_v37 = vmul.f32 %v4816_v18, %v269_v34  ;;  %v346_v43 = vadd.f32 %v4821_v19, %v308_v35 }
  0x16   : > { %442 = vst [vmem:[#allocation2 + $0x119] sm:$0x1] %v4675_v2  ;;  %443 = vst [vmem:[#allocation2 + $0x131] sm:$0x1] %v4675_v2  ;;  %v376_v42 = vmax.f32 %v344_v33, 0.0  ;;  %v310_v44 = vmul.f32 %v4816_v18, %v270_v38  ;;  %v377_v46 = vmax.f32 %v345_v36, 0.0  ;;  %v311_v48 = vmul.f32 %v4816_v18, %v271_v39 }
  0x17   : > { %444 = vst [vmem:[#allocation2 + $0x149] sm:$0x1] %v4675_v2  ;;  %445 = vst [vmem:[#allocation2 + $0x161] sm:$0x1] %v4675_v2  ;;  %3882 = vmatpush3.bf16.msra.mxu1 %v4594_v9  ;;  %v1674_v41 = vpack.c.bf16 %v375_v32, %v374_v31  ;;  %v347_v47 = vadd.f32 %v4821_v19, %v309_v37  ;;  %v378_v49 = vmax.f32 %v346_v43, 0.0  ;;  %v273_v52 = vld [vmem:[%s4803_s24 + $0x48] sm:$0xff] }
  0x18   : > { %446 = vst [vmem:[#allocation2 + $0x179] sm:$0x1] %v4675_v2  ;;  %447 = vst [vmem:[#allocation2 + $0x191] sm:$0x1] %v4675_v2  ;;  %4074 = vmatpush3.bf16.msra.mxu0 %v4595_v10  ;;  %3883 = vmatprep.subr.bf16.mxu1 %v4596_v11  ;;  %v4856_v50 = vadd.f32 %v4821_v19, %v310_v44  ;;  %v4602_v53 = vld [vmem:[%s5581_s3] sm:$0xff]   ;;  %v4864_v55 = vadd.f32 %v4821_v19, %v311_v48  ;;  %v274_v57 = vld [vmem:[%s4803_s24 + $0x50] sm:$0xff] }
  0x19   : > { %431 = vst [vmem:[#allocation2 + $0x11] sm:$0x1] %v4675_v2  ;;  %413 = vst [vmem:[#allocation2] sm:$0x1] %v4675_v2  ;;  %4075 = vmatprep.subr.bf16.mxu0 %v4597_v12  ;;  %4081 = vmatprep.mubr.bf16.mxu0 %v1674_v41  ;;  %v379_v54 = vmax.f32 %v347_v47, 0.0  ;;  %v312_v56 = vmul.f32 %v4816_v18, %v272_v51  ;;  %v313_v59 = vmul.f32 %v4816_v18, %v273_v52  ;;  %v275_v60 = vld [vmem:[%s4803_s24 + $0x58] sm:$0xff] }
  0x1a   : > { %430 = vst [vmem:[#allocation2 + $0x198] sm:$0x1] %v4675_v2  ;;  %448 = vst [vmem:[#allocation2 + $0x1a9] sm:$0x1] %v4675_v2  ;;  %v380_v58 = vmax.f32 %v4856_v50, 0.0  ;;  %v314_v61 = vmul.f32 %v4816_v18, %v274_v57  ;;  %v4603_v62 = vld [vmem:[%s5581_s3 + $0x140] sm:$0xff]   ;;  %v315_v1 = vmul.f32 %v4816_v18, %v275_v60  ;;  %v1675_v7 = vpack.c.bf16 %v377_v46, %v376_v42 }
  0x1b   : > { %3884 = vmatpush3.bf16.msra.mxu1 %v4596_v11  ;;  %450 = vst [vmem:[#allocation2 + $0x19] sm:$0xff] %v374_v31  ;;  %451 = vst [vmem:[#allocation2 + $0x21] sm:$0xff] %v375_v32  ;;  %v381_v63 = vmax.f32 %v4864_v55, 0.0  ;;  %v4877_v0 = vadd.f32 %v4821_v19, %v312_v56  ;;  %v4883_v3 = vadd.f32 %v4821_v19, %v313_v59  ;;  %v276_v5 = vld [vmem:[%s4803_s24 + $0x60] sm:$0xff]  ;;  %v277_v6 = vld [vmem:[%s4803_s24 + $0x68] sm:$0xff]  ;;  %s3449_s15 = sshll.u32 %s5586_s22, 1 }
  0x1c   : > { %4076 = vmatpush3.bf16.msra.mxu0 %v4597_v12  ;;  %3885 = vmatprep.subr.bf16.mxu1 %v4598_v24  ;;  %452 = vst [vmem:[#allocation2 + $0x31] sm:$0xff] %v376_v42  ;;  %453 = vst [vmem:[#allocation2 + $0x39] sm:$0xff] %v377_v46  ;;  %v4886_v4 = vadd.f32 %v4821_v19, %v314_v61  ;;  %v4892_v9 = vadd.f32 %v4821_v19, %v315_v1  ;;  %v278_v15 = vld [vmem:[%s4803_s24 + $0x70] sm:$0xff]  ;;  %v279_v16 = vld [vmem:[%s4803_s24 + $0x78] sm:$0xff]  ;;  %s262_s7 = scalar_lea.vmem %s5584_s6, %s3449_s15 }
  0x1d   : > { %4077 = vmatprep.subr.bf16.mxu0 %v4599_v28  ;;  %454 = vst [vmem:[#allocation2 + $0x49] sm:$0xff] %v378_v49  ;;  %455 = vst [vmem:[#allocation2 + $0x51] sm:$0xff] %v379_v54  ;;  %v382_v8 = vmax.f32 %v4877_v0, 0.0  ;;  %v316_v10 = vmul.f32 %v4816_v18, %v276_v5  ;;  %v1676_v11 = vpack.c.bf16 %v379_v54, %v378_v49  ;;  %v383_v12 = vmax.f32 %v4883_v3, 0.0  ;;  %v4604_v17 = vld [vmem:[%s5581_s3 + $0x148] sm:$0xff]   ;;  %v280_v29 = vld [vmem:[%s4803_s24 + $0x80] sm:$0xff] }
  0x1e   : > { %456 = vst [vmem:[#allocation2 + $0x61] sm:$0xff] %v380_v58  ;;  %457 = vst [vmem:[#allocation2 + $0x69] sm:$0xff] %v381_v63  ;;  %v384_v13 = vmax.f32 %v4886_v4, 0.0  ;;  %v317_v14 = vmul.f32 %v4816_v18, %v277_v6  ;;  %v385_v20 = vmax.f32 %v4892_v9, 0.0  ;;  %v318_v22 = vmul.f32 %v4816_v18, %v278_v15  ;;  %v281_v30 = vld [vmem:[%s4803_s24 + $0x88] sm:$0xff]  ;;  %v4608_v31 = vld [vmem:[%s5581_s3 + $0x10] sm:$0xff]  }
  0x1f   : > { %3886 = vmatpush3.bf16.msra.mxu1 %v4598_v24  ;;  %458 = vst [vmem:[#allocation2 + $0x79] sm:$0xff] %v382_v8  ;;  %v4905_v21 = vadd.f32 %v4821_v19, %v316_v10  ;;  %v319_v23 = vmul.f32 %v4816_v18, %v279_v16  ;;  %v4605_v24 = vld [vmem:[%s5581_s3 + $0x8] sm:$0xff]   ;;  %459 = vst [vmem:[#allocation2 + $0x81] sm:$0xff] %v383_v12  ;;  %v320_v33 = vmul.f32 %v4816_v18, %v280_v29  ;;  %v4606_v35 = vld [vmem:[%s5581_s3 + $0x150] sm:$0xff]  }
  0x20   : > { %4078 = vmatpush3.bf16.msra.mxu0 %v4599_v28  ;;  %3887 = vmatprep.subr.bf16.mxu1 %v4600_v40  ;;  %460 = vst [vmem:[#allocation2 + $0x91] sm:$0xff] %v384_v13  ;;  %v4915_v25 = vadd.f32 %v4821_v19, %v317_v14  ;;  %461 = vst [vmem:[#allocation2 + $0x99] sm:$0xff] %v385_v20  ;;  %v4921_v27 = vadd.f32 %v4821_v19, %v318_v22  ;;  %v283_v42 = vld [vmem:[%s4803_s24 + $0x98] sm:$0xff]  ;;  %v284_v48 = vld [vmem:[%s4803_s24 + $0xa0] sm:$0xff] }
  0x21   : > { %4079 = vmatprep.subr.bf16.mxu0 %v4601_v45  ;;  %v386_v26 = vmax.f32 %v4905_v21, 0.0  ;;  %v4924_v28 = vadd.f32 %v4821_v19, %v319_v23  ;;  %v321_v34 = vmul.f32 %v4816_v18, %v281_v30  ;;  %v4944_v38 = vadd.f32 %v4821_v19, %v320_v33  ;;  %v285_v49 = vld [vmem:[%s4803_s24 + $0xa8] sm:$0xff]  ;;  %v4607_v50 = vld [vmem:[%s5581_s3 + $0x158] sm:$0xff]   ;;  %v286_v59 = vld [vmem:[%s4803_s24 + $0xb0] sm:$0xff] }
  0x22   : > { %v387_v32 = vmax.f32 %v4915_v25, 0.0  ;;  %v388_v36 = vmax.f32 %v4921_v27, 0.0  ;;  %v1678_v44 = vpack.c.bf16 %v383_v12, %v382_v8  ;;  %v323_v47 = vmul.f32 %v4816_v18, %v283_v42  ;;  %v4611_v54 = vld [vmem:[%s5581_s3 + $0x18] sm:$0xff]   ;;  %v288_v0 = vld [vmem:[%s4803_s24 + $0xc0] sm:$0xff]  ;;  %v289_v6 = vld [vmem:[%s4803_s24 + $0xc8] sm:$0xff] }
  0x23   : > { %3888 = vmatpush3.bf16.msra.mxu1 %v4600_v40  ;;  %462 = vst [vmem:[#allocation2 + $0xa9] sm:$0xff] %v386_v26  ;;  %v389_v37 = vmax.f32 %v4924_v28, 0.0  ;;  %v4947_v39 = vadd.f32 %v4821_v19, %v321_v34  ;;  %v282_v40 = vld [vmem:[%s4803_s24 + $0x90] sm:$0xff]  ;;  %v324_v52 = vmul.f32 %v4816_v18, %v284_v48  ;;  %v287_v60 = vld [vmem:[%s4803_s24 + $0xb8] sm:$0xff]  ;;  %v4609_v1 = vld [vmem:[%s5581_s3 + $0x160] sm:$0xff]   ;;  %v329_v12 = vmul.f32 %v4816_v18, %v289_v6 }
  0x24   : > { %4080 = vmatpush3.bf16.msra.mxu0 %v4601_v45  ;;  %3921 = vmatprep.subr.bf16.mxu1 %v4602_v53  ;;  %463 = vst [vmem:[#allocation2 + $0xb1] sm:$0xff] %v387_v32  ;;  %464 = vst [vmem:[#allocation2 + $0xc1] sm:$0xff] %v388_v36  ;;  %v322_v43 = vmul.f32 %v4816_v18, %v282_v40  ;;  %v390_v45 = vmax.f32 %v4944_v38, 0.0  ;;  %v4979_v55 = vadd.f32 %v4821_v19, %v323_v47  ;;  %v4614_v8 = vld [vmem:[%s5581_s3 + $0x20] sm:$0xff]   ;;  %v4610_v22 = vld [vmem:[%s5581_s3 + $0x168] sm:$0xff]  }
  0x25   : > { %4113 = vmatprep.subr.bf16.mxu0 %v4603_v62  ;;  %465 = vst [vmem:[#allocation2 + $0xc9] sm:$0xff] %v389_v37  ;;  %v391_v46 = vmax.f32 %v4947_v39, 0.0  ;;  %v4983_v57 = vadd.f32 %v4821_v19, %v324_v52  ;;  %v1679_v14 = vpack.c.bf16 %v385_v20, %v384_v13  ;;  %v1680_v4 = vpack.c.bf16 %v387_v32, %v386_v26  ;;  %v291_v20 = vld [vmem:[%s4803_s24 + $0xd8] sm:$0xff]  ;;  %v292_v25 = vld [vmem:[%s4803_s24 + $0xe0] sm:$0xff]  ;;  %v293_v26 = vld [vmem:[%s4803_s24 + $0xe8] sm:$0xff] }
  0x26   : > { %3890 = vmatmul.mubr.bf16.vlgmr.msra.gmra.mrb[0].mxu1 %v1674_v41  ;;  %v1677_v41 = vpack.c.bf16 %v381_v63, %v380_v58  ;;  %v4967_v51 = vadd.f32 %v4821_v19, %v322_v43  ;;  %466 = vst [vmem:[#allocation2 + $0xd9] sm:$0xff] %v390_v45  ;;  %v393_v61 = vmax.f32 %v4979_v55, 0.0  ;;  %v327_v63 = vmul.f32 %v4816_v18, %v287_v60  ;;  %v4616_v29 = vld [vmem:[%s5581_s3 + $0x28] sm:$0xff]   ;;  %v4612_v40 = vld [vmem:[%s5581_s3 + $0x170] sm:$0xff]   ;;  %v4613_v27 = vld [vmem:[%s5581_s3 + $0x178] sm:$0xff]  }
  0x27   : > { %4082 = vmatmul.mubr.bf16.vlgmr.msra.gmra.mrb[0].mxu0 %v1675_v7  ;;  %3922 = vmatpush3.bf16.msra.mxu1 %v4602_v53  ;;  %v325_v53 = vmul.f32 %v4816_v18, %v285_v49  ;;  %467 = vst [vmem:[#allocation2 + $0xe1] sm:$0xff] %v391_v46  ;;  %v394_v3 = vmax.f32 %v4983_v57, 0.0  ;;  %v5033_v16 = vadd.f32 %v4821_v19, %v329_v12  ;;  %v1949_v42 = vld [vmem:[#allocation2 + $0x22] sm:$0xff]  ;;  %v4618_v48 = vld [vmem:[%s5581_s3 + $0x30] sm:$0xff]   ;;  %v4620_v28 = vld [vmem:[%s5581_s3 + $0x38] sm:$0xff]  }
  0x28   : > { %4114 = vmatpush3.bf16.msra.mxu0 %v4603_v62  ;;  %3893 = vmatprep.mubr.bf16.mxu1 %v1675_v7  ;;  %v392_v56 = vmax.f32 %v4967_v51, 0.0  ;;  %v326_v62 = vmul.f32 %v4816_v18, %v286_v59  ;;  %v328_v7 = vmul.f32 %v4816_v18, %v288_v0  ;;  %469 = vst [vmem:[#allocation2 + $0xf9] sm:$0xff] %v393_v61  ;;  %v1952_v59 = vld [vmem:[#allocation2 + $0x4a] sm:$0xff]  ;;  %v1953_v60 = vld [vmem:[#allocation2 + $0x52] sm:$0xff]  ;;  %v1954_v39 = vld [vmem:[#allocation2 + $0x62] sm:$0xff] }
  0x29   : > { %4115 = vmatprep.subr.bf16.mxu0 %v4604_v17  ;;  %4085 = vmatprep.mubr.bf16.mxu0 %v1676_v11  ;;  %v4986_v58 = vadd.f32 %v4821_v19, %v325_v53  ;;  %470 = vst [vmem:[#allocation2 + $0x109] sm:$0xff] %v394_v3  ;;  %v399_v30 = vmax.f32 %v5033_v16, 0.0  ;;  %v333_v34 = vmul.f32 %v4816_v18, %v293_v26  ;;  %v4617_v38 = vld [vmem:[%s5581_s3 + $0x188] sm:$0xff]   ;;  %v4619_v55 = vld [vmem:[%s5581_s3 + $0x190] sm:$0xff]  }
  0x2a   : > { %3923 = vmatprep.subr.bf16.mxu1 %v4605_v24  ;;  %468 = vst [vmem:[#allocation2 + $0xf1] sm:$0xff] %v392_v56  ;;  %v5009_v10 = vadd.f32 %v4821_v19, %v326_v62  ;;  %v5024_v15 = vadd.f32 %v4821_v19, %v328_v7  ;;  %v588_v62 = vpack.c.bf16 %v391_v46, %v390_v45  ;;  %v1955_v45 = vld [vmem:[#allocation2 + $0x6a] sm:$0xff]  ;;  %v1956_v46 = vld [vmem:[#allocation2 + $0x7a] sm:$0xff]  ;;  %v1957_v51 = vld [vmem:[#allocation2 + $0x82] sm:$0xff] }
  0x2b   : > { %3924 = vmatpush3.bf16.msra.mxu1 %v4605_v24  ;;  %v395_v5 = vmax.f32 %v4986_v58, 0.0  ;;  %v331_v24 = vmul.f32 %v4816_v18, %v291_v20  ;;  %475 = vst [vmem:[#allocation2 + $0x141] sm:$0xff] %v399_v30  ;;  %v5074_v47 = vadd.f32 %v4821_v19, %v333_v34  ;;  %v5120_v6 = vpack.c.bf16 %v1953_v60, %v1952_v59 }
  0x2c   : > { %4116 = vmatpush3.bf16.msra.mxu0 %v4604_v17  ;;  %3925 = vmatprep.subr.bf16.mxu1 %v4608_v31  ;;  %v396_v9 = vmax.f32 %v5009_v10, 0.0  ;;  %v290_v17 = vld [vmem:[%s4803_s24 + $0xd0] sm:$0xff]  ;;  %v398_v21 = vmax.f32 %v5024_v15, 0.0  ;;  %v1959_v10 = vld [vmem:[#allocation2 + $0x9a] sm:$0xff]  ;;  %v1962_v15 = vld [vmem:[#allocation2 + $0xc2] sm:$0xff] }
  0x2d   : > { %4117 = vmatprep.subr.bf16.mxu0 %v4606_v35  ;;  %471 = vst [vmem:[#allocation2 + $0x111] sm:$0xff] %v395_v5  ;;  %v330_v23 = vmul.f32 %v4816_v18, %v290_v17  ;;  %v5060_v33 = vadd.f32 %v4821_v19, %v331_v24  ;;  %v403_v52 = vmax.f32 %v5074_v47, 0.0  ;;  %v590_v7 = vpack.c.bf16 %v395_v5, %v394_v3  ;;  %v1958_v5 = vld [vmem:[#allocation2 + $0x92] sm:$0xff]  ;;  %v1963_v16 = vld [vmem:[#allocation2 + $0xca] sm:$0xff] }
  0x2e   : > { %3894 = vmatmul.mubr.bf16.gmra.mrb[4].mxu1 %v1676_v11  ;;  %v5012_v11 = vadd.f32 %v4821_v19, %v327_v63  ;;  %472 = vst [vmem:[#allocation2 + $0x121] sm:$0xff] %v396_v9  ;;  %474 = vst [vmem:[#allocation2 + $0x139] sm:$0xff] %v398_v21  ;;  %v5112_v63 = vld [vmem:[%s5581_s3 + $0x80] sm:$0xff]   ;;  %v5145_v17 = vpack.c.bf16 %v1957_v51, %v1956_v46  ;;  %v488_v47 = vld [vmem:[#allocation2 + $0x38] sm:$0xff] }
  0x2f   : > { %4086 = vmatmul.mubr.bf16.gmra.mrb[4].mxu0 %v1677_v41  ;;  %3897 = vmatprep.mubr.bf16.mxu1 %v1677_v41  ;;  %v5057_v32 = vadd.f32 %v4821_v19, %v330_v23  ;;  %v1948_v41 = vld [vmem:[#allocation2 + $0x1a] sm:$0xff]  ;;  %479 = vst [vmem:[#allocation2 + $0x171] sm:$0xff] %v403_v52 }
  0x30   : > { %4118 = vmatpush3.bf16.msra.mxu0 %v4606_v35  ;;  %4089 = vmatprep.mubr.bf16.mxu0 %v1678_v44  ;;  %v397_v13 = vmax.f32 %v5012_v11, 0.0  ;;  %v5089_v53 = vpack.c.bf16 %v1949_v42, %v1948_v41  ;;  %v1961_v11 = vld [vmem:[#allocation2 + $0xb2] sm:$0xff]  ;;  %v1964_v26 = vld [vmem:[#allocation2 + $0xda] sm:$0xff] }
  0x31   : > { %4119 = vmatprep.subr.bf16.mxu0 %v4607_v50  ;;  %3926 = vmatpush3.bf16.msra.mxu1 %v4608_v31  ;;  %v332_v31 = vmul.f32 %v4816_v18, %v292_v25  ;;  %v400_v43 = vmax.f32 %v5057_v32, 0.0  ;;  %v4625_v25 = vld [vmem:[%s5581_s3 + $0x1a8] sm:$0xff]   ;;  %v5193_v32 = vpack.c.bf16 %v1963_v16, %v1962_v15  ;;  %v486_v41 = vld [vmem:[#allocation2 + $0x20] sm:$0xff]  ;;  %v4629_v42 = vld [vmem:[%s5581_s3 + $0x1b8] sm:$0xff]  }
  0x32   : > { %3927 = vmatprep.subr.bf16.mxu1 %v4611_v54  ;;  %473 = vst [vmem:[#allocation2 + $0x129] sm:$0xff] %v397_v13  ;;  %v497_v15 = vld [vmem:[#allocation2 + $0xa8] sm:$0xff]  ;;  %v498_v16 = vld [vmem:[#allocation2 + $0xb0] sm:$0xff] }
  0x33   : > { %v5066_v35 = vadd.f32 %v4821_v19, %v332_v31  ;;  %476 = vst [vmem:[#allocation2 + $0x151] sm:$0xff] %v400_v43 }
  0x34   : > { %4120 = vmatpush3.bf16.msra.mxu0 %v4607_v50  ;;  %v1681_v50 = vpack.c.bf16 %v389_v37, %v388_v36  ;;  %v1950_v36 = vld [vmem:[#allocation2 + $0x32] sm:$0xff]  ;;  %v1951_v37 = vld [vmem:[#allocation2 + $0x3a] sm:$0xff] }
  0x35   : > { %4121 = vmatprep.subr.bf16.mxu0 %v4609_v1  ;;  %3928 = vmatpush3.bf16.msra.mxu1 %v4611_v54  ;;  %v402_v49 = vmax.f32 %v5066_v35, 0.0  ;;  %v4615_v54 = vld [vmem:[%s5581_s3 + $0x180] sm:$0xff]   ;;  %v5114_v0 = vpack.c.bf16 %v1951_v37, %v1950_v36  ;;  %v1966_v35 = vld [vmem:[#allocation2 + $0xf2] sm:$0xff]  ;;  %v489_v36 = vld [vmem:[#allocation2 + $0x48] sm:$0xff] }
  0x36   : > { %3898 = vmatmul.mubr.bf16.gmra.mrb[8].mxu1 %v1678_v44  ;;  %3929 = vmatprep.subr.bf16.mxu1 %v4614_v8  ;;  %v401_v44 = vmax.f32 %v5060_v33, 0.0  ;;  %v490_v37 = vld [vmem:[#allocation2 + $0x50] sm:$0xff] }
  0x37   : > { %4090 = vmatmul.mubr.bf16.gmra.mrb[8].mxu0 %v1679_v14  ;;  %3901 = vmatprep.mubr.bf16.mxu1 %v1679_v14  ;;  %478 = vst [vmem:[#allocation2 + $0x169] sm:$0xff] %v402_v49  ;;  %v5139_v14 = vpack.c.bf16 %v1955_v45, %v1954_v39  ;;  %v5191_v31 = vpack.c.bf16 %v403_v52, %v402_v49  ;;  %v5207_v49 = vld [vmem:[%s5581_s3 + $0x1c0] sm:$0xff]  }
  0x38   : > { %4122 = vmatpush3.bf16.msra.mxu0 %v4609_v1  ;;  %4093 = vmatprep.mubr.bf16.mxu0 %v1680_v4  ;;  %477 = vst [vmem:[#allocation2 + $0x159] sm:$0xff] %v401_v44  ;;  %v589_v1 = vpack.c.bf16 %v393_v61, %v392_v56  ;;  %v294_v56 = vld [vmem:[%s4803_s24 + $0xf0] sm:$0xff]  ;;  %v295_v61 = vld [vmem:[%s4803_s24 + $0xf8] sm:$0xff]  ;;  %v593_v23 = vpack.c.bf16 %v401_v44, %v400_v43  ;;  %v1973_v45 = vld [vmem:[#allocation2 + $0x142] sm:$0xff] }
  0x39   : > { %4123 = vmatprep.subr.bf16.mxu0 %v4610_v22  ;;  %3930 = vmatpush3.bf16.msra.mxu1 %v4614_v8  ;;  %v334_v8 = vmul.f32 %v4816_v18, %v294_v56  ;;  %v335_v12 = vmul.f32 %v4816_v18, %v295_v61  ;;  %v4621_v18 = vld [vmem:[%s5581_s3 + $0x198] sm:$0xff]   ;;  %v487_v44 = vld [vmem:[#allocation2 + $0x30] sm:$0xff]  ;;  %v1970_v59 = vld [vmem:[#allocation2 + $0x122] sm:$0xff]  ;;  %v5229_v46 = vpack.c.bf16 %v490_v37, %v489_v36 }
  0x3a   : > { %3931 = vmatprep.subr.bf16.mxu1 %v4616_v29  ;;  %v1967_v43 = vld [vmem:[#allocation2 + $0xfa] sm:$0xff]  ;;  %v1971_v60 = vld [vmem:[#allocation2 + $0x12a] sm:$0xff] }
  0x3b   : > { %v5148_v20 = vadd.f32 %v4821_v19, %v334_v8  ;;  %v5151_v57 = vadd.f32 %v4821_v19, %v335_v12  ;;  %v1960_v19 = vld [vmem:[#allocation2 + $0xaa] sm:$0xff]  ;;  %v5211_v52 = vpack.c.bf16 %v1967_v43, %v1966_v35  ;;  %v1972_v39 = vld [vmem:[#allocation2 + $0x13a] sm:$0xff]  ;;  %v5231_v51 = vpack.c.bf16 %v1971_v60, %v1970_v59 }
  0x3c   : > { %4124 = vmatpush3.bf16.msra.mxu0 %v4610_v22  ;;  %v5171_v22 = vpack.c.bf16 %v1959_v10, %v1958_v5  ;;  %v5177_v24 = vpack.c.bf16 %v1961_v11, %v1960_v19  ;;  %v493_v56 = vld [vmem:[#allocation2 + $0x78] sm:$0xff]  ;;  %v4630_v19 = vld [vmem:[%s5581_s3 + $0xa0] sm:$0xff]   ;;  %v505_v36 = vld [vmem:[#allocation2 + $0x108] sm:$0xff] }
  0x3d   : > { %4125 = vmatprep.subr.bf16.mxu0 %v4612_v40  ;;  %3932 = vmatpush3.bf16.msra.mxu1 %v4616_v29  ;;  %v404_v58 = vmax.f32 %v5148_v20, 0.0  ;;  %v405_v3 = vmax.f32 %v5151_v57, 0.0  ;;  %v1965_v29 = vld [vmem:[#allocation2 + $0xe2] sm:$0xff]  ;;  %v4628_v61 = vld [vmem:[%s5581_s3 + $0x98] sm:$0xff]   ;;  %v506_v37 = vld [vmem:[#allocation2 + $0x110] sm:$0xff] }
  0x3e   : > { %3902 = vmatmul.mubr.bf16.gmra.mrb[12].mxu1 %v1680_v4  ;;  %3933 = vmatprep.subr.bf16.mxu1 %v4618_v48  ;;  %v591_v4 = vpack.c.bf16 %v397_v13, %v396_v9  ;;  %v4623_v9 = vld [vmem:[%s5581_s3 + $0x1a0] sm:$0xff]   ;;  %v592_v13 = vpack.c.bf16 %v399_v30, %v398_v21  ;;  %v4627_v30 = vld [vmem:[%s5581_s3 + $0x1b0] sm:$0xff]   ;;  %v5196_v34 = vpack.c.bf16 %v1965_v29, %v1964_v26  ;;  %v4636_v20 = vld [vmem:[%s5581_s3 + $0xb8] sm:$0xff]  }
  0x3f   : > { %4094 = vmatmul.mubr.bf16.gmra.mrb[12].mxu0 %v1681_v50  ;;  %3905 = vmatprep.mubr.bf16.mxu1 %v1681_v50  ;;  %480 = vst [vmem:[#allocation2 + $0x181] sm:$0xff] %v404_v58  ;;  %481 = vst [vmem:[#allocation2 + $0x189] sm:$0xff] %v405_v3  ;;  %v483_v21 = vld [vmem:[#allocation2] sm:$0xff]  ;;  %v1974_v8 = vld [vmem:[#allocation2 + $0x152] sm:$0xff]  ;;  %v5265_v26 = vpack.c.bf16 %v405_v3, %v404_v58 }
  0x40   : > { %4126 = vmatpush3.bf16.msra.mxu0 %v4612_v40  ;;  %4129 = vmatprep.mubr.bf16.mxu0 %v5089_v53  ;;  %v515_v33 = vpack.c.bf16 %v4675_v2, %v483_v21  ;;  %v485_v40 = vld [vmem:[#allocation2 + $0x18] sm:$0xff]  ;;  %v1968_v2 = vld [vmem:[#allocation2 + $0x10a] sm:$0xff]  ;;  %v499_v21 = vld [vmem:[#allocation2 + $0xc0] sm:$0xff] }
  0x41   : > { %4127 = vmatprep.subr.bf16.mxu0 %v4613_v27  ;;  %3934 = vmatpush3.bf16.msra.mxu1 %v4618_v48  ;;  %v1969_v48 = vld [vmem:[#allocation2 + $0x112] sm:$0xff]  ;;  %v5209_v50 = vpack.c.bf16 %v486_v41, %v485_v40  ;;  %v1975_v12 = vld [vmem:[#allocation2 + $0x15a] sm:$0xff]  ;;  %v1976_v5 = vld [vmem:[#allocation2 + $0x16a] sm:$0xff]  ;;  %v5271_v41 = vpack.c.bf16 %v498_v16, %v497_v15 }
  0x42   : > { %3935 = vmatprep.subr.bf16.mxu1 %v4620_v28  ;;  %v1977_v10 = vld [vmem:[#allocation2 + $0x172] sm:$0xff]  ;;  %v502_v58 = vld [vmem:[#allocation2 + $0xe0] sm:$0xff]  ;;  %v508_v59 = vld [vmem:[#allocation2 + $0x128] sm:$0xff] }
  0x43   : > { %v4634_v40 = vld [vmem:[%s5581_s3 + $0xb0] sm:$0xff]   ;;  %v501_v57 = vld [vmem:[#allocation2 + $0xd8] sm:$0xff] }
  0x44   : > { %4128 = vmatpush3.bf16.msra.mxu0 %v4613_v27  ;;  %v5213_v27 = vpack.c.bf16 %v488_v47, %v487_v44  ;;  %v503_v3 = vld [vmem:[#allocation2 + $0xf0] sm:$0xff]  ;;  %v504_v43 = vld [vmem:[#allocation2 + $0xf8] sm:$0xff]  ;;  %v5284_v44 = vld [vmem:[%s5581_s3 + $0xc0] sm:$0xff]   ;;  %v5286_v47 = vpack.c.bf16 %v502_v58, %v501_v57 }
  0x45   : > { %4161 = vmatprep.subr.bf16.mxu0 %v4615_v54  ;;  %3936 = vmatpush3.bf16.msra.mxu1 %v4620_v28  ;;  %v5215_v28 = vpack.c.bf16 %v1969_v48, %v1968_v2  ;;  %v5288_v2 = vpack.c.bf16 %v504_v43, %v503_v3  ;;  %v4633_v48 = vld [vmem:[%s5581_s3 + $0x1c8] sm:$0xff]   ;;  %v4635_v60 = vld [vmem:[%s5581_s3 + $0x1d0] sm:$0xff]   ;;  %v4645_v16 = vld [vmem:[%s5581_s3 + $0x1f8] sm:$0xff]  }
  0x46   : > { %3906 = vmatmul.mubr.bf16.gmra.mrb[16].mxu1 %v588_v62  ;;  %3969 = vmatprep.subr.bf16.mxu1 %v5112_v63  ;;  %v491_v62 = vld [vmem:[#allocation2 + $0x60] sm:$0xff]  ;;  %v4650_v58 = vld [vmem:[%s5581_s3 + $0xf0] sm:$0xff]   ;;  %v4658_v3 = vld [vmem:[#allocation2 + $0x8] sm:$0xff] }
  0x47   : > { %4130 = vmatmul.mubr.bf16.vlgmr.msra.gmra.mrb[0].mxu0 %v5114_v0  ;;  %3909 = vmatprep.mubr.bf16.mxu1 %v589_v1  ;;  %v492_v1 = vld [vmem:[#allocation2 + $0x68] sm:$0xff]  ;;  %v2562_v57 = vld [vmem:[#allocation2 + $0x39] sm:$0xff] }
  0x48   : > { %4162 = vmatpush3.bf16.msra.mxu0 %v4615_v54  ;;  %4133 = vmatprep.mubr.bf16.mxu0 %v5120_v6  ;;  %v4624_v54 = vld [vmem:[%s5581_s3 + $0x88] sm:$0xff]  }
  0x49   : > { %4163 = vmatprep.subr.bf16.mxu0 %v4617_v38  ;;  %v1978_v29 = vld [vmem:[#allocation2 + $0x182] sm:$0xff] }
  0x4c   : > { %4164 = vmatpush3.bf16.msra.mxu0 %v4617_v38  ;;  %v4626_v38 = vld [vmem:[%s5581_s3 + $0x90] sm:$0xff]  }
  0x4d   : > { %4165 = vmatprep.subr.bf16.mxu0 %v4619_v55 }
  0x4e   : > { %3910 = vmatmul.mubr.bf16.gmra.mrb[20].mxu1 %v590_v7  ;;  %v494_v7 = vld [vmem:[#allocation2 + $0x80] sm:$0xff] }
  0x4f   : > { %4134 = vmatmul.mubr.bf16.gmra.mrb[4].mxu0 %v5139_v14  ;;  %3913 = vmatprep.mubr.bf16.mxu1 %v591_v4  ;;  %v495_v4 = vld [vmem:[#allocation2 + $0x90] sm:$0xff]  ;;  %v5247_v11 = vpack.c.bf16 %v494_v7, %v493_v56  ;;  %v512_v56 = vld [vmem:[#allocation2 + $0x158] sm:$0xff] }
  0x50   : > { %4137 = vmatprep.mubr.bf16.mxu0 %v5145_v17  ;;  %4166 = vmatpush3.bf16.msra.mxu0 %v4619_v55  ;;  %v5233_v55 = vpack.c.bf16 %v492_v1, %v491_v62  ;;  %v5302_v62 = vpack.c.bf16 %v506_v37, %v505_v36  ;;  %v2565_v36 = vld [vmem:[#allocation2 + $0x61] sm:$0xff]  ;;  %v2566_v37 = vld [vmem:[#allocation2 + $0x69] sm:$0xff] }
  0x51   : > { %4167 = vmatprep.subr.bf16.mxu0 %v4621_v18 }
  0x54   : > { %4168 = vmatpush3.bf16.msra.mxu0 %v4621_v18  ;;  %v496_v18 = vld [vmem:[#allocation2 + $0x98] sm:$0xff] }
  0x55   : > { %4169 = vmatprep.subr.bf16.mxu0 %v4623_v9 }
  0x56   : > { %3914 = vmatmul.mubr.bf16.gmra.mrb[24].mxu1 %v592_v13  ;;  %v5251_v13 = vpack.c.bf16 %v496_v18, %v495_v4  ;;  %v513_v4 = vld [vmem:[#allocation2 + $0x168] sm:$0xff]  ;;  %v514_v18 = vld [vmem:[#allocation2 + $0x170] sm:$0xff] }
  0x57   : > { %4138 = vmatmul.mubr.bf16.gmra.mrb[8].mxu0 %v5171_v22  ;;  %3917 = vmatprep.mubr.bf16.mxu1 %v593_v23  ;;  %v5253_v23 = vpack.c.bf16 %v1977_v10, %v1976_v5  ;;  %v1030_v5 = vld [vmem:[#allocation2 + $0x2] sm:$0xff]  ;;  %v1031_v10 = vld [vmem:[#allocation2 + $0xa] sm:$0xff] }
  0x58   : > { %4141 = vmatprep.mubr.bf16.mxu0 %v5177_v24  ;;  %4170 = vmatpush3.bf16.msra.mxu0 %v4623_v9  ;;  %v5249_v9 = vpack.c.bf16 %v1975_v12, %v1974_v8  ;;  %v4641_v12 = vld [vmem:[%s5581_s3 + $0x1e8] sm:$0xff]   ;;  %v1062_v15 = vpack.c.bf16 %v1031_v10, %v1030_v5  ;;  %v4654_v5 = vld [vmem:[%s5581_s3 + $0x220] sm:$0xff]  }
  0x59   : > { %4171 = vmatprep.subr.bf16.mxu0 %v4625_v25 }
  0x5c   : > { %4172 = vmatpush3.bf16.msra.mxu0 %v4625_v25  ;;  %v4632_v25 = vld [vmem:[%s5581_s3 + $0xa8] sm:$0xff]  }
  0x5d   : > { %4173 = vmatprep.subr.bf16.mxu0 %v4627_v30 }
  0x5e   : > { %3918 = vmatmul.mubr.bf16.gmra.mrb[28].mxu1 %v5191_v31 }
  0x5f   : > { %4142 = vmatmul.mubr.bf16.gmra.mrb[12].mxu0 %v5193_v32  ;;  %3937 = vmatprep.mubr.bf16.mxu1 %v515_v33  ;;  %v500_v33 = vld [vmem:[#allocation2 + $0xc8] sm:$0xff] }
  0x60   : > { %4145 = vmatprep.mubr.bf16.mxu0 %v5196_v34  ;;  %4174 = vmatpush3.bf16.msra.mxu0 %v4627_v30  ;;  %v1979_v30 = vld [vmem:[#allocation2 + $0x18a] sm:$0xff]  ;;  %v5273_v35 = vpack.c.bf16 %v500_v33, %v499_v21  ;;  %v4647_v21 = vld [vmem:[%s5581_s3 + $0x200] sm:$0xff]   ;;  %v4644_v33 = vld [vmem:[%s5581_s3 + $0xd8] sm:$0xff]  }
  0x61   : > { %4175 = vmatprep.subr.bf16.mxu0 %v4629_v42 }
  0x64   : > { %4176 = vmatpush3.bf16.msra.mxu0 %v4629_v42  ;;  %v1995_v42 = vpack.c.bf16 %v1979_v30, %v1978_v29  ;;  %v4640_v29 = vld [vmem:[%s5581_s3 + $0xc8] sm:$0xff]   ;;  %v4642_v30 = vld [vmem:[%s5581_s3 + $0xd0] sm:$0xff]  }
  0x65   : > { %4209 = vmatprep.subr.bf16.mxu0 %v5207_v49 }
  0x66   : > { %3938 = vmatmul.mubr.bf16.vlgmr.msra.gmra.mrb[0].mxu1 %v5209_v50 }
  0x67   : > { %4146 = vmatmul.mubr.bf16.gmra.mrb[16].mxu0 %v5211_v52  ;;  %3970 = vmatpush3.bf16.msra.mxu1 %v5112_v63  ;;  %v5235_v63 = vpack.c.bf16 %v1973_v45, %v1972_v39  ;;  %v510_v39 = vld [vmem:[#allocation2 + $0x140] sm:$0xff]  ;;  %v511_v45 = vld [vmem:[#allocation2 + $0x150] sm:$0xff] }
  0x68   : > { %3941 = vmatprep.mubr.bf16.mxu1 %v5213_v27  ;;  %4149 = vmatprep.mubr.bf16.mxu0 %v5215_v28  ;;  %v5318_v8 = vpack.c.bf16 %v512_v56, %v511_v45  ;;  %v4651_v45 = vld [vmem:[%s5581_s3 + $0x210] sm:$0xff]  }
  0x69   : > { %3971 = vmatprep.subr.bf16.mxu1 %v4624_v54 }
  0x6b   : > { %3972 = vmatpush3.bf16.msra.mxu1 %v4624_v54  ;;  %v507_v54 = vld [vmem:[#allocation2 + $0x120] sm:$0xff] }
  0x6c   : > { %3973 = vmatprep.subr.bf16.mxu1 %v4626_v38  ;;  %v5304_v1 = vpack.c.bf16 %v508_v59, %v507_v54  ;;  %v2595_v59 = vpack.c.bf16 %v2566_v37, %v2565_v36 }
  0x6e   : > { %3942 = vmatmul.mubr.bf16.gmra.mrb[4].mxu1 %v5229_v46 }
  0x6f   : > { %4150 = vmatmul.mubr.bf16.gmra.mrb[20].mxu0 %v5231_v51  ;;  %3945 = vmatprep.mubr.bf16.mxu1 %v5233_v55 }
  0x70   : > { %4153 = vmatprep.mubr.bf16.mxu0 %v5235_v63  ;;  %3974 = vmatpush3.bf16.msra.mxu1 %v4626_v38  ;;  %v4637_v38 = vld [vmem:[%s5581_s3 + $0x1d8] sm:$0xff]  }
  0x71   : > { %3975 = vmatprep.subr.bf16.mxu1 %v4628_v61 }
  0x74   : > { %3976 = vmatpush3.bf16.msra.mxu1 %v4628_v61  ;;  %v4639_v61 = vld [vmem:[%s5581_s3 + $0x1e0] sm:$0xff]  }
  0x75   : > { %3977 = vmatprep.subr.bf16.mxu1 %v4630_v19 }
  0x76   : > { %3946 = vmatmul.mubr.bf16.gmra.mrb[8].mxu1 %v5247_v11 }
  0x77   : > { %4154 = vmatmul.mubr.bf16.gmra.mrb[24].mxu0 %v5249_v9  ;;  %3949 = vmatprep.mubr.bf16.mxu1 %v5251_v13 }
  0x78   : > { %4157 = vmatprep.mubr.bf16.mxu0 %v5253_v23  ;;  %3978 = vmatpush3.bf16.msra.mxu1 %v4630_v19  ;;  %v4643_v19 = vld [vmem:[%s5581_s3 + $0x1f0] sm:$0xff]  }
  0x79   : > { %3979 = vmatprep.subr.bf16.mxu1 %v4632_v25 }
  0x7c   : > { %3980 = vmatpush3.bf16.msra.mxu1 %v4632_v25  ;;  %v5330_v25 = vpack.c.bf16 %v514_v18, %v513_v4  ;;  %v2573_v4 = vld [vmem:[#allocation2 + $0xc1] sm:$0xff]  ;;  %v2574_v18 = vld [vmem:[#allocation2 + $0xc9] sm:$0xff] }
  0x7d   : > { %3981 = vmatprep.subr.bf16.mxu1 %v4634_v40 }
  0x7e   : > { %3950 = vmatmul.mubr.bf16.gmra.mrb[12].mxu1 %v5271_v41 }
  0x7f   : > { %4158 = vmatmul.mubr.bf16.gmra.mrb[28].mxu0 %v1995_v42  ;;  %3953 = vmatprep.mubr.bf16.mxu1 %v5273_v35 }
  0x80   : > { %4177 = vmatprep.mubr.bf16.mxu0 %v5213_v27  ;;  %3982 = vmatpush3.bf16.msra.mxu1 %v4634_v40  ;;  %v4646_v40 = vld [vmem:[%s5581_s3 + $0xe0] sm:$0xff]  }
  0x81   : > { %3983 = vmatprep.subr.bf16.mxu1 %v4636_v20 }
  0x84   : > { %3984 = vmatpush3.bf16.msra.mxu1 %v4636_v20  ;;  %v2561_v20 = vld [vmem:[#allocation2 + $0x31] sm:$0xff] }
  0x85   : > { %4017 = vmatprep.subr.bf16.mxu1 %v5284_v44 }
  0x86   : > { %3954 = vmatmul.mubr.bf16.gmra.mrb[16].mxu1 %v5286_v47 }
  0x87   : > { %4178 = vmatmul.mubr.bf16.vlgmr.msra.gmra.mrb[0].mxu0 %v5229_v46  ;;  %3957 = vmatprep.mubr.bf16.mxu1 %v5288_v2 }
  0x88   : > { %4210 = vmatpush3.bf16.msra.mxu0 %v5207_v49  ;;  %4181 = vmatprep.mubr.bf16.mxu0 %v5233_v55  ;;  %v509_v49 = vld [vmem:[#allocation2 + $0x138] sm:$0xff] }
  0x89   : > { %4211 = vmatprep.subr.bf16.mxu0 %v4633_v48  ;;  %v5316_v7 = vpack.c.bf16 %v510_v39, %v509_v49  ;;  %v2569_v49 = vld [vmem:[#allocation2 + $0x91] sm:$0xff]  ;;  %v2570_v39 = vld [vmem:[#allocation2 + $0x99] sm:$0xff] }
  0x8c   : > { %4212 = vmatpush3.bf16.msra.mxu0 %v4633_v48  ;;  %v2564_v48 = vld [vmem:[#allocation2 + $0x51] sm:$0xff] }
  0x8d   : > { %4213 = vmatprep.subr.bf16.mxu0 %v4635_v60 }
  0x8e   : > { %3958 = vmatmul.mubr.bf16.gmra.mrb[20].mxu1 %v5302_v62 }
  0x8f   : > { %4182 = vmatmul.mubr.bf16.gmra.mrb[4].mxu0 %v5247_v11  ;;  %3961 = vmatprep.mubr.bf16.mxu1 %v5304_v1 }
  0x90   : > { %4185 = vmatprep.mubr.bf16.mxu0 %v5251_v13  ;;  %4214 = vmatpush3.bf16.msra.mxu0 %v4635_v60  ;;  %v4649_v60 = vld [vmem:[%s5581_s3 + $0x208] sm:$0xff]  }
  0x91   : > { %4215 = vmatprep.subr.bf16.mxu0 %v4637_v38 }
  0x94   : > { %4216 = vmatpush3.bf16.msra.mxu0 %v4637_v38  ;;  %v2568_v38 = vld [vmem:[#allocation2 + $0x81] sm:$0xff] }
  0x95   : > { %4217 = vmatprep.subr.bf16.mxu0 %v4639_v61 }
  0x96   : > { %3962 = vmatmul.mubr.bf16.gmra.mrb[24].mxu1 %v5316_v7 }
  0x97   : > { %4186 = vmatmul.mubr.bf16.gmra.mrb[8].mxu0 %v5271_v41  ;;  %3965 = vmatprep.mubr.bf16.mxu1 %v5318_v8 }
  0x98   : > { %4189 = vmatprep.mubr.bf16.mxu0 %v5273_v35  ;;  %4218 = vmatpush3.bf16.msra.mxu0 %v4639_v61  ;;  %v2597_v61 = vpack.c.bf16 %v2570_v39, %v2569_v49 }
  0x99   : > { %4219 = vmatprep.subr.bf16.mxu0 %v4641_v12 }
  0x9c   : > { %4220 = vmatpush3.bf16.msra.mxu0 %v4641_v12  ;;  %v2572_v12 = vld [vmem:[#allocation2 + $0xb1] sm:$0xff] }
  0x9d   : > { %4221 = vmatprep.subr.bf16.mxu0 %v4643_v19 }
  0x9e   : > { %3966 = vmatmul.mubr.bf16.gmra.mrb[28].mxu1 %v5330_v25 }
  0x9f   : > { %4190 = vmatmul.mubr.bf16.gmra.mrb[12].mxu0 %v5286_v47  ;;  %3985 = vmatprep.mubr.bf16.mxu1 %v1062_v15  ;;  %v2576_v15 = vld [vmem:[#allocation2 + $0xe1] sm:$0xff] }
  0xa0   : > { %4193 = vmatprep.mubr.bf16.mxu0 %v5288_v2  ;;  %4222 = vmatpush3.bf16.msra.mxu0 %v4643_v19  ;;  %v2599_v19 = vpack.c.bf16 %v2574_v18, %v2573_v4  ;;  %v2883_v4 = vld [vmem:[#allocation2 + $0xf2] sm:$0xff] }
  0xa1   : > { %4223 = vmatprep.subr.bf16.mxu0 %v4645_v16 }
  0xa4   : > { %4224 = vmatpush3.bf16.msra.mxu0 %v4645_v16  ;;  %v2577_v16 = vld [vmem:[#allocation2 + $0xf1] sm:$0xff] }
  0xa5   : > { %4257 = vmatprep.subr.bf16.mxu0 %v4647_v21 }
  0xa6   : > { %3986 = vmatmul.mubr.bf16.vlgmr.msra.gmra.mrb[0].mxu1 %v5089_v53  ;;  %v2283_v53 = vld [vmem:[#allocation2 + $0x180] sm:$0xff] }
  0xa7   : > { %4194 = vmatmul.mubr.bf16.gmra.mrb[16].mxu0 %v5302_v62  ;;  %4018 = vmatpush3.bf16.msra.mxu1 %v5284_v44  ;;  %v2593_v44 = vpack.c.bf16 %v2562_v57, %v2561_v20  ;;  %v4660_v20 = vld [vmem:[%s5581_s3 + $0x108] sm:$0xff]   ;;  %v2585_v57 = vld [vmem:[#allocation2 + $0x151] sm:$0xff] }
  0xa8   : > { %3989 = vmatprep.mubr.bf16.mxu1 %v5114_v0  ;;  %4197 = vmatprep.mubr.bf16.mxu0 %v5304_v1  ;;  %v2284_v0 = vld [vmem:[#allocation2 + $0x188] sm:$0xff] }
  0xa9   : > { %4019 = vmatprep.subr.bf16.mxu1 %v4640_v29  ;;  %v5362_v42 = vpack.c.bf16 %v2284_v0, %v2283_v53  ;;  %v2580_v53 = vld [vmem:[#allocation2 + $0x111] sm:$0xff]  ;;  %v2581_v0 = vld [vmem:[#allocation2 + $0x121] sm:$0xff] }
  0xab   : > { %4020 = vmatpush3.bf16.msra.mxu1 %v4640_v29  ;;  %v4656_v29 = vld [vmem:[%s5581_s3 + $0x230] sm:$0xff]  }
  0xac   : > { %4021 = vmatprep.subr.bf16.mxu1 %v4642_v30 }
  0xae   : > { %3990 = vmatmul.mubr.bf16.gmra.mrb[4].mxu1 %v5120_v6  ;;  %v4648_v6 = vld [vmem:[%s5581_s3 + $0xe8] sm:$0xff]  }
  0xaf   : > { %4198 = vmatmul.mubr.bf16.gmra.mrb[20].mxu0 %v5316_v7  ;;  %3993 = vmatprep.mubr.bf16.mxu1 %v5139_v14  ;;  %v2285_v14 = vld [vmem:[#allocation2 + $0x198] sm:$0xff] }
  0xb0   : > { %4201 = vmatprep.mubr.bf16.mxu0 %v5318_v8  ;;  %4022 = vmatpush3.bf16.msra.mxu1 %v4642_v30  ;;  %v2302_v43 = vpack.c.bf16 %v4658_v3, %v2285_v14 }
  0xb1   : > { %4023 = vmatprep.subr.bf16.mxu1 %v4644_v33 }
  0xb4   : > { %4024 = vmatpush3.bf16.msra.mxu1 %v4644_v33 }
  0xb5   : > { %4025 = vmatprep.subr.bf16.mxu1 %v4646_v40 }
  0xb6   : > { %3994 = vmatmul.mubr.bf16.gmra.mrb[8].mxu1 %v5145_v17  ;;  %v4652_v17 = vld [vmem:[%s5581_s3 + $0xf8] sm:$0xff]  }
  0xb7   : > { %4202 = vmatmul.mubr.bf16.gmra.mrb[24].mxu0 %v5330_v25  ;;  %3997 = vmatprep.mubr.bf16.mxu1 %v5171_v22  ;;  %v2563_v22 = vld [vmem:[#allocation2 + $0x49] sm:$0xff] }
  0xb8   : > { %4205 = vmatprep.mubr.bf16.mxu0 %v5362_v42  ;;  %4026 = vmatpush3.bf16.msra.mxu1 %v4646_v40  ;;  %v2594_v54 = vpack.c.bf16 %v2564_v48, %v2563_v22  ;;  %v2582_v40 = vld [vmem:[#allocation2 + $0x129] sm:$0xff]  ;;  %v2868_v22 = vld [vmem:[#allocation2 + $0x3a] sm:$0xff] }
  0xb9   : > { %4027 = vmatprep.subr.bf16.mxu1 %v4648_v6  ;;  %v5422_v14 = vpack.c.bf16 %v2582_v40, %v2581_v0  ;;  %v4664_v48 = vld [vmem:[%s5581_s3 + $0x128] sm:$0xff]  }
  0xba   : > { %v2896_v0 = vld [vmem:[#allocation2 + $0x18a] sm:$0xff] }
  0xbc   : > { %4028 = vmatpush3.bf16.msra.mxu1 %v4648_v6 }
  0xbd   : > { %4029 = vmatprep.subr.bf16.mxu1 %v4650_v58 }
  0xbe   : > { %3998 = vmatmul.mubr.bf16.gmra.mrb[12].mxu1 %v5177_v24  ;;  %v5385_v24 = vld [vmem:[%s5581_s3 + $0x100] sm:$0xff]  }
  0xbf   : > { %4206 = vmatmul.mubr.bf16.gmra.mrb[28].mxu0 %v2302_v43  ;;  %4001 = vmatprep.mubr.bf16.mxu1 %v5193_v32  ;;  %v2567_v32 = vld [vmem:[#allocation2 + $0x79] sm:$0xff] }
  0xc0   : > { %4225 = vmatprep.mubr.bf16.mxu0 %v2593_v44  ;;  %4030 = vmatpush3.bf16.msra.mxu1 %v4650_v58  ;;  %v2596_v56 = vpack.c.bf16 %v2568_v38, %v2567_v32  ;;  %v2586_v58 = vld [vmem:[#allocation2 + $0x159] sm:$0xff] }
  0xc1   : > { %4031 = vmatprep.subr.bf16.mxu1 %v4652_v17  ;;  %v4662_v43 = vld [vmem:[%s5581_s3 + $0x118] sm:$0xff]   ;;  %v4663_v44 = vld [vmem:[%s5581_s3 + $0x120] sm:$0xff]  }
  0xc2   : > { %v2875_v32 = vld [vmem:[#allocation2 + $0x92] sm:$0xff]  ;;  %v2876_v38 = vld [vmem:[#allocation2 + $0x9a] sm:$0xff] }
  0xc3   : > { %v2903_v39 = vpack.c.bf16 %v2876_v38, %v2875_v32 }
  0xc4   : > { %4032 = vmatpush3.bf16.msra.mxu1 %v4652_v17  ;;  %v2867_v17 = vld [vmem:[#allocation2 + $0x32] sm:$0xff] }
  0xc5   : > { %4305 = vmatprep.subr.bf16.mxu1 %v5385_v24  ;;  %v2899_v37 = vpack.c.bf16 %v2868_v22, %v2867_v17 }
  0xc6   : > { %4002 = vmatmul.mubr.bf16.gmra.mrb[16].mxu1 %v5196_v34  ;;  %v4653_v34 = vld [vmem:[%s5581_s3 + $0x218] sm:$0xff]  }
  0xc7   : > { %4226 = vmatmul.mubr.bf16.vlgmr.msra.gmra.mrb[0].mxu0 %v2594_v54  ;;  %4005 = vmatprep.mubr.bf16.mxu1 %v5211_v52  ;;  %v2571_v52 = vld [vmem:[#allocation2 + $0xa9] sm:$0xff] }
  0xc8   : > { %4258 = vmatpush3.bf16.msra.mxu0 %v4647_v21  ;;  %4229 = vmatprep.mubr.bf16.mxu0 %v2595_v59  ;;  %v2598_v10 = vpack.c.bf16 %v2572_v12, %v2571_v52  ;;  %v2578_v21 = vld [vmem:[#allocation2 + $0xf9] sm:$0xff]  ;;  %v2872_v54 = vld [vmem:[#allocation2 + $0x6a] sm:$0xff]  ;;  %v2882_v12 = vld [vmem:[#allocation2 + $0xe2] sm:$0xff] }
  0xc9   : > { %4259 = vmatprep.subr.bf16.mxu0 %v4649_v60  ;;  %v5411_v33 = vpack.c.bf16 %v2578_v21, %v2577_v16  ;;  %v4666_v59 = vld [vmem:[%s5581_s3 + $0x138] sm:$0xff]  }
  0xca   : > { %v2891_v16 = vld [vmem:[#allocation2 + $0x152] sm:$0xff] }
  0xcc   : > { %4260 = vmatpush3.bf16.msra.mxu0 %v4649_v60 }
  0xcd   : > { %4261 = vmatprep.subr.bf16.mxu0 %v4651_v45 }
  0xce   : > { %4006 = vmatmul.mubr.bf16.gmra.mrb[20].mxu1 %v5215_v28  ;;  %v4655_v28 = vld [vmem:[%s5581_s3 + $0x228] sm:$0xff]  }
  0xcf   : > { %4230 = vmatmul.mubr.bf16.gmra.mrb[4].mxu0 %v2596_v56  ;;  %4009 = vmatprep.mubr.bf16.mxu1 %v5231_v51  ;;  %v2575_v51 = vld [vmem:[#allocation2 + $0xd9] sm:$0xff] }
  0xd0   : > { %4233 = vmatprep.mubr.bf16.mxu0 %v2597_v61  ;;  %4262 = vmatpush3.bf16.msra.mxu0 %v4651_v45  ;;  %v5409_v30 = vpack.c.bf16 %v2576_v15, %v2575_v51  ;;  %v2877_v45 = vld [vmem:[#allocation2 + $0xaa] sm:$0xff]  ;;  %v2878_v56 = vld [vmem:[#allocation2 + $0xb2] sm:$0xff]  ;;  %v2879_v61 = vld [vmem:[#allocation2 + $0xc2] sm:$0xff] }
  0xd1   : > { %4263 = vmatprep.subr.bf16.mxu0 %v4653_v34  ;;  %v2890_v15 = vld [vmem:[#allocation2 + $0x142] sm:$0xff] }
  0xd4   : > { %4264 = vmatpush3.bf16.msra.mxu0 %v4653_v34  ;;  %v2904_v34 = vpack.c.bf16 %v2878_v56, %v2877_v45 }
  0xd5   : > { %4265 = vmatprep.subr.bf16.mxu0 %v4654_v5 }
  0xd6   : > { %4010 = vmatmul.mubr.bf16.gmra.mrb[24].mxu1 %v5235_v63  ;;  %v4657_v63 = vld [vmem:[%s5581_s3 + $0x238] sm:$0xff]  }
  0xd7   : > { %4234 = vmatmul.mubr.bf16.gmra.mrb[8].mxu0 %v2598_v10  ;;  %4013 = vmatprep.mubr.bf16.mxu1 %v5249_v9  ;;  %v2579_v9 = vld [vmem:[#allocation2 + $0x109] sm:$0xff]  ;;  %v2886_v10 = vld [vmem:[#allocation2 + $0x112] sm:$0xff] }
  0xd8   : > { %4237 = vmatprep.mubr.bf16.mxu0 %v2599_v19  ;;  %4266 = vmatpush3.bf16.msra.mxu0 %v4654_v5  ;;  %v5420_v6 = vpack.c.bf16 %v2580_v53, %v2579_v9  ;;  %v2887_v19 = vld [vmem:[#allocation2 + $0x122] sm:$0xff] }
  0xd9   : > { %4267 = vmatprep.subr.bf16.mxu0 %v4655_v28  ;;  %v1670_v9 = vld [vmem:[#allocation2 + $0x169] sm:$0xff] }
  0xda   : > { %v2895_v53 = vld [vmem:[#allocation2 + $0x182] sm:$0xff] }
  0xdc   : > { %4268 = vmatpush3.bf16.msra.mxu0 %v4655_v28 }
  0xdd   : > { %4269 = vmatprep.subr.bf16.mxu0 %v4656_v29 }
  0xde   : > { %4014 = vmatmul.mubr.bf16.gmra.mrb[28].mxu1 %v5253_v23  ;;  %v2584_v23 = vld [vmem:[#allocation2 + $0x141] sm:$0xff] }
  0xdf   : > { %4238 = vmatmul.mubr.bf16.gmra.mrb[12].mxu0 %v5409_v30  ;;  %4033 = vmatprep.mubr.bf16.mxu1 %v5209_v50  ;;  %v2583_v50 = vld [vmem:[#allocation2 + $0x139] sm:$0xff] }
  0xe0   : > { %4241 = vmatprep.mubr.bf16.mxu0 %v5411_v33  ;;  %4270 = vmatpush3.bf16.msra.mxu0 %v4656_v29  ;;  %v5432_v3 = vpack.c.bf16 %v2584_v23, %v2583_v50  ;;  %v2913_v50 = vpack.c.bf16 %v2896_v0, %v2895_v53  ;;  %v1672_v23 = vld [vmem:[#allocation2 + $0x181] sm:$0xff] }
  0xe1   : > { %4271 = vmatprep.subr.bf16.mxu0 %v4657_v63 }
  0xe4   : > { %4272 = vmatpush3.bf16.msra.mxu0 %v4657_v63  ;;  %v2894_v63 = vld [vmem:[#allocation2 + $0x172] sm:$0xff] }
  0xe6   : > { %4034 = vmatmul.mubr.bf16.vlgmr.msra.gmra.mrb[0].mxu1 %v5213_v27  ;;  %v5434_v27 = vpack.c.bf16 %v2586_v58, %v2585_v57  ;;  %v2898_v57 = vld [vmem:[#allocation2 + $0x1a2] sm:$0xff] }
  0xe7   : > { %4242 = vmatmul.mubr.bf16.gmra.mrb[16].mxu0 %v5420_v6  ;;  %4313 = vmatpush3.bf16.msra.mxu1 %v5385_v24 }
  0xe8   : > { %4037 = vmatprep.mubr.bf16.mxu1 %v5229_v46  ;;  %4245 = vmatprep.mubr.bf16.mxu0 %v5422_v14  ;;  %v4661_v46 = vld [vmem:[%s5581_s3 + $0x110] sm:$0xff]  }
  0xe9   : > { %4306 = vmatprep.subr.bf16.mxu1 %v4660_v20 }
  0xeb   : > { %4314 = vmatpush3.bf16.msra.mxu1 %v4660_v20  ;;  %v1673_v20 = vld [vmem:[#allocation2 + $0x189] sm:$0xff] }
  0xec   : > { %4307 = vmatprep.subr.bf16.mxu1 %v4661_v46  ;;  %v1689_v58 = vpack.c.bf16 %v1673_v20, %v1672_v23 }
  0xee   : > { %4038 = vmatmul.mubr.bf16.gmra.mrb[4].mxu1 %v5233_v55  ;;  %v2591_v55 = vld [vmem:[#allocation2 + $0x199] sm:$0xff] }
  0xef   : > { %4246 = vmatmul.mubr.bf16.gmra.mrb[20].mxu0 %v5432_v3  ;;  %4041 = vmatprep.mubr.bf16.mxu1 %v5247_v11  ;;  %v2592_v11 = vld [vmem:[#allocation2 + $0x1a1] sm:$0xff] }
  0xf0   : > { %4249 = vmatprep.mubr.bf16.mxu0 %v5434_v27  ;;  %4315 = vmatpush3.bf16.msra.mxu1 %v4661_v46  ;;  %v2608_v36 = vpack.c.bf16 %v2592_v11, %v2591_v55 }
  0xf1   : > { %4308 = vmatprep.subr.bf16.mxu1 %v4662_v43 }
  0xf4   : > { %4316 = vmatpush3.bf16.msra.mxu1 %v4662_v43 }
  0xf5   : > { %4309 = vmatprep.subr.bf16.mxu1 %v4663_v44 }
  0xf6   : > { %4042 = vmatmul.mubr.bf16.gmra.mrb[8].mxu1 %v5251_v13  ;;  %v2869_v13 = vld [vmem:[#allocation2 + $0x4a] sm:$0xff] }
  0xf7   : > { %4250 = vmatmul.mubr.bf16.gmra.mrb[24].mxu0 %v5191_v31  ;;  %4045 = vmatprep.mubr.bf16.mxu1 %v5271_v41  ;;  %v4665_v31 = vld [vmem:[%s5581_s3 + $0x130] sm:$0xff]   ;;  %v2871_v41 = vld [vmem:[#allocation2 + $0x62] sm:$0xff] }
  0xf8   : > { %4253 = vmatprep.mubr.bf16.mxu0 %v5265_v26  ;;  %4317 = vmatpush3.bf16.msra.mxu1 %v4663_v44  ;;  %v2870_v26 = vld [vmem:[#allocation2 + $0x52] sm:$0xff]  ;;  %v2901_v24 = vpack.c.bf16 %v2872_v54, %v2871_v41 }
  0xf9   : > { %4310 = vmatprep.subr.bf16.mxu1 %v4664_v48  ;;  %v2900_v60 = vpack.c.bf16 %v2870_v26, %v2869_v13 }
  0xfc   : > { %4318 = vmatpush3.bf16.msra.mxu1 %v4664_v48 }
  0xfd   : > { %4311 = vmatprep.subr.bf16.mxu1 %v4665_v31 }
  0xfe   : > { %4046 = vmatmul.mubr.bf16.gmra.mrb[12].mxu1 %v5273_v35  ;;  %v2873_v35 = vld [vmem:[#allocation2 + $0x7a] sm:$0xff] }
  0xff   : > { %4254 = vmatmul.mubr.bf16.gmra.mrb[28].mxu0 %v2608_v36  ;;  %4049 = vmatprep.mubr.bf16.mxu1 %v5286_v47  ;;  %v2874_v47 = vld [vmem:[#allocation2 + $0x82] sm:$0xff] }
 0x100   : > { %4273 = vmatprep.mubr.bf16.mxu0 %v2899_v37  ;;  %4319 = vmatpush3.bf16.msra.mxu1 %v4665_v31  ;;  %v2902_v49 = vpack.c.bf16 %v2874_v47, %v2873_v35 }
 0x101   : > { %4312 = vmatprep.subr.bf16.mxu1 %v4666_v59 }
 0x104   : > { %4320 = vmatpush3.bf16.msra.mxu1 %v4666_v59  ;;  %v5492_v59 = vld [vmem:[%s5582_s4] ss:$0 sm:$0xff] }
 0x106   : > { %4050 = vmatmul.mubr.bf16.gmra.mrb[16].mxu1 %v5288_v2  ;;  %v2880_v2 = vld [vmem:[#allocation2 + $0xca] sm:$0xff] }
 0x107   : > { %4274 = vmatmul.mubr.bf16.vlgmr.msra.gmra.mrb[0].mxu0 %v2900_v60  ;;  %4053 = vmatprep.mubr.bf16.mxu1 %v5302_v62  ;;  %v2905_v52 = vpack.c.bf16 %v2880_v2, %v2879_v61  ;;  %v2881_v62 = vld [vmem:[#allocation2 + $0xda] sm:$0xff] }
 0x108   : > { %4277 = vmatprep.mubr.bf16.mxu0 %v2901_v24  ;;  %v2906_v18 = vpack.c.bf16 %v2882_v12, %v2881_v62 }
 0x10e   : > { %4054 = vmatmul.mubr.bf16.gmra.mrb[20].mxu1 %v5304_v1  ;;  %v2884_v1 = vld [vmem:[#allocation2 + $0xfa] sm:$0xff] }
 0x10f   : > { %4278 = vmatmul.mubr.bf16.gmra.mrb[4].mxu0 %v2902_v49  ;;  %4057 = vmatprep.mubr.bf16.mxu1 %v5316_v7  ;;  %v2907_v5 = vpack.c.bf16 %v2884_v1, %v2883_v4  ;;  %v2885_v7 = vld [vmem:[#allocation2 + $0x10a] sm:$0xff] }
 0x110   : > { %4281 = vmatprep.mubr.bf16.mxu0 %v2903_v39  ;;  %v2908_v28 = vpack.c.bf16 %v2886_v10, %v2885_v7 }
 0x116   : > { %4058 = vmatmul.mubr.bf16.gmra.mrb[24].mxu1 %v5318_v8  ;;  %v2888_v8 = vld [vmem:[#allocation2 + $0x12a] sm:$0xff] }
 0x117   : > { %4282 = vmatmul.mubr.bf16.gmra.mrb[8].mxu0 %v2904_v34  ;;  %4061 = vmatprep.mubr.bf16.mxu1 %v5330_v25  ;;  %v2909_v51 = vpack.c.bf16 %v2888_v8, %v2887_v19  ;;  %v2889_v25 = vld [vmem:[#allocation2 + $0x13a] sm:$0xff] }
 0x118   : > { %4285 = vmatprep.mubr.bf16.mxu0 %v2905_v52  ;;  %v2910_v21 = vpack.c.bf16 %v2890_v15, %v2889_v25 }
 0x11e   : > { %4062 = vmatmul.mubr.bf16.gmra.mrb[28].mxu1 %v5362_v42  ;;  %v2892_v42 = vld [vmem:[#allocation2 + $0x15a] sm:$0xff] }
 0x11f   : > { %4286 = vmatmul.mubr.bf16.gmra.mrb[12].mxu0 %v2906_v18  ;;  %4097 = vmatprep.mubr.bf16.mxu1 %v5409_v30  ;;  %v2911_v29 = vpack.c.bf16 %v2892_v42, %v2891_v16  ;;  %v2893_v30 = vld [vmem:[#allocation2 + $0x16a] sm:$0xff] }
 0x120   : > { %4289 = vmatprep.mubr.bf16.mxu0 %v2907_v5  ;;  %v2912_v40 = vpack.c.bf16 %v2894_v63, %v2893_v30 }
 0x126   : > { %4098 = vmatmul.mubr.bf16.vlgmr.msra.gmra.mrb[16].mxu1 %v5411_v33  ;;  %v1671_v33 = vld [vmem:[#allocation2 + $0x171] sm:$0xff] }
 0x127   : > { %4290 = vmatmul.mubr.bf16.gmra.mrb[16].mxu0 %v2908_v28  ;;  %4101 = vmatprep.mubr.bf16.mxu1 %v5420_v6  ;;  %v1688_v6 = vpack.c.bf16 %v1671_v33, %v1670_v9 }
 0x128   : > { %4293 = vmatprep.mubr.bf16.mxu0 %v2909_v51 }
 0x12e   : > { %4102 = vmatmul.mubr.bf16.gmra.mrb[20].mxu1 %v5422_v14  ;;  %v2897_v14 = vld [vmem:[#allocation2 + $0x19a] sm:$0xff] }
 0x12f   : > { %4294 = vmatmul.mubr.bf16.gmra.mrb[20].mxu0 %v2910_v21  ;;  %4105 = vmatprep.mubr.bf16.mxu1 %v5432_v3  ;;  %v2914_v3 = vpack.c.bf16 %v2898_v57, %v2897_v14 }
 0x130   : > { %4297 = vmatprep.mubr.bf16.mxu0 %v2911_v29 }
 0x136   : > { %4106 = vmatmul.mubr.bf16.gmra.mrb[24].mxu1 %v5434_v27 }
 0x137   : > { %4298 = vmatmul.mubr.bf16.gmra.mrb[24].mxu0 %v2912_v40  ;;  %4109 = vmatprep.mubr.bf16.mxu1 %v1688_v6 }
 0x138   : > { %4301 = vmatprep.mubr.bf16.mxu0 %v2913_v50 }
 0x13e   : > { %4110 = vmatmul.mubr.bf16.gmra.mrb[28].mxu1 %v1689_v58 }
 0x13f   : > { %4302 = vmatmul.mubr.bf16.gmra.mrb[28].mxu0 %v2914_v3 }
 0x1b9   : > { %v4035_v46 = vpop.f32.mrb[0].mxu1 }
 0x1ba   : > { %v1483_v43 = vpop.f32.mrb[1].mxu1 }
 0x1bb   : > { %v4036_v44 = vpop.f32.mrb[2].mxu1 }
 0x1bc   : > { %v1486_v55 = vpop.f32.mrb[3].mxu1 }
 0x1c1   : > { %v4039_v11 = vpop.f32.mrb[4].mxu1 }
 0x1c2   : > { %v1499_v17 = vpop.f32.mrb[5].mxu1 }
 0x1c3   : > { %v4040_v22 = vpop.f32.mrb[6].mxu1 }
 0x1c4   : > { %v1502_v27 = vpop.f32.mrb[7].mxu1 }
 0x1c9   : > { %v4043_v48 = vpop.f32.mrb[8].mxu1 }
 0x1ca   : > { %v1515_v36 = vpop.f32.mrb[9].mxu1 }
 0x1cb   : > { %v5477_v37 = vpop.f32.mrb[10].mxu1 }
 0x1cc   : > { %v5479_v31 = vpop.f32.mrb[11].mxu1 }
 0x1d1   : > { %v5481_v13 = vpop.f32.mrb[12].mxu1 }
 0x1d2   : > { %v5483_v26 = vpop.f32.mrb[13].mxu1 }
 0x1d3   : > { %v5485_v41 = vpop.f32.mrb[14].mxu1 }
 0x1d4   : > { %v5487_v54 = vpop.f32.mrb[15].mxu1 }
 0x1da   : > { %v4275_v60 = vpop.f32.mrb[0].mxu0 }
 0x1db   : > { %v4321_v24 = vadd.f32 %v4275_v60, %v4035_v46  ;;  %v3014_v35 = vpop.f32.mrb[1].mxu0 }
 0x1dc   : > { %v4322_v47 = vadd.f32 %v3014_v35, %v1483_v43  ;;  %v4276_v32 = vpop.f32.mrb[2].mxu0 }
 0x1dd   : > { %v3181_v38 = vadd.f32 %v4321_v24, %v5492_v59  ;;  %v4323_v49 = vadd.f32 %v4276_v32, %v4036_v44  ;;  %v3017_v39 = vpop.f32.mrb[3].mxu0 }
 0x1de   : > { %v3179_v45 = vadd.f32 %v4322_v47, %v5492_v59  ;;  %v4324_v56 = vadd.f32 %v3017_v39, %v1486_v55 }
 0x1df   : > { %3321 = vst [vmem:[%s5499_s28 + $0x10] sm:$0xff] %v3181_v38  ;;  %v3182_v61 = vadd.f32 %v4323_v49, %v5492_v59  ;;  %v3251_v18 = vmul.f32 %v3181_v38, %v3181_v38 }
 0x1e0   : > { %3319 = vst [vmem:[%s5499_s28] sm:$0xff] %v3179_v45  ;;  %v3180_v2 = vadd.f32 %v4324_v56, %v5492_v59  ;;  %v3249_v34 = vmul.f32 %v3179_v45, %v3179_v45 }
 0x1e1   : > { %3322 = vst [vmem:[%s5499_s28 + $0x18] sm:$0xff] %v3182_v61  ;;  %v3252_v8 = vmul.f32 %v3182_v61, %v3182_v61 }
 0x1e2   : > { %v3211_v52 = vadd.f32 %v3180_v2, %v3179_v45  ;;  %v3250_v62 = vmul.f32 %v3180_v2, %v3180_v2  ;;  %3320 = vst [vmem:[%s5499_s28 + $0x8] sm:$0xff] %v3180_v2  ;;  %v4279_v12 = vpop.f32.mrb[4].mxu0 }
 0x1e3   : > { %v4325_v4 = vadd.f32 %v4279_v12, %v4039_v11  ;;  %v3030_v1 = vpop.f32.mrb[5].mxu0 }
 0x1e4   : > { %v3212_v5 = vadd.f32 %v3211_v52, %v3181_v38  ;;  %v3281_v7 = vadd.f32 %v3250_v62, %v3249_v34  ;;  %v4326_v10 = vadd.f32 %v3030_v1, %v1499_v17  ;;  %v4280_v19 = vpop.f32.mrb[6].mxu0 }
 0x1e5   : > { %v3185_v28 = vadd.f32 %v4325_v4, %v5492_v59  ;;  %v4327_v51 = vadd.f32 %v4280_v19, %v4040_v22  ;;  %v3033_v25 = vpop.f32.mrb[7].mxu0 }
 0x1e6   : > { %v3282_v15 = vadd.f32 %v3281_v7, %v3251_v18  ;;  %v3183_v16 = vadd.f32 %v4326_v10, %v5492_v59  ;;  %v3213_v42 = vadd.f32 %v3212_v5, %v3182_v61  ;;  %v4328_v21 = vadd.f32 %v3033_v25, %v1502_v27 }
 0x1e7   : > { %3325 = vst [vmem:[%s5499_s28 + $0x30] sm:$0xff] %v3185_v28  ;;  %v3186_v29 = vadd.f32 %v4327_v51, %v5492_v59  ;;  %v3255_v20 = vmul.f32 %v3185_v28, %v3185_v28 }
 0x1e8   : > { %v3214_v30 = vadd.f32 %v3213_v42, %v3183_v16  ;;  %v3253_v63 = vmul.f32 %v3183_v16, %v3183_v16  ;;  %v3283_v9 = vadd.f32 %v3282_v15, %v3252_v8  ;;  %3323 = vst [vmem:[%s5499_s28 + $0x20] sm:$0xff] %v3183_v16  ;;  %v3184_v33 = vadd.f32 %v4328_v21, %v5492_v59 }
 0x1e9   : > { %3326 = vst [vmem:[%s5499_s28 + $0x38] sm:$0xff] %v3186_v29  ;;  %v3256_v46 = vmul.f32 %v3186_v29, %v3186_v29 }
 0x1ea   : > { %v3284_v53 = vadd.f32 %v3283_v9, %v3253_v63  ;;  %v3215_v0 = vadd.f32 %v3214_v30, %v3184_v33  ;;  %v3254_v40 = vmul.f32 %v3184_v33, %v3184_v33  ;;  %3324 = vst [vmem:[%s5499_s28 + $0x28] sm:$0xff] %v3184_v33  ;;  %v4283_v6 = vpop.f32.mrb[8].mxu0 }
 0x1eb   : > { %v4329_v50 = vadd.f32 %v4283_v6, %v4043_v48  ;;  %v3046_v23 = vpop.f32.mrb[9].mxu0 }
 0x1ec   : > { %v3216_v14 = vadd.f32 %v3215_v0, %v3185_v28  ;;  %v3285_v57 = vadd.f32 %v3284_v53, %v3254_v40  ;;  %v4330_v58 = vadd.f32 %v3046_v23, %v1515_v36  ;;  %v4284_v3 = vpop.f32.mrb[10].mxu0 }
 0x1ed   : > { %v3189_v43 = vadd.f32 %v4329_v50, %v5492_v59  ;;  %v4331_v44 = vadd.f32 %v4284_v3, %v5477_v37  ;;  %v3049_v55 = vpop.f32.mrb[11].mxu0 }
 0x1ee   : > { %v3286_v11 = vadd.f32 %v3285_v57, %v3255_v20  ;;  %v3187_v17 = vadd.f32 %v4330_v58, %v5492_v59  ;;  %v3217_v22 = vadd.f32 %v3216_v14, %v3186_v29  ;;  %v4332_v27 = vadd.f32 %v3049_v55, %v5479_v31 }
 0x1ef   : > { %3329 = vst [vmem:[%s5499_s28 + $0x50] sm:$0xff] %v3189_v43  ;;  %v3190_v48 = vadd.f32 %v4331_v44, %v5492_v59  ;;  %v3259_v31 = vmul.f32 %v3189_v43, %v3189_v43 }
 0x1f0   : > { %v3218_v60 = vadd.f32 %v3217_v22, %v3187_v17  ;;  %v3257_v36 = vmul.f32 %v3187_v17, %v3187_v17  ;;  %v3287_v24 = vadd.f32 %v3286_v11, %v3256_v46  ;;  %3327 = vst [vmem:[%s5499_s28 + $0x40] sm:$0xff] %v3187_v17  ;;  %v3188_v35 = vadd.f32 %v4332_v27, %v5492_v59 }
 0x1f1   : > { %3330 = vst [vmem:[%s5499_s28 + $0x58] sm:$0xff] %v3190_v48  ;;  %v3260_v34 = vmul.f32 %v3190_v48, %v3190_v48 }
 0x1f2   : > { %v3288_v47 = vadd.f32 %v3287_v24, %v3257_v36  ;;  %v3219_v37 = vadd.f32 %v3218_v60, %v3188_v35  ;;  %v3258_v32 = vmul.f32 %v3188_v35, %v3188_v35  ;;  %3328 = vst [vmem:[%s5499_s28 + $0x48] sm:$0xff] %v3188_v35  ;;  %v4287_v38 = vpop.f32.mrb[12].mxu0 }
 0x1f3   : > { %v4333_v49 = vadd.f32 %v4287_v38, %v5481_v13  ;;  %v3062_v39 = vpop.f32.mrb[13].mxu0 }
 0x1f4   : > { %v3220_v45 = vadd.f32 %v3219_v37, %v3189_v43  ;;  %v3289_v56 = vadd.f32 %v3288_v47, %v3258_v32  ;;  %v4334_v61 = vadd.f32 %v3062_v39, %v5483_v26  ;;  %v4288_v2 = vpop.f32.mrb[14].mxu0 }
 0x1f5   : > { %v3193_v52 = vadd.f32 %v4333_v49, %v5492_v59  ;;  %v4335_v62 = vadd.f32 %v4288_v2, %v5485_v41  ;;  %v3065_v12 = vpop.f32.mrb[15].mxu0 }
 0x1f6   : > { %v3290_v4 = vadd.f32 %v3289_v56, %v3259_v31  ;;  %v3191_v1 = vadd.f32 %v4334_v61, %v5492_v59  ;;  %v3221_v13 = vadd.f32 %v3220_v45, %v3190_v48  ;;  %v4336_v18 = vadd.f32 %v3065_v12, %v5487_v54 }
 0x1f7   : > { %3333 = vst [vmem:[%s5499_s28 + $0x70] sm:$0xff] %v3193_v52  ;;  %v3194_v5 = vadd.f32 %v4335_v62, %v5492_v59  ;;  %v3263_v21 = vmul.f32 %v3193_v52, %v3193_v52 }
 0x1f8   : > { %v3222_v7 = vadd.f32 %v3221_v13, %v3191_v1  ;;  %v3261_v26 = vmul.f32 %v3191_v1, %v3191_v1  ;;  %v3291_v10 = vadd.f32 %v3290_v4, %v3260_v34  ;;  %3331 = vst [vmem:[%s5499_s28 + $0x60] sm:$0xff] %v3191_v1  ;;  %v3192_v19 = vadd.f32 %v4336_v18, %v5492_v59 }
 0x1f9   : > { %3334 = vst [vmem:[%s5499_s28 + $0x78] sm:$0xff] %v3194_v5  ;;  %v4099_v8 = vpop.f32.mrb[16].mxu1  ;;  %v3264_v53 = vmul.f32 %v3194_v5, %v3194_v5 }
 0x1fa   : > { %v3292_v41 = vadd.f32 %v3291_v10, %v3261_v26  ;;  %v3223_v28 = vadd.f32 %v3222_v7, %v3192_v19  ;;  %v3262_v51 = vmul.f32 %v3192_v19, %v3192_v19  ;;  %3332 = vst [vmem:[%s5499_s28 + $0x68] sm:$0xff] %v3192_v19  ;;  %v4291_v25 = vpop.f32.mrb[16].mxu0  ;;  %v1853_v15 = vpop.f32.mrb[17].mxu1 }
 0x1fb   : > { %v4337_v16 = vadd.f32 %v4291_v25, %v4099_v8  ;;  %v3078_v42 = vpop.f32.mrb[17].mxu0  ;;  %v4100_v54 = vpop.f32.mrb[18].mxu1 }
 0x1fc   : > { %v3224_v29 = vadd.f32 %v3223_v28, %v3193_v52  ;;  %v3293_v30 = vadd.f32 %v3292_v41, %v3262_v51  ;;  %v4338_v63 = vadd.f32 %v3078_v42, %v1853_v15  ;;  %v4292_v9 = vpop.f32.mrb[18].mxu0  ;;  %v1856_v33 = vpop.f32.mrb[19].mxu1 }
 0x1fd   : > { %v3197_v0 = vadd.f32 %v4337_v16, %v5492_v59  ;;  %v4339_v40 = vadd.f32 %v4292_v9, %v4100_v54  ;;  %v3081_v6 = vpop.f32.mrb[19].mxu0 }
 0x1fe   : > { %v3294_v50 = vadd.f32 %v3293_v30, %v3263_v21  ;;  %v3195_v23 = vadd.f32 %v4338_v63, %v5492_v59  ;;  %v3225_v20 = vadd.f32 %v3224_v29, %v3194_v5  ;;  %v4340_v14 = vadd.f32 %v3081_v6, %v1856_v33 }
 0x1ff   : > { %3337 = vst [vmem:[%s5499_s28 + $0x90] sm:$0xff] %v3197_v0  ;;  %v3198_v57 = vadd.f32 %v4339_v40, %v5492_v59  ;;  %v3267_v24 = vmul.f32 %v3197_v0, %v3197_v0 }
 0x200   : > { %v3226_v58 = vadd.f32 %v3225_v20, %v3195_v23  ;;  %v3265_v3 = vmul.f32 %v3195_v23, %v3195_v23  ;;  %v3295_v46 = vadd.f32 %v3294_v50, %v3264_v53  ;;  %3335 = vst [vmem:[%s5499_s28 + $0x80] sm:$0xff] %v3195_v23  ;;  %v3196_v43 = vadd.f32 %v4340_v14, %v5492_v59 }
 0x201   : > { %3338 = vst [vmem:[%s5499_s28 + $0x98] sm:$0xff] %v3198_v57  ;;  %v4103_v44 = vpop.f32.mrb[20].mxu1  ;;  %v3268_v49 = vmul.f32 %v3198_v57, %v3198_v57 }
 0x202   : > { %v3296_v55 = vadd.f32 %v3295_v46, %v3265_v3  ;;  %v3227_v11 = vadd.f32 %v3226_v58, %v3196_v43  ;;  %v3266_v17 = vmul.f32 %v3196_v43, %v3196_v43  ;;  %3336 = vst [vmem:[%s5499_s28 + $0x88] sm:$0xff] %v3196_v43  ;;  %v4295_v22 = vpop.f32.mrb[20].mxu0  ;;  %v1869_v27 = vpop.f32.mrb[21].mxu1 }
 0x203   : > { %v4341_v48 = vadd.f32 %v4295_v22, %v4103_v44  ;;  %v3094_v60 = vpop.f32.mrb[21].mxu0  ;;  %v4104_v36 = vpop.f32.mrb[22].mxu1 }
 0x204   : > { %v3228_v35 = vadd.f32 %v3227_v11, %v3197_v0  ;;  %v3297_v47 = vadd.f32 %v3296_v55, %v3266_v17  ;;  %v4342_v37 = vadd.f32 %v3094_v60, %v1869_v27  ;;  %v4296_v32 = vpop.f32.mrb[22].mxu0  ;;  %v1872_v38 = vpop.f32.mrb[23].mxu1 }
 0x205   : > { %v3201_v39 = vadd.f32 %v4341_v48, %v5492_v59  ;;  %v4343_v31 = vadd.f32 %v4296_v32, %v4104_v36  ;;  %v3097_v45 = vpop.f32.mrb[23].mxu0 }
 0x206   : > { %v3298_v56 = vadd.f32 %v3297_v47, %v3267_v24  ;;  %v3199_v61 = vadd.f32 %v4342_v37, %v5492_v59  ;;  %v3229_v2 = vadd.f32 %v3228_v35, %v3198_v57  ;;  %v4344_v34 = vadd.f32 %v3097_v45, %v1872_v38 }
 0x207   : > { %3341 = vst [vmem:[%s5499_s28 + $0xb0] sm:$0xff] %v3201_v39  ;;  %v3202_v52 = vadd.f32 %v4343_v31, %v5492_v59  ;;  %v3271_v28 = vmul.f32 %v3201_v39, %v3201_v39 }
 0x208   : > { %v3230_v62 = vadd.f32 %v3229_v2, %v3199_v61  ;;  %v3269_v12 = vmul.f32 %v3199_v61, %v3199_v61  ;;  %v3299_v4 = vadd.f32 %v3298_v56, %v3268_v49  ;;  %3339 = vst [vmem:[%s5499_s28 + $0xa0] sm:$0xff] %v3199_v61  ;;  %v3200_v1 = vadd.f32 %v4344_v34, %v5492_v59 }
 0x209   : > { %3342 = vst [vmem:[%s5499_s28 + $0xb8] sm:$0xff] %v3202_v52  ;;  %v4107_v13 = vpop.f32.mrb[24].mxu1  ;;  %v3272_v54 = vmul.f32 %v3202_v52, %v3202_v52 }
 0x20a   : > { %v3300_v18 = vadd.f32 %v3299_v4, %v3269_v12  ;;  %v3231_v5 = vadd.f32 %v3230_v62, %v3200_v1  ;;  %v3270_v7 = vmul.f32 %v3200_v1, %v3200_v1  ;;  %3340 = vst [vmem:[%s5499_s28 + $0xa8] sm:$0xff] %v3200_v1  ;;  %v4299_v26 = vpop.f32.mrb[24].mxu0  ;;  %v1885_v10 = vpop.f32.mrb[25].mxu1 }
 0x20b   : > { %v4345_v19 = vadd.f32 %v4299_v26, %v4107_v13  ;;  %v3110_v8 = vpop.f32.mrb[25].mxu0  ;;  %v4108_v41 = vpop.f32.mrb[26].mxu1 }
 0x20c   : > { %v3232_v51 = vadd.f32 %v3231_v5, %v3201_v39  ;;  %v3301_v25 = vadd.f32 %v3300_v18, %v3270_v7  ;;  %v4346_v15 = vadd.f32 %v3110_v8, %v1885_v10  ;;  %v4300_v16 = vpop.f32.mrb[26].mxu0  ;;  %v1888_v42 = vpop.f32.mrb[27].mxu1 }
 0x20d   : > { %v3205_v21 = vadd.f32 %v4345_v19, %v5492_v59  ;;  %v4347_v29 = vadd.f32 %v4300_v16, %v4108_v41  ;;  %v3113_v30 = vpop.f32.mrb[27].mxu0 }
 0x20e   : > { %v3302_v63 = vadd.f32 %v3301_v25, %v3271_v28  ;;  %v3203_v9 = vadd.f32 %v4346_v15, %v5492_v59  ;;  %v3233_v33 = vadd.f32 %v3232_v51, %v3202_v52  ;;  %v4348_v53 = vadd.f32 %v3113_v30, %v1888_v42 }
 0x20f   : > { %3345 = vst [vmem:[%s5499_s28 + $0xd0] sm:$0xff] %v3205_v21  ;;  %v3206_v0 = vadd.f32 %v4347_v29, %v5492_v59  ;;  %v3275_v11 = vmul.f32 %v3205_v21, %v3205_v21 }
 0x210   : > { %v3234_v40 = vadd.f32 %v3233_v33, %v3203_v9  ;;  %v3273_v6 = vmul.f32 %v3203_v9, %v3203_v9  ;;  %v3303_v50 = vadd.f32 %v3302_v63, %v3272_v54  ;;  %3343 = vst [vmem:[%s5499_s28 + $0xc0] sm:$0xff] %v3203_v9  ;;  %v3204_v23 = vadd.f32 %v4348_v53, %v5492_v59 }
 0x211   : > { %3346 = vst [vmem:[%s5499_s28 + $0xd8] sm:$0xff] %v3206_v0  ;;  %v4111_v20 = vpop.f32.mrb[28].mxu1  ;;  %v3276_v36 = vmul.f32 %v3206_v0, %v3206_v0 }
 0x212   : > { %v3304_v14 = vadd.f32 %v3303_v50, %v3273_v6  ;;  %v3235_v57 = vadd.f32 %v3234_v40, %v3204_v23  ;;  %v3274_v58 = vmul.f32 %v3204_v23, %v3204_v23  ;;  %3344 = vst [vmem:[%s5499_s28 + $0xc8] sm:$0xff] %v3204_v23  ;;  %v4303_v3 = vpop.f32.mrb[28].mxu0  ;;  %v1901_v46 = vpop.f32.mrb[29].mxu1 }
 0x213   : > { %v4349_v43 = vadd.f32 %v4303_v3, %v4111_v20  ;;  %v3126_v44 = vpop.f32.mrb[29].mxu0  ;;  %v4112_v55 = vpop.f32.mrb[30].mxu1 }
 0x214   : > { %v3236_v17 = vadd.f32 %v3235_v57, %v3205_v21  ;;  %v3305_v22 = vadd.f32 %v3304_v14, %v3274_v58  ;;  %v4350_v27 = vadd.f32 %v3126_v44, %v1901_v46  ;;  %v4304_v48 = vpop.f32.mrb[30].mxu0  ;;  %v1904_v60 = vpop.f32.mrb[31].mxu1 }
 0x215   : > { %v3209_v24 = vadd.f32 %v4349_v43, %v5492_v59  ;;  %v4351_v35 = vadd.f32 %v4304_v48, %v4112_v55  ;;  %v3129_v47 = vpop.f32.mrb[31].mxu0 }
 0x216   : > { %v3306_v37 = vadd.f32 %v3305_v22, %v3275_v11  ;;  %v3207_v32 = vadd.f32 %v4350_v27, %v5492_v59  ;;  %v3237_v38 = vadd.f32 %v3236_v17, %v3206_v0  ;;  %v4352_v49 = vadd.f32 %v3129_v47, %v1904_v60 }
 0x217   : > { %3349 = vst [vmem:[%s5499_s28 + $0xf0] sm:$0xff] %v3209_v24  ;;  %v3210_v39 = vadd.f32 %v4351_v35, %v5492_v59  ;;  %v3279_v62 = vmul.f32 %v3209_v24, %v3209_v24 }
 0x218   : > { %v3238_v31 = vadd.f32 %v3237_v38, %v3207_v32  ;;  %v3277_v45 = vmul.f32 %v3207_v32, %v3207_v32  ;;  %v3307_v56 = vadd.f32 %v3306_v37, %v3276_v36  ;;  %3347 = vst [vmem:[%s5499_s28 + $0xe0] sm:$0xff] %v3207_v32  ;;  %v3208_v61 = vadd.f32 %v4352_v49, %v5492_v59 }
 0x219   : > { %3350 = vst [vmem:[%s5499_s28 + $0xf8] sm:$0xff] %v3210_v39  ;;  %v3280_v1 = vmul.f32 %v3210_v39, %v3210_v39 }
 0x21a   : > { %v3308_v2 = vadd.f32 %v3307_v56, %v3277_v45  ;;  %v3239_v34 = vadd.f32 %v3238_v31, %v3208_v61  ;;  %v3278_v52 = vmul.f32 %v3208_v61, %v3208_v61  ;;  %3348 = vst [vmem:[%s5499_s28 + $0xe8] sm:$0xff] %v3208_v61 }
 0x21c   : > { %v3240_v12 = vadd.f32 %v3239_v34, %v3209_v24  ;;  %v3309_v4 = vadd.f32 %v3308_v2, %v3278_v52 }
 0x21e   : > { %v3241_v13 = vadd.f32 %v3240_v12, %v3210_v39  ;;  %v3310_v18 = vadd.f32 %v3309_v4, %v3279_v62 }
 0x220   : > { %v3242_v5 = vrot.slane %v3241_v13, 4  ;;  %v3311_v7 = vadd.f32 %v3310_v18, %v3280_v1 }
 0x222   : > { %v3243_v26 = vadd.f32 %v3242_v5, %v3241_v13  ;;  %v3312_v10 = vrot.slane %v3311_v7, 4 }
 0x224   : > { %v3244_v19 = vrot.slane %v3243_v26, 2  ;;  %v3313_v8 = vadd.f32 %v3312_v10, %v3311_v7 }
 0x226   : > { %v3245_v41 = vadd.f32 %v3244_v19, %v3243_v26  ;;  %v3314_v59 = vrot.slane %v3313_v8, 2 }
 0x228   : > { %v3246_v28 = vrot.slane %v3245_v41, 1  ;;  %v3315_v51 = vadd.f32 %v3314_v59, %v3313_v8 }
 0x22a   : > { %v3316_v25 = vrot.slane %v3315_v51, 1  ;;  %v3247_v15 = vadd.f32 %v3246_v28, %v3245_v41 }
 0x22c   : > { %v3317_v16 = vadd.f32 %v3316_v25, %v3315_v51 }
 0x22e   : > { %v3352_v42 = vsel %vm3351_vm0, %v3247_v15, %v3317_v16 }
 0x22f   : > { %3353 = vst [vmem:[%s262_s7] sm:$0x3] %v3352_v42 }
 0x230 PF: > { %s17_s21 = sadd.s32 1, %s4673_s21  }
 0x231   : > { %p14_p4 = scmp.ge.s32.totalorder %s17_s21, 4  }
 0x233   :  { %16 = sbr.rel (!%p14_p4) target bundleno = 1 (0x1), region = 93 }

</bundles_post_ra>
